<compile_context>
chip_gen: v7x
topology: tpu7x:2x2x1
jax: 0.10.0
libtpu: 0.0.40
codegen_flags: <defaults>
</compile_context>

<pallas_src>
import jax
import jax.numpy as jnp
from jax.experimental import pallas as pl
from jax.experimental.pallas import tpu as pltpu


_LS = 0.1  # label smoothing, matches F.cross_entropy(label_smoothing=0.1)


# ----------------------------------------------------------------------------
# in-kernel helpers (traced inside the single fused kernel)
# ----------------------------------------------------------------------------
def _layernorm(x, g, b, eps=1e-5):
    mu = jnp.mean(x, axis=-1, keepdims=True)
    xc = x - mu
    var = jnp.mean(xc * xc, axis=-1, keepdims=True)
    return xc * jax.lax.rsqrt(var + eps) * g + b


def _l2_normalize(x, eps=1e-12):
    # rsqrt rides the EUP slot; eps mirrors F.normalize's norm clamp.
    return x * jax.lax.rsqrt(jnp.sum(x * x, axis=-1, keepdims=True) + eps)


def _ce_smoothed(sim, tdist, axis):
    # label-smoothed cross-entropy along `axis`; targets are the diagonal.
    m = jnp.max(sim, axis=axis, keepdims=True)
    lse = m + jnp.log(jnp.sum(jnp.exp(sim - m), axis=axis, keepdims=True))
    logp = sim - lse
    return jnp.mean(-jnp.sum(tdist * logp, axis=axis, keepdims=True))


def _diag_acc(sim, axis):
    # mean(first-argmax(sim, axis) == diagonal index), no argmax primitive.
    b = sim.shape[0]
    along = jax.lax.broadcasted_iota(jnp.int32, sim.shape, axis)
    mx = jnp.max(sim, axis=axis, keepdims=True)
    first = jnp.min(jnp.where(sim == mx, along, b), axis=axis, keepdims=True)
    tg = jax.lax.broadcasted_iota(jnp.int32, first.shape, 1 - axis)
    return jnp.mean((first == tg).astype(jnp.float32))


def _contrastive(img_f, txt_f, inv_scale):
    """(loss, i2t_acc, t2i_acc). sim_t2i == sim_i2t.T, so the t2i direction is
    evaluated along axis 0 of the single sim matrix (no 2nd matmul/transpose)."""
    b = img_f.shape[0]
    sim = jax.lax.dot_general(
        img_f, txt_f, (((1,), (1,)), ((), ())),
        preferred_element_type=jnp.float32) * inv_scale              # (B, B)
    row = jax.lax.broadcasted_iota(jnp.int32, (b, b), 0)
    col = jax.lax.broadcasted_iota(jnp.int32, (b, b), 1)
    tdist = jnp.where(row == col, (1.0 - _LS) + _LS / b, _LS / b)    # symmetric
    loss = 0.5 * (_ce_smoothed(sim, tdist, 1) + _ce_smoothed(sim, tdist, 0))
    return loss, _diag_acc(sim, 1), _diag_acc(sim, 0)


# ----------------------------------------------------------------------------
# the single fused forward kernel
# ----------------------------------------------------------------------------
def _fused_forward_kernel(
        scales_ref,                                 # SMEM (2,): [logit_scale_q, logit_scale_h]
        img_ref, tcls_in_ref,                       # (M, D), (B, D)
        wq1_ref, bq1_ref, wqc_ref, bqc_ref,         # qformer image path
        wt_ref, bt_ref,                             # qformer text path (cls token)
        lnqg_ref, lnqb_ref, wiq_ref, wtq_ref,       # qformer contrast head
        cb_ref,                                     # (K, D) codebook
        wd1_ref, bd1_ref, wdc_ref, bdc_ref,         # distiller
        lnhg_ref, lnhb_ref, wih_ref, wth_ref,       # shared contrast head
        idx_ref, out_ref):                          # outs: (M,1) i32 VMEM, (9,) f32 SMEM
    img = img_ref[...]                              # (M, D) f32
    M, D = img.shape
    B = tcls_in_ref.shape[0]
    N = M // B
    K = cb_ref.shape[0]

    # ---- synthetic qformer: per-token proj (tanh) + mean-pooled cls token ----
    tok = jnp.tanh(
        jnp.dot(img, wq1_ref[...], preferred_element_type=jnp.float32)
        + bq1_ref[...])                             # (M, D) == qformer token embeds
    # per-batch mean pool as a (B, M) matmul — avoids 3-D reshape / int division.
    prow = jax.lax.broadcasted_iota(jnp.int32, (B, M), 0)
    pcol = jax.lax.broadcasted_iota(jnp.int32, (B, M), 1)
    pool = jnp.where((pcol >= prow * N) & (pcol < (prow + 1) * N),
                     jnp.float32(1.0 / N), jnp.float32(0.0))         # (B, M)
    pooled = jnp.dot(pool, img, preferred_element_type=jnp.float32)  # (B, D)
    qcls = jnp.tanh(
        jnp.dot(pooled, wqc_ref[...], preferred_element_type=jnp.float32)
        + bqc_ref[...])                             # qformer cls embeds

    # ---- synthetic qformer text path (only token 0 feeds text_cls_embeds) ----
    tcls = jnp.tanh(
        jnp.dot(tcls_in_ref[...], wt_ref[...], preferred_element_type=jnp.float32)
        + bt_ref[...])                              # (B, D)

    # ---- qformer contrastive branch (freeze_qformer=False, has_contrast) -----
    inv_scale_q = 1.0 / scales_ref[0]               # one scalar reciprocal
    q_img = _l2_normalize(jnp.dot(
        _layernorm(qcls, lnqg_ref[...], lnqb_ref[...]),
        wiq_ref[...], preferred_element_type=jnp.float32))
    q_txt = _l2_normalize(jnp.dot(
        tcls, wtq_ref[...], preferred_element_type=jnp.float32))
    q_loss, q_i2t, q_t2i = _contrastive(q_img, q_txt, inv_scale_q)

    # ---- vector quantize: nearest codebook entry ------------------------------
    cb = cb_ref[...]                                # (K, D)
    # argmin_k ||x - c_k||^2 == argmax_k (x·c_k - 0.5*||c_k||^2); ||x||^2 is
    # row-constant so it is dropped.  Contractions avoid explicit transposes.
    xc = jax.lax.dot_general(tok, cb, (((1,), (1,)), ((), ())),
                             preferred_element_type=jnp.float32)     # (M, K)
    c2 = jax.lax.dot_general(jnp.ones((1, D), jnp.float32), cb * cb,
                             (((1,), (1,)), ((), ())),
                             preferred_element_type=jnp.float32)     # (1, K)
    score = xc - 0.5 * c2
    kcol = jax.lax.broadcasted_iota(jnp.int32, (M, K), 1)
    smax = jnp.max(score, axis=-1, keepdims=True)
    idx = jnp.min(jnp.where(score == smax, kcol, K),
                  axis=-1, keepdims=True)                            # (M, 1) i32
    onehot = (idx == kcol).astype(jnp.float32)
    quant = jnp.dot(onehot, cb, preferred_element_type=jnp.float32)  # (M, D)
    dq = quant - tok
    commit = jnp.mean(dq * dq)
    # TODO(synk): straight-through estimator / stop_gradient split of the VQ
    # loss is omitted (forward values match; gradients would not).

    # ---- synthetic distiller: per-token proj + pooled cls token ---------------
    recon = jnp.tanh(
        jnp.dot(quant, wd1_ref[...], preferred_element_type=jnp.float32)
        + bd1_ref[...])                             # (M, D) reconstructed tokens
    dpool = jnp.dot(pool, quant, preferred_element_type=jnp.float32)
    dcls = jnp.tanh(
        jnp.dot(dpool, wdc_ref[...], preferred_element_type=jnp.float32)
        + bdc_ref[...])
    head_cls = _layernorm(dcls, lnhg_ref[...], lnhb_ref[...])        # cls_norm_head

    # ---- cosine distill loss vs raw image embeds (rec_qformer=False) ----------
    rn = _l2_normalize(recon)
    tn = _l2_normalize(img)
    distill = jnp.mean(1.0 - jnp.sum(rn * tn, axis=-1, keepdims=True))

    # ---- shared contrast head branch -------------------------------------------
    inv_scale_h = 1.0 / scales_ref[1]
    h_img = _l2_normalize(jnp.dot(
        head_cls, wih_ref[...], preferred_element_type=jnp.float32))
    h_txt = _l2_normalize(jnp.dot(
        tcls, wth_ref[...], preferred_element_type=jnp.float32))
    h_loss, h_i2t, h_t2i = _contrastive(h_img, h_txt, inv_scale_h)

    # ---- outputs ---------------------------------------------------------------
    idx_ref[...] = idx
    total = (1.0 * q_loss       # scale_contrast_loss = 1.0
             + 1.0 * commit     # scale_commit_loss   = 1.0
             + 1.0 * distill    # scale_distill_loss  = 1.0
             + 1.0 * h_loss)    # scale_contrast_loss = 1.0
    out_ref[0] = q_loss
    out_ref[1] = q_i2t
    out_ref[2] = q_t2i
    out_ref[3] = commit
    out_ref[4] = distill
    out_ref[5] = h_loss
    out_ref[6] = h_i2t
    out_ref[7] = h_t2i
    out_ref[8] = total


# ----------------------------------------------------------------------------
# parameters (deterministic, synthetic submodules)
# ----------------------------------------------------------------------------
def init_params(key, d, p, vocab, k_codes):
    ks = jax.random.split(key, 12)
    s = 0.02
    n = lambda kk, shape: s * jax.random.normal(kk, shape, jnp.float32)
    return {
        # synthetic qformer (image path: token proj + pooled cls proj)
        "wq1": n(ks[0], (d, d)), "bq1": jnp.zeros((1, d), jnp.float32),
        "wq_cls": n(ks[1], (d, d)), "bq_cls": jnp.zeros((1, d), jnp.float32),
        # synthetic qformer (text path)
        "tok_emb": n(ks[2], (vocab, d)),
        "wt": n(ks[3], (d, d)), "bt": jnp.zeros((1, d), jnp.float32),
        # qformer contrastive head (module's own parameters)
        "ln_q_g": jnp.ones((1, d), jnp.float32), "ln_q_b": jnp.zeros((1, d), jnp.float32),
        "w_img_q": n(ks[4], (d, p)),      # image_proj_qformer (bias=False), stored (in,out)
        "w_txt_q": n(ks[5], (d, p)),      # text_proj_qformer
        "logit_scale_q": jnp.full((1,), 0.07, jnp.float32),
        # quantizer codebook
        "codebook": n(ks[6], (k_codes, d)),
        # synthetic distiller
        "wd1": n(ks[7], (d, d)), "bd1": jnp.zeros((1, d), jnp.float32),
        "wd_cls": n(ks[8], (d, d)), "bd_cls": jnp.zeros((1, d), jnp.float32),
        # shared contrast head (module's own parameters)
        "ln_h_g": jnp.ones((1, d), jnp.float32), "ln_h_b": jnp.zeros((1, d), jnp.float32),
        "w_img_h": n(ks[9], (d, p)),
        "w_txt_h": n(ks[10], (d, p)),
        "logit_scale_h": jnp.full((1,), 0.07, jnp.float32),
    }


# ----------------------------------------------------------------------------
# forward pass (mirrors DiscreteModleDistillWithDoubleContrastive.forward)
# ----------------------------------------------------------------------------
@jax.jit
def forward(params, image_embeds, input_ids, text_attention_mask):
    B, N, D = image_embeds.shape
    img_flat = image_embeds.reshape(B * N, D)

    # Synthetic-qformer text path glue: embedding gather outside the kernel.
    # Only token 0 is consumed (text_cls_embeds = text_embeds[:, 0, :]).
    # TODO(synk): embedding-table gather is done by XLA (data-dependent row
    # gather has no clean rectangular BlockSpec equivalent at this size).
    temb0 = (params["tok_emb"][input_ids[:, 0]]
             * text_attention_mask[:, 0:1].astype(jnp.float32))       # (B, D)

    scales = jnp.concatenate(
        [params["logit_scale_q"], params["logit_scale_h"]])            # (2,)

    vmem = pl.BlockSpec(memory_space=pltpu.MemorySpace.VMEM)
    smem = pl.BlockSpec(memory_space=pltpu.MemorySpace.SMEM)

    idx, scalars = pl.pallas_call(
        _fused_forward_kernel,
        out_shape=(
            jax.ShapeDtypeStruct((B * N, 1), jnp.int32),
            jax.ShapeDtypeStruct((9,), jnp.float32),
        ),
        in_specs=[smem] + [vmem] * 21,
        out_specs=(vmem, smem),
    )(
        scales,
        img_flat, temb0,
        params["wq1"], params["bq1"], params["wq_cls"], params["bq_cls"],
        params["wt"], params["bt"],
        params["ln_q_g"], params["ln_q_b"], params["w_img_q"], params["w_txt_q"],
        params["codebook"],
        params["wd1"], params["bd1"], params["wd_cls"], params["bd_cls"],
        params["ln_h_g"], params["ln_h_b"], params["w_img_h"], params["w_th" "t_h"] if False else params["w_txt_h"],
    )

    return {
        "qformer_contrast_loss": scalars[0],
        "qformer_i2t_acc": scalars[1],
        "qformer_t2i_acc": scalars[2],
        "indices": idx.reshape(B, N),
        "commit_loss": scalars[3],
        "distill_loss": scalars[4],
        "head_contrast_loss": scalars[5],
        "head_i2t_acc": scalars[6],
        "head_t2i_acc": scalars[7],
        "total_loss": scalars[8],
    }


# ----------------------------------------------------------------------------
# pure-JAX reference (same synthetic submodules) — correctness oracle
# ----------------------------------------------------------------------------
def _ref_forward(params, image_embeds, input_ids, text_attention_mask):
    B, N, D = image_embeds.shape
    img = image_embeds.reshape(B * N, D)

    def ln(x, g, b, eps=1e-5):
        mu = jnp.mean(x, -1, keepdims=True)
        xc = x - mu
        var = jnp.mean(xc * xc, -1, keepdims=True)
        return xc / jnp.sqrt(var + eps) * g + b

    def l2n(x, eps=1e-12):
        return x / jnp.sqrt(jnp.sum(x * x, -1, keepdims=True) + eps)

    def contrast(img_f, txt_f, scale):
        b = img_f.shape[0]
        sim = img_f @ txt_f.T / scale
        tgt = jnp.arange(b)
        eye = jnp.eye(b)
        tdist = eye * (1.0 - _LS) + _LS / b
        loss = 0.5 * (jnp.mean(-jnp.sum(tdist * jax.nn.log_softmax(sim, 1), 1))
                      + jnp.mean(-jnp.sum(tdist * jax.nn.log_softmax(sim, 0), 0)))
        i2t = jnp.mean((jnp.argmax(sim, 1) == tgt).astype(jnp.float32))
        t2i = jnp.mean((jnp.argmax(sim, 0) == tgt).astype(jnp.float32))
        return loss, i2t, t2i

    tok = jnp.tanh(img @ params["wq1"] + params["bq1"])
    pooled = jnp.mean(image_embeds, axis=1)
    qcls = jnp.tanh(pooled @ params["wq_cls"] + params["bq_cls"])
    temb0 = (params["tok_emb"][input_ids[:, 0]]
             * text_attention_mask[:, 0:1].astype(jnp.float32))
    tcls = jnp.tanh(temb0 @ params["wt"] + params["bt"])

    q_img = l2n(ln(qcls, params["ln_q_g"], params["ln_q_b"]) @ params["w_img_q"])
    q_txt = l2n(tcls @ params["w_txt_q"])
    q_loss, q_i2t, q_t2i = contrast(q_img, q_txt, params["logit_scale_q"][0])

    cb = params["codebook"]
    score = tok @ cb.T - 0.5 * jnp.sum(cb * cb, -1)[None, :]
    idx = jnp.argmax(score, -1)
    quant = cb[idx]
    commit = jnp.mean((quant - tok) ** 2)

    recon = jnp.tanh(quant @ params["wd1"] + params["bd1"])
    dpool = jnp.mean(quant.reshape(B, N, D), axis=1)
    dcls = jnp.tanh(dpool @ params["wd_cls"] + params["bd_cls"])
    head_cls = ln(dcls, params["ln_h_g"], params["ln_h_b"])
    distill = jnp.mean(1.0 - jnp.sum(l2n(recon) * l2n(img), -1))

    h_img = l2n(head_cls @ params["w_img_h"])
    h_txt = l2n(tcls @ params["w_txt_h"])
    h_loss, h_i2t, h_t2i = contrast(h_img, h_txt, params["logit_scale_h"][0])

    total = q_loss + commit + distill + h_loss
    return {
        "qformer_contrast_loss": q_loss, "commit_loss": commit,
        "distill_loss": distill, "head_contrast_loss": h_loss,
        "total_loss": total, "indices": idx.reshape(B, N),
    }


# ----------------------------------------------------------------------------
if __name__ == "__main__":
    key = jax.random.PRNGKey(0)
    # Lane-dense small sizes: D = P = K = 128 (128-wide last dims), B*N = 128 rows.
    B, N, D, P, T, VOCAB, K = 8, 16, 128, 128, 8, 100, 128

    k0, k1, k2 = jax.random.split(key, 3)
    image_embeds = jax.random.normal(k0, (B, N, D), jnp.float32)
    input_ids = jax.random.randint(k1, (B, T), 0, VOCAB, dtype=jnp.int32)
    text_attention_mask = jnp.ones((B, T), jnp.int32)

    params = init_params(k2, D, P, VOCAB, K)

    output_state = forward(params, image_embeds, input_ids, text_attention_mask)
    output_state = jax.block_until_ready(output_state)

    # correctness: finite total loss + scalar losses match the pure-JAX reference
    # (loose tolerance: MXU f32 pass precision differs from XLA's dot).
    assert bool(jnp.isfinite(output_state["total_loss"]))
    ref = _ref_forward(params, image_embeds, input_ids, text_attention_mask)
    for name in ("qformer_contrast_loss", "commit_loss", "distill_loss",
                 "head_contrast_loss", "total_loss"):
        assert bool(jnp.allclose(output_state[name], ref[name],
                                 rtol=5e-2, atol=5e-2)), name

    print("KERNEL_OK")
</pallas_src>

<mosaic_0001>
module attributes {stable_mosaic.version = 11 : i64} {
  func.func @_fused_forward_kernel(%arg0: memref<2xf32, #tpu.memory_space<smem>>, %arg1: memref<128x128xf32, #tpu.memory_space<vmem>>, %arg2: memref<8x128xf32, #tpu.memory_space<vmem>>, %arg3: memref<128x128xf32, #tpu.memory_space<vmem>>, %arg4: memref<1x128xf32, #tpu.memory_space<vmem>>, %arg5: memref<128x128xf32, #tpu.memory_space<vmem>>, %arg6: memref<1x128xf32, #tpu.memory_space<vmem>>, %arg7: memref<128x128xf32, #tpu.memory_space<vmem>>, %arg8: memref<1x128xf32, #tpu.memory_space<vmem>>, %arg9: memref<1x128xf32, #tpu.memory_space<vmem>>, %arg10: memref<1x128xf32, #tpu.memory_space<vmem>>, %arg11: memref<128x128xf32, #tpu.memory_space<vmem>>, %arg12: memref<128x128xf32, #tpu.memory_space<vmem>>, %arg13: memref<128x128xf32, #tpu.memory_space<vmem>>, %arg14: memref<128x128xf32, #tpu.memory_space<vmem>>, %arg15: memref<1x128xf32, #tpu.memory_space<vmem>>, %arg16: memref<128x128xf32, #tpu.memory_space<vmem>>, %arg17: memref<1x128xf32, #tpu.memory_space<vmem>>, %arg18: memref<1x128xf32, #tpu.memory_space<vmem>>, %arg19: memref<1x128xf32, #tpu.memory_space<vmem>>, %arg20: memref<128x128xf32, #tpu.memory_space<vmem>>, %arg21: memref<128x128xf32, #tpu.memory_space<vmem>>, %arg22: memref<128x1xi32, #tpu.memory_space<vmem>>, %arg23: memref<9xf32, #tpu.memory_space<smem>>) attributes {dimension_semantics = [], scalar_prefetch = 0 : i64, scratch_operands = 0 : i64, tpu.core_type = #tpu.core_type<tc>} {
    %c0 = arith.constant 0 : index
    %c0_0 = arith.constant 0 : index
    %0 = vector.load %arg1[%c0, %c0_0] : memref<128x128xf32, #tpu.memory_space<vmem>>, vector<128x128xf32>
    %c0_1 = arith.constant 0 : index
    %c0_2 = arith.constant 0 : index
    %1 = vector.load %arg3[%c0_1, %c0_2] : memref<128x128xf32, #tpu.memory_space<vmem>>, vector<128x128xf32>
    %cst = arith.constant dense<0.000000e+00> : vector<128x128xf32>
    %2 = tpu.matmul %0, %1, %cst {dimension_numbers = #tpu.dot_dimension_numbers<[1], [0], [0], [1], [0, 0, 1, 1], [], []>} : vector<128x128xf32>, vector<128x128xf32>, vector<128x128xf32> -> vector<128x128xf32>
    %c0_3 = arith.constant 0 : index
    %c0_4 = arith.constant 0 : index
    %3 = vector.load %arg4[%c0_3, %c0_4] : memref<1x128xf32, #tpu.memory_space<vmem>>, vector<1x128xf32>
    %4 = vector.broadcast %3 : vector<1x128xf32> to vector<128x128xf32>
    %5 = arith.addf %2, %4 : vector<128x128xf32>
    %6 = math.tanh %5 : vector<128x128xf32>
    %7 = tpu.iota {dimensions = array<i32: 0>} : vector<8x128xi32>
    %8 = tpu.iota {dimensions = array<i32: 1>} : vector<8x128xi32>
    %c16_i32 = arith.constant 16 : i32
    %9 = vector.broadcast %c16_i32 : i32 to vector<8x128xi32>
    %10 = arith.muli %7, %9 : vector<8x128xi32>
    %11 = arith.cmpi sge, %8, %10 : vector<8x128xi32>
    %c1_i32 = arith.constant 1 : i32
    %12 = vector.broadcast %c1_i32 : i32 to vector<8x128xi32>
    %13 = arith.addi %7, %12 : vector<8x128xi32>
    %c16_i32_5 = arith.constant 16 : i32
    %14 = vector.broadcast %c16_i32_5 : i32 to vector<8x128xi32>
    %15 = arith.muli %13, %14 : vector<8x128xi32>
    %16 = arith.cmpi slt, %8, %15 : vector<8x128xi32>
    %17 = arith.andi %11, %16 : vector<8x128xi1>
    %cst_6 = arith.constant 6.250000e-02 : f32
    %cst_7 = arith.constant 0.000000e+00 : f32
    %18 = vector.broadcast %cst_6 : f32 to vector<8x128xf32>
    %19 = vector.broadcast %cst_7 : f32 to vector<8x128xf32>
    %20 = arith.select %17, %18, %19 : vector<8x128xi1>, vector<8x128xf32>
    %cst_8 = arith.constant dense<0.000000e+00> : vector<8x128xf32>
    %21 = tpu.matmul %20, %0, %cst_8 {dimension_numbers = #tpu.dot_dimension_numbers<[1], [0], [0], [1], [0, 0, 1, 1], [], []>} : vector<8x128xf32>, vector<128x128xf32>, vector<8x128xf32> -> vector<8x128xf32>
    %c0_9 = arith.constant 0 : index
    %c0_10 = arith.constant 0 : index
    %22 = vector.load %arg5[%c0_9, %c0_10] : memref<128x128xf32, #tpu.memory_space<vmem>>, vector<128x128xf32>
    %cst_11 = arith.constant dense<0.000000e+00> : vector<8x128xf32>
    %23 = tpu.matmul %21, %22, %cst_11 {dimension_numbers = #tpu.dot_dimension_numbers<[1], [0], [0], [1], [0, 0, 1, 1], [], []>} : vector<8x128xf32>, vector<128x128xf32>, vector<8x128xf32> -> vector<8x128xf32>
    %c0_12 = arith.constant 0 : index
    %c0_13 = arith.constant 0 : index
    %24 = vector.load %arg6[%c0_12, %c0_13] : memref<1x128xf32, #tpu.memory_space<vmem>>, vector<1x128xf32>
    %25 = vector.broadcast %24 : vector<1x128xf32> to vector<8x128xf32>
    %26 = arith.addf %23, %25 : vector<8x128xf32>
    %27 = math.tanh %26 : vector<8x128xf32>
    %c0_14 = arith.constant 0 : index
    %c0_15 = arith.constant 0 : index
    %28 = vector.load %arg2[%c0_14, %c0_15] : memref<8x128xf32, #tpu.memory_space<vmem>>, vector<8x128xf32>
    %c0_16 = arith.constant 0 : index
    %c0_17 = arith.constant 0 : index
    %29 = vector.load %arg7[%c0_16, %c0_17] : memref<128x128xf32, #tpu.memory_space<vmem>>, vector<128x128xf32>
    %cst_18 = arith.constant dense<0.000000e+00> : vector<8x128xf32>
    %30 = tpu.matmul %28, %29, %cst_18 {dimension_numbers = #tpu.dot_dimension_numbers<[1], [0], [0], [1], [0, 0, 1, 1], [], []>} : vector<8x128xf32>, vector<128x128xf32>, vector<8x128xf32> -> vector<8x128xf32>
    %c0_19 = arith.constant 0 : index
    %c0_20 = arith.constant 0 : index
    %31 = vector.load %arg8[%c0_19, %c0_20] : memref<1x128xf32, #tpu.memory_space<vmem>>, vector<1x128xf32>
    %32 = vector.broadcast %31 : vector<1x128xf32> to vector<8x128xf32>
    %33 = arith.addf %30, %32 : vector<8x128xf32>
    %34 = math.tanh %33 : vector<8x128xf32>
    %c0_21 = arith.constant 0 : index
    %35 = memref.load %arg0[%c0_21] : memref<2xf32, #tpu.memory_space<smem>>
    %cst_22 = arith.constant 1.000000e+00 : f32
    %36 = arith.divf %cst_22, %35 : f32
    %c0_23 = arith.constant 0 : index
    %c0_24 = arith.constant 0 : index
    %37 = vector.load %arg9[%c0_23, %c0_24] : memref<1x128xf32, #tpu.memory_space<vmem>>, vector<1x128xf32>
    %c0_25 = arith.constant 0 : index
    %c0_26 = arith.constant 0 : index
    %38 = vector.load %arg10[%c0_25, %c0_26] : memref<1x128xf32, #tpu.memory_space<vmem>>, vector<1x128xf32>
    %cst_27 = arith.constant dense<0.000000e+00> : vector<8xf32>
    %39 = vector.multi_reduction <add>, %27, %cst_27 [1] : vector<8x128xf32> to vector<8xf32>
    %40 = vector.shape_cast %39 : vector<8xf32> to vector<8x1xf32>
    %cst_28 = arith.constant 1.280000e+02 : f32
    %41 = vector.broadcast %cst_28 : f32 to vector<8x1xf32>
    %42 = arith.divf %40, %41 : vector<8x1xf32>
    %43 = vector.broadcast %42 : vector<8x1xf32> to vector<8x128xf32>
    %44 = arith.subf %27, %43 : vector<8x128xf32>
    %45 = arith.mulf %44, %44 : vector<8x128xf32>
    %cst_29 = arith.constant dense<0.000000e+00> : vector<8xf32>
    %46 = vector.multi_reduction <add>, %45, %cst_29 [1] : vector<8x128xf32> to vector<8xf32>
    %47 = vector.shape_cast %46 : vector<8xf32> to vector<8x1xf32>
    %cst_30 = arith.constant 1.280000e+02 : f32
    %48 = vector.broadcast %cst_30 : f32 to vector<8x1xf32>
    %49 = arith.divf %47, %48 : vector<8x1xf32>
    %cst_31 = arith.constant 9.99999974E-6 : f32
    %50 = vector.broadcast %cst_31 : f32 to vector<8x1xf32>
    %51 = arith.addf %49, %50 : vector<8x1xf32>
    %52 = math.rsqrt %51 : vector<8x1xf32>
    %53 = vector.broadcast %52 : vector<8x1xf32> to vector<8x128xf32>
    %54 = arith.mulf %44, %53 : vector<8x128xf32>
    %55 = vector.broadcast %37 : vector<1x128xf32> to vector<8x128xf32>
    %56 = arith.mulf %54, %55 : vector<8x128xf32>
    %57 = vector.broadcast %38 : vector<1x128xf32> to vector<8x128xf32>
    %58 = arith.addf %56, %57 : vector<8x128xf32>
    %c0_32 = arith.constant 0 : index
    %c0_33 = arith.constant 0 : index
    %59 = vector.load %arg11[%c0_32, %c0_33] : memref<128x128xf32, #tpu.memory_space<vmem>>, vector<128x128xf32>
    %cst_34 = arith.constant dense<0.000000e+00> : vector<8x128xf32>
    %60 = tpu.matmul %58, %59, %cst_34 {dimension_numbers = #tpu.dot_dimension_numbers<[1], [0], [0], [1], [0, 0, 1, 1], [], []>} : vector<8x128xf32>, vector<128x128xf32>, vector<8x128xf32> -> vector<8x128xf32>
    %61 = arith.mulf %60, %60 : vector<8x128xf32>
    %cst_35 = arith.constant dense<0.000000e+00> : vector<8xf32>
    %62 = vector.multi_reduction <add>, %61, %cst_35 [1] : vector<8x128xf32> to vector<8xf32>
    %63 = vector.shape_cast %62 : vector<8xf32> to vector<8x1xf32>
    %cst_36 = arith.constant 9.99999996E-13 : f32
    %64 = vector.broadcast %cst_36 : f32 to vector<8x1xf32>
    %65 = arith.addf %63, %64 : vector<8x1xf32>
    %66 = math.rsqrt %65 : vector<8x1xf32>
    %67 = vector.broadcast %66 : vector<8x1xf32> to vector<8x128xf32>
    %68 = arith.mulf %60, %67 : vector<8x128xf32>
    %c0_37 = arith.constant 0 : index
    %c0_38 = arith.constant 0 : index
    %69 = vector.load %arg12[%c0_37, %c0_38] : memref<128x128xf32, #tpu.memory_space<vmem>>, vector<128x128xf32>
    %cst_39 = arith.constant dense<0.000000e+00> : vector<8x128xf32>
    %70 = tpu.matmul %34, %69, %cst_39 {dimension_numbers = #tpu.dot_dimension_numbers<[1], [0], [0], [1], [0, 0, 1, 1], [], []>} : vector<8x128xf32>, vector<128x128xf32>, vector<8x128xf32> -> vector<8x128xf32>
    %71 = arith.mulf %70, %70 : vector<8x128xf32>
    %cst_40 = arith.constant dense<0.000000e+00> : vector<8xf32>
    %72 = vector.multi_reduction <add>, %71, %cst_40 [1] : vector<8x128xf32> to vector<8xf32>
    %73 = vector.shape_cast %72 : vector<8xf32> to vector<8x1xf32>
    %cst_41 = arith.constant 9.99999996E-13 : f32
    %74 = vector.broadcast %cst_41 : f32 to vector<8x1xf32>
    %75 = arith.addf %73, %74 : vector<8x1xf32>
    %76 = math.rsqrt %75 : vector<8x1xf32>
    %77 = vector.broadcast %76 : vector<8x1xf32> to vector<8x128xf32>
    %78 = arith.mulf %70, %77 : vector<8x128xf32>
    %cst_42 = arith.constant dense<0.000000e+00> : vector<8x8xf32>
    %79 = tpu.matmul %68, %78, %cst_42 {dimension_numbers = #tpu.dot_dimension_numbers<[1], [1], [0], [0], [0, 0, 1, 0], [], []>} : vector<8x128xf32>, vector<8x128xf32>, vector<8x8xf32> -> vector<8x8xf32>
    %80 = vector.broadcast %36 : f32 to vector<8x8xf32>
    %81 = arith.mulf %79, %80 : vector<8x8xf32>
    %82 = tpu.iota {dimensions = array<i32: 0>} : vector<8x8xi32>
    %83 = tpu.iota {dimensions = array<i32: 1>} : vector<8x8xi32>
    %84 = arith.cmpi eq, %82, %83 : vector<8x8xi32>
    %cst_43 = arith.constant 9.125000e-01 : f32
    %cst_44 = arith.constant 1.250000e-02 : f32
    %85 = vector.broadcast %cst_43 : f32 to vector<8x8xf32>
    %86 = vector.broadcast %cst_44 : f32 to vector<8x8xf32>
    %87 = arith.select %84, %85, %86 : vector<8x8xi1>, vector<8x8xf32>
    %cst_45 = arith.constant dense<0xFF800000> : vector<8xf32>
    %88 = vector.multi_reduction <maximumf>, %81, %cst_45 [1] : vector<8x8xf32> to vector<8xf32>
    %89 = vector.shape_cast %88 : vector<8xf32> to vector<8x1xf32>
    %90 = vector.broadcast %89 : vector<8x1xf32> to vector<8x8xf32>
    %91 = arith.subf %81, %90 : vector<8x8xf32>
    %92 = math.exp %91 : vector<8x8xf32>
    %cst_46 = arith.constant dense<0.000000e+00> : vector<8xf32>
    %93 = vector.multi_reduction <add>, %92, %cst_46 [1] : vector<8x8xf32> to vector<8xf32>
    %94 = vector.shape_cast %93 : vector<8xf32> to vector<8x1xf32>
    %95 = math.log %94 : vector<8x1xf32>
    %96 = arith.addf %89, %95 : vector<8x1xf32>
    %97 = vector.broadcast %96 : vector<8x1xf32> to vector<8x8xf32>
    %98 = arith.subf %81, %97 : vector<8x8xf32>
    %99 = arith.mulf %87, %98 : vector<8x8xf32>
    %cst_47 = arith.constant dense<0.000000e+00> : vector<8xf32>
    %100 = vector.multi_reduction <add>, %99, %cst_47 [1] : vector<8x8xf32> to vector<8xf32>
    %101 = vector.shape_cast %100 : vector<8xf32> to vector<8x1xf32>
    %cst_48 = arith.constant 0.000000e+00 : f32
    %102 = vector.broadcast %cst_48 : f32 to vector<8x1xf32>
    %103 = arith.subf %102, %101 : vector<8x1xf32>
    %104 = vector.shape_cast %103 : vector<8x1xf32> to vector<1x8x1xf32>
    %cst_49 = arith.constant dense<0.000000e+00> : vector<1xf32>
    %105 = vector.multi_reduction <add>, %104, %cst_49 [1, 2] : vector<1x8x1xf32> to vector<1xf32>
    %106 = vector.shape_cast %105 : vector<1xf32> to vector<1x1x1xf32>
    %107 = vector.extract %106[0, 0, 0] : f32 from vector<1x1x1xf32>
    %cst_50 = arith.constant 8.000000e+00 : f32
    %108 = arith.divf %107, %cst_50 : f32
    %cst_51 = arith.constant dense<0xFF800000> : vector<8xf32>
    %109 = vector.multi_reduction <maximumf>, %81, %cst_51 [0] : vector<8x8xf32> to vector<8xf32>
    %110 = vector.shape_cast %109 : vector<8xf32> to vector<1x8xf32>
    %111 = vector.broadcast %110 : vector<1x8xf32> to vector<8x8xf32>
    %112 = arith.subf %81, %111 : vector<8x8xf32>
    %113 = math.exp %112 : vector<8x8xf32>
    %cst_52 = arith.constant dense<0.000000e+00> : vector<8xf32>
    %114 = vector.multi_reduction <add>, %113, %cst_52 [0] : vector<8x8xf32> to vector<8xf32>
    %115 = vector.shape_cast %114 : vector<8xf32> to vector<1x8xf32>
    %116 = math.log %115 : vector<1x8xf32>
    %117 = arith.addf %110, %116 : vector<1x8xf32>
    %118 = vector.broadcast %117 : vector<1x8xf32> to vector<8x8xf32>
    %119 = arith.subf %81, %118 : vector<8x8xf32>
    %120 = arith.mulf %87, %119 : vector<8x8xf32>
    %cst_53 = arith.constant dense<0.000000e+00> : vector<8xf32>
    %121 = vector.multi_reduction <add>, %120, %cst_53 [0] : vector<8x8xf32> to vector<8xf32>
    %122 = vector.shape_cast %121 : vector<8xf32> to vector<1x8xf32>
    %cst_54 = arith.constant 0.000000e+00 : f32
    %123 = vector.broadcast %cst_54 : f32 to vector<1x8xf32>
    %124 = arith.subf %123, %122 : vector<1x8xf32>
    %125 = vector.shape_cast %124 : vector<1x8xf32> to vector<1x1x8xf32>
    %cst_55 = arith.constant dense<0.000000e+00> : vector<1xf32>
    %126 = vector.multi_reduction <add>, %125, %cst_55 [1, 2] : vector<1x1x8xf32> to vector<1xf32>
    %127 = vector.shape_cast %126 : vector<1xf32> to vector<1x1x1xf32>
    %128 = vector.extract %127[0, 0, 0] : f32 from vector<1x1x1xf32>
    %cst_56 = arith.constant 8.000000e+00 : f32
    %129 = arith.divf %128, %cst_56 : f32
    %130 = arith.addf %108, %129 : f32
    %cst_57 = arith.constant 5.000000e-01 : f32
    %131 = arith.mulf %cst_57, %130 : f32
    %132 = tpu.iota {dimensions = array<i32: 1>} : vector<8x8xi32>
    %cst_58 = arith.constant dense<0xFF800000> : vector<8xf32>
    %133 = vector.multi_reduction <maximumf>, %81, %cst_58 [1] : vector<8x8xf32> to vector<8xf32>
    %134 = vector.shape_cast %133 : vector<8xf32> to vector<8x1xf32>
    %135 = vector.broadcast %134 : vector<8x1xf32> to vector<8x8xf32>
    %136 = arith.cmpf oeq, %81, %135 : vector<8x8xf32>
    %c8_i32 = arith.constant 8 : i32
    %137 = vector.broadcast %c8_i32 : i32 to vector<8x8xi32>
    %138 = arith.select %136, %132, %137 : vector<8x8xi1>, vector<8x8xi32>
    %cst_59 = arith.constant dense<2147483647> : vector<8xi32>
    %139 = vector.multi_reduction <minsi>, %138, %cst_59 [1] : vector<8x8xi32> to vector<8xi32>
    %140 = vector.shape_cast %139 : vector<8xi32> to vector<8x1xi32>
    %141 = tpu.iota {dimensions = array<i32: 0>} : vector<8x1xi32>
    %142 = arith.cmpi eq, %140, %141 : vector<8x1xi32>
    %143 = arith.extui %142 : vector<8x1xi1> to vector<8x1xi32>
    %144 = arith.sitofp %143 : vector<8x1xi32> to vector<8x1xf32>
    %145 = vector.shape_cast %144 : vector<8x1xf32> to vector<1x8x1xf32>
    %cst_60 = arith.constant dense<0.000000e+00> : vector<1xf32>
    %146 = vector.multi_reduction <add>, %145, %cst_60 [1, 2] : vector<1x8x1xf32> to vector<1xf32>
    %147 = vector.shape_cast %146 : vector<1xf32> to vector<1x1x1xf32>
    %148 = vector.extract %147[0, 0, 0] : f32 from vector<1x1x1xf32>
    %cst_61 = arith.constant 8.000000e+00 : f32
    %149 = arith.divf %148, %cst_61 : f32
    %150 = tpu.iota {dimensions = array<i32: 0>} : vector<8x8xi32>
    %cst_62 = arith.constant dense<0xFF800000> : vector<8xf32>
    %151 = vector.multi_reduction <maximumf>, %81, %cst_62 [0] : vector<8x8xf32> to vector<8xf32>
    %152 = vector.shape_cast %151 : vector<8xf32> to vector<1x8xf32>
    %153 = vector.broadcast %152 : vector<1x8xf32> to vector<8x8xf32>
    %154 = arith.cmpf oeq, %81, %153 : vector<8x8xf32>
    %c8_i32_63 = arith.constant 8 : i32
    %155 = vector.broadcast %c8_i32_63 : i32 to vector<8x8xi32>
    %156 = arith.select %154, %150, %155 : vector<8x8xi1>, vector<8x8xi32>
    %cst_64 = arith.constant dense<2147483647> : vector<8xi32>
    %157 = vector.multi_reduction <minsi>, %156, %cst_64 [0] : vector<8x8xi32> to vector<8xi32>
    %158 = vector.shape_cast %157 : vector<8xi32> to vector<1x8xi32>
    %159 = tpu.iota {dimensions = array<i32: 1>} : vector<1x8xi32>
    %160 = arith.cmpi eq, %158, %159 : vector<1x8xi32>
    %161 = arith.extui %160 : vector<1x8xi1> to vector<1x8xi32>
    %162 = arith.sitofp %161 : vector<1x8xi32> to vector<1x8xf32>
    %163 = vector.shape_cast %162 : vector<1x8xf32> to vector<1x1x8xf32>
    %cst_65 = arith.constant dense<0.000000e+00> : vector<1xf32>
    %164 = vector.multi_reduction <add>, %163, %cst_65 [1, 2] : vector<1x1x8xf32> to vector<1xf32>
    %165 = vector.shape_cast %164 : vector<1xf32> to vector<1x1x1xf32>
    %166 = vector.extract %165[0, 0, 0] : f32 from vector<1x1x1xf32>
    %cst_66 = arith.constant 8.000000e+00 : f32
    %167 = arith.divf %166, %cst_66 : f32
    %c0_67 = arith.constant 0 : index
    %c0_68 = arith.constant 0 : index
    %168 = vector.load %arg13[%c0_67, %c0_68] : memref<128x128xf32, #tpu.memory_space<vmem>>, vector<128x128xf32>
    %cst_69 = arith.constant dense<0.000000e+00> : vector<128x128xf32>
    %169 = tpu.matmul %6, %168, %cst_69 {dimension_numbers = #tpu.dot_dimension_numbers<[1], [1], [0], [0], [0, 0, 1, 0], [], []>} : vector<128x128xf32>, vector<128x128xf32>, vector<128x128xf32> -> vector<128x128xf32>
    %cst_70 = arith.constant 1.000000e+00 : f32
    %170 = vector.broadcast %cst_70 : f32 to vector<1x128xf32>
    %171 = arith.mulf %168, %168 : vector<128x128xf32>
    %cst_71 = arith.constant dense<0.000000e+00> : vector<1x128xf32>
    %172 = tpu.matmul %170, %171, %cst_71 {dimension_numbers = #tpu.dot_dimension_numbers<[1], [1], [0], [0], [0, 0, 1, 0], [], []>} : vector<1x128xf32>, vector<128x128xf32>, vector<1x128xf32> -> vector<1x128xf32>
    %cst_72 = arith.constant 5.000000e-01 : f32
    %173 = vector.broadcast %cst_72 : f32 to vector<1x128xf32>
    %174 = arith.mulf %173, %172 : vector<1x128xf32>
    %175 = vector.broadcast %174 : vector<1x128xf32> to vector<128x128xf32>
    %176 = arith.subf %169, %175 : vector<128x128xf32>
    %177 = tpu.iota {dimensions = array<i32: 1>} : vector<128x128xi32>
    %cst_73 = arith.constant dense<0xFF800000> : vector<128xf32>
    %178 = vector.multi_reduction <maximumf>, %176, %cst_73 [1] : vector<128x128xf32> to vector<128xf32>
    %179 = vector.shape_cast %178 : vector<128xf32> to vector<128x1xf32>
    %180 = vector.broadcast %179 : vector<128x1xf32> to vector<128x128xf32>
    %181 = arith.cmpf oeq, %176, %180 : vector<128x128xf32>
    %c128_i32 = arith.constant 128 : i32
    %182 = vector.broadcast %c128_i32 : i32 to vector<128x128xi32>
    %183 = arith.select %181, %177, %182 : vector<128x128xi1>, vector<128x128xi32>
    %cst_74 = arith.constant dense<2147483647> : vector<128xi32>
    %184 = vector.multi_reduction <minsi>, %183, %cst_74 [1] : vector<128x128xi32> to vector<128xi32>
    %185 = vector.shape_cast %184 : vector<128xi32> to vector<128x1xi32>
    %186 = vector.broadcast %185 : vector<128x1xi32> to vector<128x128xi32>
    %187 = arith.cmpi eq, %186, %177 : vector<128x128xi32>
    %188 = arith.extui %187 : vector<128x128xi1> to vector<128x128xi32>
    %189 = arith.sitofp %188 : vector<128x128xi32> to vector<128x128xf32>
    %cst_75 = arith.constant dense<0.000000e+00> : vector<128x128xf32>
    %190 = tpu.matmul %189, %168, %cst_75 {dimension_numbers = #tpu.dot_dimension_numbers<[1], [0], [0], [1], [0, 0, 1, 1], [], []>} : vector<128x128xf32>, vector<128x128xf32>, vector<128x128xf32> -> vector<128x128xf32>
    %191 = arith.subf %190, %6 : vector<128x128xf32>
    %192 = arith.mulf %191, %191 : vector<128x128xf32>
    %193 = vector.shape_cast %192 : vector<128x128xf32> to vector<1x128x128xf32>
    %cst_76 = arith.constant dense<0.000000e+00> : vector<1xf32>
    %194 = vector.multi_reduction <add>, %193, %cst_76 [1, 2] : vector<1x128x128xf32> to vector<1xf32>
    %195 = vector.shape_cast %194 : vector<1xf32> to vector<1x1x1xf32>
    %196 = vector.extract %195[0, 0, 0] : f32 from vector<1x1x1xf32>
    %cst_77 = arith.constant 1.638400e+04 : f32
    %197 = arith.divf %196, %cst_77 : f32
    %c0_78 = arith.constant 0 : index
    %c0_79 = arith.constant 0 : index
    %198 = vector.load %arg14[%c0_78, %c0_79] : memref<128x128xf32, #tpu.memory_space<vmem>>, vector<128x128xf32>
    %cst_80 = arith.constant dense<0.000000e+00> : vector<128x128xf32>
    %199 = tpu.matmul %190, %198, %cst_80 {dimension_numbers = #tpu.dot_dimension_numbers<[1], [0], [0], [1], [0, 0, 1, 1], [], []>} : vector<128x128xf32>, vector<128x128xf32>, vector<128x128xf32> -> vector<128x128xf32>
    %c0_81 = arith.constant 0 : index
    %c0_82 = arith.constant 0 : index
    %200 = vector.load %arg15[%c0_81, %c0_82] : memref<1x128xf32, #tpu.memory_space<vmem>>, vector<1x128xf32>
    %201 = vector.broadcast %200 : vector<1x128xf32> to vector<128x128xf32>
    %202 = arith.addf %199, %201 : vector<128x128xf32>
    %203 = math.tanh %202 : vector<128x128xf32>
    %cst_83 = arith.constant dense<0.000000e+00> : vector<8x128xf32>
    %204 = tpu.matmul %20, %190, %cst_83 {dimension_numbers = #tpu.dot_dimension_numbers<[1], [0], [0], [1], [0, 0, 1, 1], [], []>} : vector<8x128xf32>, vector<128x128xf32>, vector<8x128xf32> -> vector<8x128xf32>
    %c0_84 = arith.constant 0 : index
    %c0_85 = arith.constant 0 : index
    %205 = vector.load %arg16[%c0_84, %c0_85] : memref<128x128xf32, #tpu.memory_space<vmem>>, vector<128x128xf32>
    %cst_86 = arith.constant dense<0.000000e+00> : vector<8x128xf32>
    %206 = tpu.matmul %204, %205, %cst_86 {dimension_numbers = #tpu.dot_dimension_numbers<[1], [0], [0], [1], [0, 0, 1, 1], [], []>} : vector<8x128xf32>, vector<128x128xf32>, vector<8x128xf32> -> vector<8x128xf32>
    %c0_87 = arith.constant 0 : index
    %c0_88 = arith.constant 0 : index
    %207 = vector.load %arg17[%c0_87, %c0_88] : memref<1x128xf32, #tpu.memory_space<vmem>>, vector<1x128xf32>
    %208 = vector.broadcast %207 : vector<1x128xf32> to vector<8x128xf32>
    %209 = arith.addf %206, %208 : vector<8x128xf32>
    %210 = math.tanh %209 : vector<8x128xf32>
    %c0_89 = arith.constant 0 : index
    %c0_90 = arith.constant 0 : index
    %211 = vector.load %arg18[%c0_89, %c0_90] : memref<1x128xf32, #tpu.memory_space<vmem>>, vector<1x128xf32>
    %c0_91 = arith.constant 0 : index
    %c0_92 = arith.constant 0 : index
    %212 = vector.load %arg19[%c0_91, %c0_92] : memref<1x128xf32, #tpu.memory_space<vmem>>, vector<1x128xf32>
    %cst_93 = arith.constant dense<0.000000e+00> : vector<8xf32>
    %213 = vector.multi_reduction <add>, %210, %cst_93 [1] : vector<8x128xf32> to vector<8xf32>
    %214 = vector.shape_cast %213 : vector<8xf32> to vector<8x1xf32>
    %cst_94 = arith.constant 1.280000e+02 : f32
    %215 = vector.broadcast %cst_94 : f32 to vector<8x1xf32>
    %216 = arith.divf %214, %215 : vector<8x1xf32>
    %217 = vector.broadcast %216 : vector<8x1xf32> to vector<8x128xf32>
    %218 = arith.subf %210, %217 : vector<8x128xf32>
    %219 = arith.mulf %218, %218 : vector<8x128xf32>
    %cst_95 = arith.constant dense<0.000000e+00> : vector<8xf32>
    %220 = vector.multi_reduction <add>, %219, %cst_95 [1] : vector<8x128xf32> to vector<8xf32>
    %221 = vector.shape_cast %220 : vector<8xf32> to vector<8x1xf32>
    %cst_96 = arith.constant 1.280000e+02 : f32
    %222 = vector.broadcast %cst_96 : f32 to vector<8x1xf32>
    %223 = arith.divf %221, %222 : vector<8x1xf32>
    %cst_97 = arith.constant 9.99999974E-6 : f32
    %224 = vector.broadcast %cst_97 : f32 to vector<8x1xf32>
    %225 = arith.addf %223, %224 : vector<8x1xf32>
    %226 = math.rsqrt %225 : vector<8x1xf32>
    %227 = vector.broadcast %226 : vector<8x1xf32> to vector<8x128xf32>
    %228 = arith.mulf %218, %227 : vector<8x128xf32>
    %229 = vector.broadcast %211 : vector<1x128xf32> to vector<8x128xf32>
    %230 = arith.mulf %228, %229 : vector<8x128xf32>
    %231 = vector.broadcast %212 : vector<1x128xf32> to vector<8x128xf32>
    %232 = arith.addf %230, %231 : vector<8x128xf32>
    %233 = arith.mulf %203, %203 : vector<128x128xf32>
    %cst_98 = arith.constant dense<0.000000e+00> : vector<128xf32>
    %234 = vector.multi_reduction <add>, %233, %cst_98 [1] : vector<128x128xf32> to vector<128xf32>
    %235 = vector.shape_cast %234 : vector<128xf32> to vector<128x1xf32>
    %cst_99 = arith.constant 9.99999996E-13 : f32
    %236 = vector.broadcast %cst_99 : f32 to vector<128x1xf32>
    %237 = arith.addf %235, %236 : vector<128x1xf32>
    %238 = math.rsqrt %237 : vector<128x1xf32>
    %239 = vector.broadcast %238 : vector<128x1xf32> to vector<128x128xf32>
    %240 = arith.mulf %203, %239 : vector<128x128xf32>
    %241 = arith.mulf %0, %0 : vector<128x128xf32>
    %cst_100 = arith.constant dense<0.000000e+00> : vector<128xf32>
    %242 = vector.multi_reduction <add>, %241, %cst_100 [1] : vector<128x128xf32> to vector<128xf32>
    %243 = vector.shape_cast %242 : vector<128xf32> to vector<128x1xf32>
    %cst_101 = arith.constant 9.99999996E-13 : f32
    %244 = vector.broadcast %cst_101 : f32 to vector<128x1xf32>
    %245 = arith.addf %243, %244 : vector<128x1xf32>
    %246 = math.rsqrt %245 : vector<128x1xf32>
    %247 = vector.broadcast %246 : vector<128x1xf32> to vector<128x128xf32>
    %248 = arith.mulf %0, %247 : vector<128x128xf32>
    %249 = arith.mulf %240, %248 : vector<128x128xf32>
    %cst_102 = arith.constant dense<0.000000e+00> : vector<128xf32>
    %250 = vector.multi_reduction <add>, %249, %cst_102 [1] : vector<128x128xf32> to vector<128xf32>
    %251 = vector.shape_cast %250 : vector<128xf32> to vector<128x1xf32>
    %cst_103 = arith.constant 1.000000e+00 : f32
    %252 = vector.broadcast %cst_103 : f32 to vector<128x1xf32>
    %253 = arith.subf %252, %251 : vector<128x1xf32>
    %254 = vector.shape_cast %253 : vector<128x1xf32> to vector<1x128x1xf32>
    %cst_104 = arith.constant dense<0.000000e+00> : vector<1xf32>
    %255 = vector.multi_reduction <add>, %254, %cst_104 [1, 2] : vector<1x128x1xf32> to vector<1xf32>
    %256 = vector.shape_cast %255 : vector<1xf32> to vector<1x1x1xf32>
    %257 = vector.extract %256[0, 0, 0] : f32 from vector<1x1x1xf32>
    %cst_105 = arith.constant 1.280000e+02 : f32
    %258 = arith.divf %257, %cst_105 : f32
    %c1 = arith.constant 1 : index
    %259 = memref.load %arg0[%c1] : memref<2xf32, #tpu.memory_space<smem>>
    %cst_106 = arith.constant 1.000000e+00 : f32
    %260 = arith.divf %cst_106, %259 : f32
    %c0_107 = arith.constant 0 : index
    %c0_108 = arith.constant 0 : index
    %261 = vector.load %arg20[%c0_107, %c0_108] : memref<128x128xf32, #tpu.memory_space<vmem>>, vector<128x128xf32>
    %cst_109 = arith.constant dense<0.000000e+00> : vector<8x128xf32>
    %262 = tpu.matmul %232, %261, %cst_109 {dimension_numbers = #tpu.dot_dimension_numbers<[1], [0], [0], [1], [0, 0, 1, 1], [], []>} : vector<8x128xf32>, vector<128x128xf32>, vector<8x128xf32> -> vector<8x128xf32>
    %263 = arith.mulf %262, %262 : vector<8x128xf32>
    %cst_110 = arith.constant dense<0.000000e+00> : vector<8xf32>
    %264 = vector.multi_reduction <add>, %263, %cst_110 [1] : vector<8x128xf32> to vector<8xf32>
    %265 = vector.shape_cast %264 : vector<8xf32> to vector<8x1xf32>
    %cst_111 = arith.constant 9.99999996E-13 : f32
    %266 = vector.broadcast %cst_111 : f32 to vector<8x1xf32>
    %267 = arith.addf %265, %266 : vector<8x1xf32>
    %268 = math.rsqrt %267 : vector<8x1xf32>
    %269 = vector.broadcast %268 : vector<8x1xf32> to vector<8x128xf32>
    %270 = arith.mulf %262, %269 : vector<8x128xf32>
    %c0_112 = arith.constant 0 : index
    %c0_113 = arith.constant 0 : index
    %271 = vector.load %arg21[%c0_112, %c0_113] : memref<128x128xf32, #tpu.memory_space<vmem>>, vector<128x128xf32>
    %cst_114 = arith.constant dense<0.000000e+00> : vector<8x128xf32>
    %272 = tpu.matmul %34, %271, %cst_114 {dimension_numbers = #tpu.dot_dimension_numbers<[1], [0], [0], [1], [0, 0, 1, 1], [], []>} : vector<8x128xf32>, vector<128x128xf32>, vector<8x128xf32> -> vector<8x128xf32>
    %273 = arith.mulf %272, %272 : vector<8x128xf32>
    %cst_115 = arith.constant dense<0.000000e+00> : vector<8xf32>
    %274 = vector.multi_reduction <add>, %273, %cst_115 [1] : vector<8x128xf32> to vector<8xf32>
    %275 = vector.shape_cast %274 : vector<8xf32> to vector<8x1xf32>
    %cst_116 = arith.constant 9.99999996E-13 : f32
    %276 = vector.broadcast %cst_116 : f32 to vector<8x1xf32>
    %277 = arith.addf %275, %276 : vector<8x1xf32>
    %278 = math.rsqrt %277 : vector<8x1xf32>
    %279 = vector.broadcast %278 : vector<8x1xf32> to vector<8x128xf32>
    %280 = arith.mulf %272, %279 : vector<8x128xf32>
    %cst_117 = arith.constant dense<0.000000e+00> : vector<8x8xf32>
    %281 = tpu.matmul %270, %280, %cst_117 {dimension_numbers = #tpu.dot_dimension_numbers<[1], [1], [0], [0], [0, 0, 1, 0], [], []>} : vector<8x128xf32>, vector<8x128xf32>, vector<8x8xf32> -> vector<8x8xf32>
    %282 = vector.broadcast %260 : f32 to vector<8x8xf32>
    %283 = arith.mulf %281, %282 : vector<8x8xf32>
    %284 = tpu.iota {dimensions = array<i32: 0>} : vector<8x8xi32>
    %285 = tpu.iota {dimensions = array<i32: 1>} : vector<8x8xi32>
    %286 = arith.cmpi eq, %284, %285 : vector<8x8xi32>
    %cst_118 = arith.constant 9.125000e-01 : f32
    %cst_119 = arith.constant 1.250000e-02 : f32
    %287 = vector.broadcast %cst_118 : f32 to vector<8x8xf32>
    %288 = vector.broadcast %cst_119 : f32 to vector<8x8xf32>
    %289 = arith.select %286, %287, %288 : vector<8x8xi1>, vector<8x8xf32>
    %cst_120 = arith.constant dense<0xFF800000> : vector<8xf32>
    %290 = vector.multi_reduction <maximumf>, %283, %cst_120 [1] : vector<8x8xf32> to vector<8xf32>
    %291 = vector.shape_cast %290 : vector<8xf32> to vector<8x1xf32>
    %292 = vector.broadcast %291 : vector<8x1xf32> to vector<8x8xf32>
    %293 = arith.subf %283, %292 : vector<8x8xf32>
    %294 = math.exp %293 : vector<8x8xf32>
    %cst_121 = arith.constant dense<0.000000e+00> : vector<8xf32>
    %295 = vector.multi_reduction <add>, %294, %cst_121 [1] : vector<8x8xf32> to vector<8xf32>
    %296 = vector.shape_cast %295 : vector<8xf32> to vector<8x1xf32>
    %297 = math.log %296 : vector<8x1xf32>
    %298 = arith.addf %291, %297 : vector<8x1xf32>
    %299 = vector.broadcast %298 : vector<8x1xf32> to vector<8x8xf32>
    %300 = arith.subf %283, %299 : vector<8x8xf32>
    %301 = arith.mulf %289, %300 : vector<8x8xf32>
    %cst_122 = arith.constant dense<0.000000e+00> : vector<8xf32>
    %302 = vector.multi_reduction <add>, %301, %cst_122 [1] : vector<8x8xf32> to vector<8xf32>
    %303 = vector.shape_cast %302 : vector<8xf32> to vector<8x1xf32>
    %cst_123 = arith.constant 0.000000e+00 : f32
    %304 = vector.broadcast %cst_123 : f32 to vector<8x1xf32>
    %305 = arith.subf %304, %303 : vector<8x1xf32>
    %306 = vector.shape_cast %305 : vector<8x1xf32> to vector<1x8x1xf32>
    %cst_124 = arith.constant dense<0.000000e+00> : vector<1xf32>
    %307 = vector.multi_reduction <add>, %306, %cst_124 [1, 2] : vector<1x8x1xf32> to vector<1xf32>
    %308 = vector.shape_cast %307 : vector<1xf32> to vector<1x1x1xf32>
    %309 = vector.extract %308[0, 0, 0] : f32 from vector<1x1x1xf32>
    %cst_125 = arith.constant 8.000000e+00 : f32
    %310 = arith.divf %309, %cst_125 : f32
    %cst_126 = arith.constant dense<0xFF800000> : vector<8xf32>
    %311 = vector.multi_reduction <maximumf>, %283, %cst_126 [0] : vector<8x8xf32> to vector<8xf32>
    %312 = vector.shape_cast %311 : vector<8xf32> to vector<1x8xf32>
    %313 = vector.broadcast %312 : vector<1x8xf32> to vector<8x8xf32>
    %314 = arith.subf %283, %313 : vector<8x8xf32>
    %315 = math.exp %314 : vector<8x8xf32>
    %cst_127 = arith.constant dense<0.000000e+00> : vector<8xf32>
    %316 = vector.multi_reduction <add>, %315, %cst_127 [0] : vector<8x8xf32> to vector<8xf32>
    %317 = vector.shape_cast %316 : vector<8xf32> to vector<1x8xf32>
    %318 = math.log %317 : vector<1x8xf32>
    %319 = arith.addf %312, %318 : vector<1x8xf32>
    %320 = vector.broadcast %319 : vector<1x8xf32> to vector<8x8xf32>
    %321 = arith.subf %283, %320 : vector<8x8xf32>
    %322 = arith.mulf %289, %321 : vector<8x8xf32>
    %cst_128 = arith.constant dense<0.000000e+00> : vector<8xf32>
    %323 = vector.multi_reduction <add>, %322, %cst_128 [0] : vector<8x8xf32> to vector<8xf32>
    %324 = vector.shape_cast %323 : vector<8xf32> to vector<1x8xf32>
    %cst_129 = arith.constant 0.000000e+00 : f32
    %325 = vector.broadcast %cst_129 : f32 to vector<1x8xf32>
    %326 = arith.subf %325, %324 : vector<1x8xf32>
    %327 = vector.shape_cast %326 : vector<1x8xf32> to vector<1x1x8xf32>
    %cst_130 = arith.constant dense<0.000000e+00> : vector<1xf32>
    %328 = vector.multi_reduction <add>, %327, %cst_130 [1, 2] : vector<1x1x8xf32> to vector<1xf32>
    %329 = vector.shape_cast %328 : vector<1xf32> to vector<1x1x1xf32>
    %330 = vector.extract %329[0, 0, 0] : f32 from vector<1x1x1xf32>
    %cst_131 = arith.constant 8.000000e+00 : f32
    %331 = arith.divf %330, %cst_131 : f32
    %332 = arith.addf %310, %331 : f32
    %cst_132 = arith.constant 5.000000e-01 : f32
    %333 = arith.mulf %cst_132, %332 : f32
    %334 = tpu.iota {dimensions = array<i32: 1>} : vector<8x8xi32>
    %cst_133 = arith.constant dense<0xFF800000> : vector<8xf32>
    %335 = vector.multi_reduction <maximumf>, %283, %cst_133 [1] : vector<8x8xf32> to vector<8xf32>
    %336 = vector.shape_cast %335 : vector<8xf32> to vector<8x1xf32>
    %337 = vector.broadcast %336 : vector<8x1xf32> to vector<8x8xf32>
    %338 = arith.cmpf oeq, %283, %337 : vector<8x8xf32>
    %c8_i32_134 = arith.constant 8 : i32
    %339 = vector.broadcast %c8_i32_134 : i32 to vector<8x8xi32>
    %340 = arith.select %338, %334, %339 : vector<8x8xi1>, vector<8x8xi32>
    %cst_135 = arith.constant dense<2147483647> : vector<8xi32>
    %341 = vector.multi_reduction <minsi>, %340, %cst_135 [1] : vector<8x8xi32> to vector<8xi32>
    %342 = vector.shape_cast %341 : vector<8xi32> to vector<8x1xi32>
    %343 = tpu.iota {dimensions = array<i32: 0>} : vector<8x1xi32>
    %344 = arith.cmpi eq, %342, %343 : vector<8x1xi32>
    %345 = arith.extui %344 : vector<8x1xi1> to vector<8x1xi32>
    %346 = arith.sitofp %345 : vector<8x1xi32> to vector<8x1xf32>
    %347 = vector.shape_cast %346 : vector<8x1xf32> to vector<1x8x1xf32>
    %cst_136 = arith.constant dense<0.000000e+00> : vector<1xf32>
    %348 = vector.multi_reduction <add>, %347, %cst_136 [1, 2] : vector<1x8x1xf32> to vector<1xf32>
    %349 = vector.shape_cast %348 : vector<1xf32> to vector<1x1x1xf32>
    %350 = vector.extract %349[0, 0, 0] : f32 from vector<1x1x1xf32>
    %cst_137 = arith.constant 8.000000e+00 : f32
    %351 = arith.divf %350, %cst_137 : f32
    %352 = tpu.iota {dimensions = array<i32: 0>} : vector<8x8xi32>
    %cst_138 = arith.constant dense<0xFF800000> : vector<8xf32>
    %353 = vector.multi_reduction <maximumf>, %283, %cst_138 [0] : vector<8x8xf32> to vector<8xf32>
    %354 = vector.shape_cast %353 : vector<8xf32> to vector<1x8xf32>
    %355 = vector.broadcast %354 : vector<1x8xf32> to vector<8x8xf32>
    %356 = arith.cmpf oeq, %283, %355 : vector<8x8xf32>
    %c8_i32_139 = arith.constant 8 : i32
    %357 = vector.broadcast %c8_i32_139 : i32 to vector<8x8xi32>
    %358 = arith.select %356, %352, %357 : vector<8x8xi1>, vector<8x8xi32>
    %cst_140 = arith.constant dense<2147483647> : vector<8xi32>
    %359 = vector.multi_reduction <minsi>, %358, %cst_140 [0] : vector<8x8xi32> to vector<8xi32>
    %360 = vector.shape_cast %359 : vector<8xi32> to vector<1x8xi32>
    %361 = tpu.iota {dimensions = array<i32: 1>} : vector<1x8xi32>
    %362 = arith.cmpi eq, %360, %361 : vector<1x8xi32>
    %363 = arith.extui %362 : vector<1x8xi1> to vector<1x8xi32>
    %364 = arith.sitofp %363 : vector<1x8xi32> to vector<1x8xf32>
    %365 = vector.shape_cast %364 : vector<1x8xf32> to vector<1x1x8xf32>
    %cst_141 = arith.constant dense<0.000000e+00> : vector<1xf32>
    %366 = vector.multi_reduction <add>, %365, %cst_141 [1, 2] : vector<1x1x8xf32> to vector<1xf32>
    %367 = vector.shape_cast %366 : vector<1xf32> to vector<1x1x1xf32>
    %368 = vector.extract %367[0, 0, 0] : f32 from vector<1x1x1xf32>
    %cst_142 = arith.constant 8.000000e+00 : f32
    %369 = arith.divf %368, %cst_142 : f32
    %c0_143 = arith.constant 0 : index
    %c0_144 = arith.constant 0 : index
    %370 = vector.load %arg22[%c0_143, %c0_144] : memref<128x1xi32, #tpu.memory_space<vmem>>, vector<128x1xi32>
    tpu.vector_store %arg22[%c0_143, %c0_144], %185 {strides = array<i32>} : memref<128x1xi32, #tpu.memory_space<vmem>>, vector<128x1xi32>,
    %cst_145 = arith.constant 1.000000e+00 : f32
    %371 = arith.mulf %cst_145, %131 : f32
    %cst_146 = arith.constant 1.000000e+00 : f32
    %372 = arith.mulf %cst_146, %197 : f32
    %373 = arith.addf %371, %372 : f32
    %cst_147 = arith.constant 1.000000e+00 : f32
    %374 = arith.mulf %cst_147, %258 : f32
    %375 = arith.addf %373, %374 : f32
    %cst_148 = arith.constant 1.000000e+00 : f32
    %376 = arith.mulf %cst_148, %333 : f32
    %377 = arith.addf %375, %376 : f32
    %c0_149 = arith.constant 0 : index
    %378 = memref.load %arg23[%c0_149] : memref<9xf32, #tpu.memory_space<smem>>
    memref.store %131, %arg23[%c0_149] : memref<9xf32, #tpu.memory_space<smem>>
    %c1_150 = arith.constant 1 : index
    %379 = memref.load %arg23[%c1_150] : memref<9xf32, #tpu.memory_space<smem>>
    memref.store %149, %arg23[%c1_150] : memref<9xf32, #tpu.memory_space<smem>>
    %c2 = arith.constant 2 : index
    %380 = memref.load %arg23[%c2] : memref<9xf32, #tpu.memory_space<smem>>
    memref.store %167, %arg23[%c2] : memref<9xf32, #tpu.memory_space<smem>>
    %c3 = arith.constant 3 : index
    %381 = memref.load %arg23[%c3] : memref<9xf32, #tpu.memory_space<smem>>
    memref.store %197, %arg23[%c3] : memref<9xf32, #tpu.memory_space<smem>>
    %c4 = arith.constant 4 : index
    %382 = memref.load %arg23[%c4] : memref<9xf32, #tpu.memory_space<smem>>
    memref.store %258, %arg23[%c4] : memref<9xf32, #tpu.memory_space<smem>>
    %c5 = arith.constant 5 : index
    %383 = memref.load %arg23[%c5] : memref<9xf32, #tpu.memory_space<smem>>
    memref.store %333, %arg23[%c5] : memref<9xf32, #tpu.memory_space<smem>>
    %c6 = arith.constant 6 : index
    %384 = memref.load %arg23[%c6] : memref<9xf32, #tpu.memory_space<smem>>
    memref.store %351, %arg23[%c6] : memref<9xf32, #tpu.memory_space<smem>>
    %c7 = arith.constant 7 : index
    %385 = memref.load %arg23[%c7] : memref<9xf32, #tpu.memory_space<smem>>
    memref.store %369, %arg23[%c7] : memref<9xf32, #tpu.memory_space<smem>>
    %c8 = arith.constant 8 : index
    %386 = memref.load %arg23[%c8] : memref<9xf32, #tpu.memory_space<smem>>
    memref.store %377, %arg23[%c8] : memref<9xf32, #tpu.memory_space<smem>>
    return
  }
}

</mosaic_0001>

<bundles_post_ra>
// kernel: forward.1
= control target key start
LH: loop header
LB: loop body
LE: loop exit
PB: predicated region body
PF: predicated region fallthrough
CT: control target
= control target key end

     0   :  { %s6546_s0 = inlined_call_operand.vmem [shape: f32[2], index: 0, kind: input, shape index: {}]   ;;  %s6547_s1 = inlined_call_operand.vmem [shape: f32[128,128], index: 1, kind: input, shape index: {}]   ;;  %s6548_s2 = inlined_call_operand.vmem [shape: f32[8,128], index: 2, kind: input, shape index: {}]   ;;  %s6549_s3 = inlined_call_operand.hbm [shape: f32[128,128], index: 3, kind: input, shape index: {}]   ;;  %s6550_s4 = inlined_call_operand.vmem [shape: f32[1,128], index: 4, kind: input, shape index: {}]   ;;  %s6551_s5 = inlined_call_operand.hbm [shape: f32[128,128], index: 5, kind: input, shape index: {}]   ;;  %s6552_s6 = inlined_call_operand.vmem [shape: f32[1,128], index: 6, kind: input, shape index: {}]   ;;  %s6553_s7 = inlined_call_operand.hbm [shape: f32[128,128], index: 7, kind: input, shape index: {}]   ;;  %s6554_s8 = inlined_call_operand.vmem [shape: f32[1,128], index: 8, kind: input, shape index: {}]   ;;  %s6555_s9 = inlined_call_operand.vmem [shape: f32[1,128], index: 9, kind: input, shape index: {}]   ;;  %s6556_s10 = inlined_call_operand.vmem [shape: f32[1,128], index: 10, kind: input, shape index: {}]   ;;  %s6557_s11 = inlined_call_operand.hbm [shape: f32[128,128], index: 11, kind: input, shape index: {}]   ;;  %s6558_s12 = inlined_call_operand.hbm [shape: f32[128,128], index: 12, kind: input, shape index: {}]   ;;  %s6559_s13 = inlined_call_operand.hbm [shape: f32[128,128], index: 13, kind: input, shape index: {}]   ;;  %s6560_s14 = inlined_call_operand.hbm [shape: f32[128,128], index: 14, kind: input, shape index: {}]   ;;  %s6561_s15 = inlined_call_operand.vmem [shape: f32[1,128], index: 15, kind: input, shape index: {}]   ;;  %s6562_s16 = inlined_call_operand.hbm [shape: f32[128,128], index: 16, kind: input, shape index: {}]   ;;  %s6563_s17 = inlined_call_operand.vmem [shape: f32[1,128], index: 17, kind: input, shape index: {}]   ;;  %s6564_s18 = inlined_call_operand.vmem [shape: f32[1,128], index: 18, kind: input, shape index: {}]   ;;  %s6565_s19 = inlined_call_operand.vmem [shape: f32[1,128], index: 19, kind: input, shape index: {}]   ;;  %s6566_s20 = inlined_call_operand.hbm [shape: f32[128,128], index: 20, kind: input, shape index: {}]   ;;  %s6567_s21 = inlined_call_operand.hbm [shape: f32[128,128], index: 21, kind: input, shape index: {}]   ;;  %s6568_s22 = inlined_call_operand.vmem [shape: s32[128,1], index: 22, kind: output, shape index: {0}]   ;;  %s6569_s23 = inlined_call_operand.vmem [shape: f32[9], index: 23, kind: output, shape index: {1}]  }
   0x1   :  { %6589 = sst [smem:[#allocation37_spill]] %s6546_s0 }
   0x2   :  { %6590 = sst [smem:[#allocation38_spill]] %s6547_s1 }
   0x3   :  { %6591 = sst [smem:[#allocation39_spill]] %s6548_s2 }
   0x4   :  { %6592 = sst [smem:[#allocation40_spill]] %s6549_s3 }
   0x5   :  { %6593 = sst [smem:[#allocation41_spill]] %s6550_s4 }
   0x6   :  { %6594 = sst [smem:[#allocation42_spill]] %s6551_s5 }
   0x7   :  { %6595 = sst [smem:[#allocation43_spill]] %s6552_s6 }
   0x8   :  { %6596 = sst [smem:[#allocation44_spill]] %s6553_s7 }
   0x9   :  { %6597 = sst [smem:[#allocation45_spill]] %s6569_s23 }
   0xa   :  { %29 = vsyncpa [#allocation4], 0 }
   0xb   :  { %30 = vsyncpa [#allocation3], 0 }
   0xc   :  { %31 = vsyncpa [#allocation8], 0 }
   0xd   :  { %32 = vsyncpa [#allocation11], 0 }
   0xe   :  { %33 = vsyncpa [#allocation14], 0 }
   0xf   :  { %34 = vsyncpa [#allocation17], 0 }
  0x10   :  { %35 = vsyncpa [#allocation20], 0 }
  0x11   :  { %36 = vsyncpa [#allocation5], 0  ;;  %s4851_s4 = smov [#allocation7]   ;;  %s4852_s24 = smov [#allocation10]  }
  0x12   :  { %s70_s30 = sshll.u32 %s4851_s4, 4  ;;  %s102_s25 = sshll.u32 %s4852_s24, 4  ;;  %s71_s30 = int_to_ptr.vmem [resolvable:$true] %s70_s30  ;;  %s4991_s25 = int_to_ptr.vmem [resolvable:$true] %s102_s25 }
  0x13   :  { %s6598_s26 = sld [smem:[#allocation42_spill]] }
  0x19   :  { %s4591_s2 = scalar_lea.hbm %s6598_s26, 2048 }
  0x1a   :  { %p4592_p0 = scmp.ne.s32.totalorder %s6598_s26, %s4591_s2  ;;  %p4595_p1 = scmp.lt.u32.totalorder %s4591_s2, %s6598_s26 }
  0x1c   :  { %p4597_p2 = pnand %p4595_p1, %p4592_p0 }
  0x1e   :  { %4600 = shalt.err (!%p4597_p2)
}
  0x1f   :  { %s4601_s29 = scalar_lea.vmem %s71_s30, 2048  ;;  %p4606_p4 = scmp.lt.s32.totalorder %s71_s30, %s71_s30 }
  0x20   :  { %p4602_p3 = scmp.ne.s32.totalorder %s71_s30, %s4601_s29  ;;  %p4607_p5 = scmp.lt.s32.totalorder %s4601_s29, %s4601_s29 }
  0x22   :  { %p4608_p6 = por %p4607_p5, %p4606_p4 }
  0x24   :  { %p4609_p7 = pnand %p4608_p6, %p4602_p3 }
  0x26   :  { %4612 = shalt.err (!%p4609_p7)
}
  0x27   :  { %s4853_s3 = smov 128   ;;  %s4854_s0 = smov 8  }
  0x28   :  { %76 = dma.hbm_to_vmem [thread:$0]  %s6598_s26, 2048, %s71_s30, [#allocation8], %s4853_s3, %s4853_s3, %s4854_s0  }
  0x29   :  { %s4613_s2 = scalar_lea.hbm %s6557_s11, 2048 }
  0x2a   :  { %p4614_p8 = scmp.ne.s32.totalorder %s6557_s11, %s4613_s2  ;;  %p4617_p9 = scmp.lt.u32.totalorder %s4613_s2, %s6557_s11 }
  0x2c   :  { %p4619_p10 = pnand %p4617_p9, %p4614_p8 }
  0x2e   :  { %4622 = shalt.err (!%p4619_p10)
}
  0x2f   :  { %s4623_s29 = scalar_lea.vmem %s4991_s25, 2048  ;;  %p4628_p12 = scmp.lt.s32.totalorder %s4991_s25, %s4991_s25 }
  0x30   :  { %p4624_p11 = scmp.ne.s32.totalorder %s4991_s25, %s4623_s29  ;;  %p4629_p13 = scmp.lt.s32.totalorder %s4623_s29, %s4623_s29 }
  0x32   :  { %p4630_p0 = por %p4629_p13, %p4628_p12 }
  0x34   :  { %p4631_p1 = pnand %p4630_p0, %p4624_p11 }
  0x36   :  { %4634 = shalt.err (!%p4631_p1)
}
  0x37   :  { %108 = dma.hbm_to_vmem [thread:$0]  %s6557_s11, 2048, %s4991_s25, [#allocation11], %s4853_s3, %s4853_s3, %s4854_s0  }
  0x38   :  { %s4855_s4 = smov [#allocation13]   ;;  %s4856_s5 = smov [#allocation16]  }
  0x39   :  { %s126_s24 = sshll.u32 %s4855_s4, 4  ;;  %s152_s1 = sshll.u32 %s4856_s5, 4  ;;  %s127_s24 = int_to_ptr.vmem [resolvable:$true] %s126_s24  ;;  %s5028_s1 = int_to_ptr.vmem [resolvable:$true] %s152_s1 }
  0x3a   :  { %s4635_s27 = scalar_lea.hbm %s6559_s13, 2048 }
  0x3b   :  { %p4636_p2 = scmp.ne.s32.totalorder %s6559_s13, %s4635_s27  ;;  %p4639_p3 = scmp.lt.u32.totalorder %s4635_s27, %s6559_s13 }
  0x3d   :  { %p4641_p4 = pnand %p4639_p3, %p4636_p2 }
  0x3f   :  { %4644 = shalt.err (!%p4641_p4)
}
  0x40   :  { %s4645_s11 = scalar_lea.vmem %s127_s24, 2048  ;;  %p4650_p6 = scmp.lt.s32.totalorder %s127_s24, %s127_s24 }
  0x41   :  { %p4646_p5 = scmp.ne.s32.totalorder %s127_s24, %s4645_s11  ;;  %p4651_p7 = scmp.lt.s32.totalorder %s4645_s11, %s4645_s11 }
  0x43   :  { %p4652_p8 = por %p4651_p7, %p4650_p6 }
  0x45   :  { %p4653_p9 = pnand %p4652_p8, %p4646_p5 }
  0x47   :  { %4656 = shalt.err (!%p4653_p9)
}
  0x48   :  { %132 = dma.hbm_to_vmem [thread:$0]  %s6559_s13, 2048, %s127_s24, [#allocation14], %s4853_s3, %s4853_s3, %s4854_s0  }
  0x49   :  { %s4657_s23 = scalar_lea.hbm %s6562_s16, 2048 }
  0x4a   :  { %p4658_p10 = scmp.ne.s32.totalorder %s6562_s16, %s4657_s23  ;;  %p4661_p11 = scmp.lt.u32.totalorder %s4657_s23, %s6562_s16 }
  0x4c   :  { %p4663_p12 = pnand %p4661_p11, %p4658_p10 }
  0x4e   :  { %4666 = shalt.err (!%p4663_p12)
}
  0x4f   :  { %s4667_s7 = scalar_lea.vmem %s5028_s1, 2048  ;;  %p4672_p0 = scmp.lt.s32.totalorder %s5028_s1, %s5028_s1 }
  0x50   :  { %p4668_p13 = scmp.ne.s32.totalorder %s5028_s1, %s4667_s7  ;;  %p4673_p1 = scmp.lt.s32.totalorder %s4667_s7, %s4667_s7 }
  0x52   :  { %p4674_p2 = por %p4673_p1, %p4672_p0 }
  0x54   :  { %p4675_p3 = pnand %p4674_p2, %p4668_p13 }
  0x56   :  { %4678 = shalt.err (!%p4675_p3)
}
  0x57   :  { %158 = dma.hbm_to_vmem [thread:$0]  %s6562_s16, 2048, %s5028_s1, [#allocation17], %s4853_s3, %s4853_s3, %s4854_s0  }
  0x58   :  { %s6599_s11 = sld [smem:[#allocation37_spill]] }
  0x5e   :  { %s43_s25 = sshll.u32 %s6599_s11, 4  ;;  %s44_s25 = int_to_ptr.vmem [resolvable:$true] %s43_s25 }
  0x5f   :  { %s4679_s30 = scalar_lea.vmem %s44_s25, 16  ;;  %p4684_p5 = scmp.lt.s32.totalorder %s44_s25, %s44_s25 }
  0x60   :  { %p4680_p4 = scmp.ne.s32.totalorder %s44_s25, %s4679_s30  ;;  %p4685_p6 = scmp.lt.s32.totalorder %s4679_s30, %s4679_s30 }
  0x62   :  { %p4686_p7 = por %p4685_p6, %p4684_p5 }
  0x64   :  { %p4687_p8 = pnand %p4686_p7, %p4680_p4 }
  0x66   :  { %4690 = shalt.err (!%p4687_p8)
}
  0x67   :  { %s4857_s26 = smov [#allocation2]   ;;  %s4858_s4 = smov [#allocation6]  }
  0x68   :  { %46 = dma.vmem_to_smem %s44_s25, 16, %s4857_s26, [#allocation4]  }
  0x69   :  { %s56_s23 = sshll.u32 %s4858_s4, 4  ;;  %s4859_s5 = smov [#allocation9]   ;;  %s57_s23 = int_to_ptr.vmem [resolvable:$true] %s56_s23 }
  0x6a   :  { %s84_s2 = sshll.u32 %s4859_s5, 4  ;;  %s6600_s6 = sld [smem:[#allocation40_spill]]  ;;  %s85_s2 = int_to_ptr.vmem [resolvable:$true] %s84_s2 }
  0x70   :  { %s4691_s27 = scalar_lea.hbm %s6600_s6, 2048 }
  0x71   :  { %p4692_p9 = scmp.ne.s32.totalorder %s6600_s6, %s4691_s27  ;;  %p4695_p10 = scmp.lt.u32.totalorder %s4691_s27, %s6600_s6 }
  0x73   :  { %p4697_p11 = pnand %p4695_p10, %p4692_p9 }
  0x75   :  { %4700 = shalt.err (!%p4697_p11)
}
  0x76   :  { %s4701_s29 = scalar_lea.vmem %s57_s23, 2048  ;;  %p4706_p13 = scmp.lt.s32.totalorder %s57_s23, %s57_s23 }
  0x77   :  { %p4702_p12 = scmp.ne.s32.totalorder %s57_s23, %s4701_s29  ;;  %p4707_p0 = scmp.lt.s32.totalorder %s4701_s29, %s4701_s29 }
  0x79   :  { %p4708_p1 = por %p4707_p0, %p4706_p13 }
  0x7b   :  { %p4709_p2 = pnand %p4708_p1, %p4702_p12 }
  0x7d   :  { %4712 = shalt.err (!%p4709_p2)
}
  0x7e   :  { %62 = dma.hbm_to_vmem [thread:$0]  %s6600_s6, 2048, %s57_s23, [#allocation3], %s4853_s3, %s4853_s3, %s4854_s0  }
  0x7f   :  { %s6601_s4 = sld [smem:[#allocation44_spill]] }
  0x85   :  { %s4713_s5 = scalar_lea.hbm %s6601_s4, 2048 }
  0x86   :  { %p4714_p3 = scmp.ne.s32.totalorder %s6601_s4, %s4713_s5  ;;  %p4717_p4 = scmp.lt.u32.totalorder %s4713_s5, %s6601_s4 }
  0x88   :  { %p4719_p5 = pnand %p4717_p4, %p4714_p3 }
  0x8a   :  { %4722 = shalt.err (!%p4719_p5)
}
  0x8b   :  { %s4723_s13 = scalar_lea.vmem %s85_s2, 2048  ;;  %p4728_p7 = scmp.lt.s32.totalorder %s85_s2, %s85_s2 }
  0x8c   :  { %p4724_p6 = scmp.ne.s32.totalorder %s85_s2, %s4723_s13  ;;  %p4729_p8 = scmp.lt.s32.totalorder %s4723_s13, %s4723_s13 }
  0x8e   :  { %p4730_p9 = por %p4729_p8, %p4728_p7 }
  0x90   :  { %p4731_p10 = pnand %p4730_p9, %p4724_p6 }
  0x92   :  { %4734 = shalt.err (!%p4731_p10)
}
  0x93   :  { %90 = dma.hbm_to_vmem [thread:$0]  %s6601_s4, 2048, %s85_s2, [#allocation8], %s4853_s3, %s4853_s3, %s4854_s0  }
  0x94   :  { %s4860_s24 = smov [#allocation12]   ;;  %s4861_s29 = smov [#allocation15]  }
  0x95   :  { %s114_s28 = sshll.u32 %s4860_s24, 4  ;;  %s138_s11 = sshll.u32 %s4861_s29, 4  ;;  %s115_s28 = int_to_ptr.vmem [resolvable:$true] %s114_s28  ;;  %s139_s11 = int_to_ptr.vmem [resolvable:$true] %s138_s11 }
  0x96   :  { %s4735_s26 = scalar_lea.hbm %s6558_s12, 2048 }
  0x97   :  { %p4736_p11 = scmp.ne.s32.totalorder %s6558_s12, %s4735_s26  ;;  %p4739_p12 = scmp.lt.u32.totalorder %s4735_s26, %s6558_s12 }
  0x99   :  { %p4741_p13 = pnand %p4739_p12, %p4736_p11 }
  0x9b   :  { %4744 = shalt.err (!%p4741_p13)
}
  0x9c   :  { %s4745_s2 = scalar_lea.vmem %s115_s28, 2048  ;;  %p4750_p1 = scmp.lt.s32.totalorder %s115_s28, %s115_s28 }
  0x9d   :  { %p4746_p0 = scmp.ne.s32.totalorder %s115_s28, %s4745_s2  ;;  %p4751_p2 = scmp.lt.s32.totalorder %s4745_s2, %s4745_s2 }
  0x9f   :  { %p4752_p3 = por %p4751_p2, %p4750_p1 }
  0xa1   :  { %p4753_p4 = pnand %p4752_p3, %p4746_p0 }
  0xa3   :  { %4756 = shalt.err (!%p4753_p4)
}
  0xa4   :  { %120 = dma.hbm_to_vmem [thread:$0]  %s6558_s12, 2048, %s115_s28, [#allocation11], %s4853_s3, %s4853_s3, %s4854_s0  }
  0xa5   :  { %s4757_s6 = scalar_lea.hbm %s6560_s14, 2048 }
  0xa6   :  { %p4758_p5 = scmp.ne.s32.totalorder %s6560_s14, %s4757_s6  ;;  %p4761_p6 = scmp.lt.u32.totalorder %s4757_s6, %s6560_s14 }
  0xa8   :  { %p4763_p7 = pnand %p4761_p6, %p4758_p5 }
  0xaa   :  { %4766 = shalt.err (!%p4763_p7)
}
  0xab   :  { %s4767_s26 = scalar_lea.vmem %s139_s11, 2048  ;;  %p4772_p9 = scmp.lt.s32.totalorder %s139_s11, %s139_s11 }
  0xac   :  { %p4768_p8 = scmp.ne.s32.totalorder %s139_s11, %s4767_s26  ;;  %p4773_p10 = scmp.lt.s32.totalorder %s4767_s26, %s4767_s26 }
  0xae   :  { %p4774_p11 = por %p4773_p10, %p4772_p9 }
  0xb0   :  { %p4775_p12 = pnand %p4774_p11, %p4768_p8 }
  0xb2   :  { %4778 = shalt.err (!%p4775_p12)
}
  0xb3   :  { %144 = dma.hbm_to_vmem [thread:$0]  %s6560_s14, 2048, %s139_s11, [#allocation14], %s4853_s3, %s4853_s3, %s4854_s0  }
  0xb4   :  { %s4862_s5 = smov [#allocation18]   ;;  %s4863_s1 = smov [#allocation19]  }
  0xb5   :  { %s170_s16 = sshll.u32 %s4862_s5, 4  ;;  %s182_s27 = sshll.u32 %s4863_s1, 4  ;;  %s171_s16 = int_to_ptr.vmem [resolvable:$true] %s170_s16  ;;  %s183_s27 = int_to_ptr.vmem [resolvable:$true] %s182_s27 }
  0xb6   :  { %s4779_s7 = scalar_lea.hbm %s6566_s20, 2048 }
  0xb7   :  { %p4780_p13 = scmp.ne.s32.totalorder %s6566_s20, %s4779_s7  ;;  %p4783_p0 = scmp.lt.u32.totalorder %s4779_s7, %s6566_s20 }
  0xb9   :  { %p4785_p1 = pnand %p4783_p0, %p4780_p13 }
  0xbb   :  { %4788 = shalt.err (!%p4785_p1)
}
  0xbc   :  { %s4789_s14 = scalar_lea.vmem %s171_s16, 2048  ;;  %p4794_p3 = scmp.lt.s32.totalorder %s171_s16, %s171_s16 }
  0xbd   :  { %p4790_p2 = scmp.ne.s32.totalorder %s171_s16, %s4789_s14  ;;  %p4795_p4 = scmp.lt.s32.totalorder %s4789_s14, %s4789_s14 }
  0xbf   :  { %p4796_p5 = por %p4795_p4, %p4794_p3 }
  0xc1   :  { %p4797_p6 = pnand %p4796_p5, %p4790_p2 }
  0xc3   :  { %4800 = shalt.err (!%p4797_p6)
}
  0xc4   :  { %176 = dma.hbm_to_vmem [thread:$0]  %s6566_s20, 2048, %s171_s16, [#allocation17], %s4853_s3, %s4853_s3, %s4854_s0  }
  0xc5   :  { %s4801_s26 = scalar_lea.hbm %s6567_s21, 2048 }
  0xc6   :  { %p4802_p7 = scmp.ne.s32.totalorder %s6567_s21, %s4801_s26  ;;  %p4805_p8 = scmp.lt.u32.totalorder %s4801_s26, %s6567_s21 }
  0xc8   :  { %p4807_p9 = pnand %p4805_p8, %p4802_p7 }
  0xca   :  { %4810 = shalt.err (!%p4807_p9)
}
  0xcb   :  { %s4811_s2 = scalar_lea.vmem %s183_s27, 2048  ;;  %p4816_p11 = scmp.lt.s32.totalorder %s183_s27, %s183_s27 }
  0xcc   :  { %p4812_p10 = scmp.ne.s32.totalorder %s183_s27, %s4811_s2  ;;  %p4817_p12 = scmp.lt.s32.totalorder %s4811_s2, %s4811_s2 }
  0xce   :  { %p4818_p13 = por %p4817_p12, %p4816_p11 }
  0xd0   :  { %p4819_p0 = pnand %p4818_p13, %p4812_p10 }
  0xd2   :  { %4822 = shalt.err (!%p4819_p0)
}
  0xd3   :  { %188 = dma.hbm_to_vmem [thread:$0]  %s6567_s21, 2048, %s183_s27, [#allocation20], %s4853_s3, %s4853_s3, %s4854_s0  }
  0xd4   :  { %4835 = dma.done.wait [#allocation4], 16  }
  0xd5   :  { %4836 = vsyncadd [#allocation4], 4294967280 }
  0xd6   :  { %4837 = dma.done.wait [#allocation3], 2048  }
  0xd7   :  { %4838 = vsyncadd [#allocation3], 4294965248 }
  0xd8   :  { %4839 = dma.done.wait [#allocation8], 4096  }
  0xd9   :  { %4840 = vsyncadd [#allocation8], 4294963200 }
  0xda   :  { %4841 = dma.done.wait [#allocation11], 4096  }
  0xdb   :  { %4842 = vsyncadd [#allocation11], 4294963200 }
  0xdc   :  { %4843 = dma.done.wait [#allocation14], 4096  }
  0xdd   :  { %4844 = vsyncadd [#allocation14], 4294963200 }
  0xde   :  { %4845 = dma.done.wait [#allocation17], 4096  }
  0xdf   :  { %4846 = vsyncadd [#allocation17], 4294963200 }
  0xe0   :  { %4847 = dma.done.wait [#allocation20], 2048  }
  0xe1   :  { %4848 = vsyncadd [#allocation20], 4294965248 }
  0xe2   :  { %222 = sfence }
  0xe3   :  { %s6602_s13 = sld [smem:[#allocation38_spill]]  ;;  %v4864_v3 = vmov 0.0|0.0   ;;  %vm4865_vm0 = vmmov 0   ;;  %v6575_v6 = vmov 0.0   ;;  %v239_v15 = vld [vmem:[#allocation6] sm:$0xff]  ;;  %v240_v16 = vld [vmem:[#allocation6 + $0x8] sm:$0xff]  ;;  %v423_v18 = vlaneseq }
  0xe4   :  { %4029 = vmatprep.subr.bf16.mxu1 %v4864_v3  ;;  %3501 = vmatprep.mubr.msk.f32.mxu1 %vm4865_vm0, %v6575_v6  ;;  %v3997_v19 = vpack.c.bf16 %v240_v16, %v239_v15  ;;  %v241_v20 = vld [vmem:[#allocation6 + $0x10] sm:$0xff]  ;;  %v242_v21 = vld [vmem:[#allocation6 + $0x18] sm:$0xff]  ;;  %v243_v23 = vld [vmem:[#allocation6 + $0x20] sm:$0xff]  ;;  %v6603_v49 = vmov 0  ;;  %v6606_v50 = vmov 0  ;;  %v6574_v60 = vmov 0.0625  }
  0xe5   :  { %v4001_v22 = vpack.c.bf16 %v242_v21, %v241_v20  ;;  %v244_v24 = vld [vmem:[#allocation6 + $0x28] sm:$0xff]  ;;  %v5232_v28 = vshrl.u32 %v423_v18, 7  ;;  %v245_v30 = vld [vmem:[#allocation6 + $0x30] sm:$0xff]  ;;  %v246_v31 = vld [vmem:[#allocation6 + $0x38] sm:$0xff]  ;;  %v5261_v42 = vand.u32 127, %v423_v18  ;;  %s6609_s25 = sld [smem:[#allocation39_spill]] }
  0xe6   :  { %3998 = vmatprep.subr.bf16.mxu0 %v3997_v19  ;;  %v4005_v29 = vpack.c.bf16 %v244_v24, %v243_v23  ;;  %v4009_v36 = vpack.c.bf16 %v246_v31, %v245_v30  ;;  %v247_v37 = vld [vmem:[#allocation6 + $0x40] sm:$0xff]  ;;  %v248_v38 = vld [vmem:[#allocation6 + $0x48] sm:$0xff]  ;;  %v249_v46 = vld [vmem:[#allocation6 + $0x50] sm:$0xff]  ;;  %s6610_s12 = sld [smem:[#allocation41_spill]]  ;;  %s6615_s2 = sld [smem:[#allocation43_spill]] }
  0xe7   :  { %4000 = vmatpush3.bf16.msra.mxu0 %v3997_v19  ;;  %v429_v35 = vadd.s32 1, %v5232_v28  ;;  %v427_v43 = vmul.u32 16, %v5232_v28  ;;  %v4013_v45 = vpack.c.bf16 %v248_v38, %v247_v37  ;;  %v250_v47 = vld [vmem:[#allocation6 + $0x58] sm:$0xff]  ;;  %v599_v51 = vld [vmem:[#allocation9] sm:$0xff]  ;;  %v600_v52 = vld [vmem:[#allocation9 + $0x8] sm:$0xff]  ;;  %s3108_s20 = sld [smem:[#allocation2 + $0x1]] }
  0xe8   :  { %4002 = vmatprep.subr.bf16.mxu0 %v4001_v22  ;;  %v4017_v53 = vpack.c.bf16 %v250_v47, %v249_v46  ;;  %v251_v54 = vld [vmem:[#allocation6 + $0x60] sm:$0xff]  ;;  %v252_v55 = vld [vmem:[#allocation6 + $0x68] sm:$0xff]  ;;  %v4078_v56 = vpack.c.bf16 %v600_v52, %v599_v51  ;;  %v601_v57 = vld [vmem:[#allocation9 + $0x10] sm:$0xff] }
  0xe9   :  { %v223_v0 = vld [vmem:[%s6602_s13] sm:$0xff]  ;;  %v5164_v1 = vld [vmem:[%s6602_s13 + $0x8] sm:$0xff]  ;;  %v5169_v2 = vld [vmem:[%s6602_s13 + $0x10] sm:$0xff]  ;;  %v430_v44 = vmul.u32 16, %v429_v35  ;;  %vm5268_vm1 = vcmp.ge.s32.totalorder %v5261_v42, %v427_v43  ;;  %v4021_v59 = vpack.c.bf16 %v252_v55, %v251_v54 }
  0xea   :  { %v4030_v4 = vpack.c.bf16 %v5164_v1, %v223_v0  ;;  %v5176_v5 = vld [vmem:[%s6602_s13 + $0x18] sm:$0xff]  ;;  %3445 = vmatprep.mubr.f32.mxu0 %v223_v0  ;;  %v5186_v8 = vld [vmem:[%s6602_s13 + $0x20] sm:$0xff]  ;;  %v5191_v9 = vld [vmem:[%s6602_s13 + $0x28] sm:$0xff]  ;;  %v6604_v49 = vsel %vm5268_vm1, 4294967295, %v6603_v49 }
  0xeb   :  { %v4033_v7 = vpack.c.bf16 %v5176_v5, %v5169_v2  ;;  %v4036_v10 = vpack.c.bf16 %v5191_v9, %v5186_v8  ;;  %v5199_v11 = vld [vmem:[%s6602_s13 + $0x30] sm:$0xff]  ;;  %v5204_v12 = vld [vmem:[%s6602_s13 + $0x38] sm:$0xff]  ;;  %v5211_v14 = vld [vmem:[%s6602_s13 + $0x40] sm:$0xff]  ;;  %4004 = vmatpush3.bf16.msra.mxu0 %v4001_v22  ;;  %6605 = vst [vmem:[#allocation30_spill] sm:$0xff] %v6604_v49  ;;  %vm5273_vm2 = vcmp.lt.s32.totalorder %v5261_v42, %v430_v44 }
  0xec   :  { %4031 = vmatpush3.bf16.msra.mxu1 %v4030_v4  ;;  %v4039_v13 = vpack.c.bf16 %v5204_v12, %v5199_v11  ;;  %v5217_v17 = vld [vmem:[%s6602_s13 + $0x48] sm:$0xff]  ;;  %v5225_v26 = vld [vmem:[%s6602_s13 + $0x50] sm:$0xff]  ;;  %v5230_v27 = vld [vmem:[%s6602_s13 + $0x58] sm:$0xff]  ;;  %4006 = vmatprep.subr.bf16.mxu0 %v4005_v29  ;;  %v6607_v50 = vsel %vm5273_vm2, 4294967295, %v6606_v50 }
  0xed   :  { %4032 = vmatprep.subr.bf16.mxu1 %v4864_v3  ;;  %v4042_v25 = vpack.c.bf16 %v5217_v17, %v5211_v14  ;;  %v4045_v32 = vpack.c.bf16 %v5230_v27, %v5225_v26  ;;  %v5240_v33 = vld [vmem:[%s6602_s13 + $0x60] sm:$0xff]  ;;  %v5245_v34 = vld [vmem:[%s6602_s13 + $0x68] sm:$0xff]  ;;  %v5254_v40 = vld [vmem:[%s6602_s13 + $0x70] sm:$0xff]  ;;  %6608 = vst [vmem:[#allocation31_spill] sm:$0xff] %v6607_v50 }
  0xee   :  { %v4048_v39 = vpack.c.bf16 %v5245_v34, %v5240_v33  ;;  %v5259_v41 = vld [vmem:[%s6602_s13 + $0x78] sm:$0xff]  ;;  %vm432_vm3 = vmand %vm5268_vm1, %vm5273_vm2  ;;  %v253_v61 = vld [vmem:[#allocation6 + $0x70] sm:$0xff]  ;;  %vm983_vm1 = vcmask 64512  }
  0xef   :  { %4008 = vmatpush3.bf16.msra.mxu0 %v4005_v29  ;;  %v4051_v48 = vpack.c.bf16 %v5259_v41, %v5254_v40  ;;  %v602_v58 = vld [vmem:[#allocation9 + $0x18] sm:$0xff]  ;;  %v603_v0 = vld [vmem:[#allocation9 + $0x20] sm:$0xff]  ;;  %v604_v4 = vld [vmem:[#allocation9 + $0x28] sm:$0xff] }
  0xf0   :  { %4034 = vmatpush3.bf16.msra.mxu1 %v4033_v7  ;;  %4010 = vmatprep.subr.bf16.mxu0 %v4009_v36  ;;  %v254_v62 = vld [vmem:[#allocation6 + $0x78] sm:$0xff]  ;;  %v4081_v63 = vpack.c.bf16 %v602_v58, %v601_v57  ;;  %v504_v16 = vld [vmem:[#allocation7] sm:$0xff]  ;;  %v505_v18 = vld [vmem:[#allocation7 + $0x8] sm:$0xff] }
  0xf1   :  { %4035 = vmatprep.subr.bf16.mxu1 %v4864_v3  ;;  %v4025_v7 = vpack.c.bf16 %v254_v62, %v253_v61  ;;  %v606_v15 = vld [vmem:[#allocation9 + $0x38] sm:$0xff]  ;;  %v607_v20 = vld [vmem:[#allocation9 + $0x40] sm:$0xff]  ;;  %v608_v21 = vld [vmem:[#allocation9 + $0x48] sm:$0xff]  ;;  %v4054_v22 = vpack.c.bf16 %v505_v18, %v504_v16 }
  0xf2   :  { %v506_v23 = vld [vmem:[#allocation7 + $0x10] sm:$0xff]  ;;  %v507_v24 = vld [vmem:[#allocation7 + $0x18] sm:$0xff]  ;;  %v509_v35 = vld [vmem:[#allocation7 + $0x28] sm:$0xff] }
  0xf3   :  { %4012 = vmatpush3.bf16.msra.mxu0 %v4009_v36  ;;  %v609_v29 = vld [vmem:[#allocation9 + $0x50] sm:$0xff]  ;;  %v610_v30 = vld [vmem:[#allocation9 + $0x58] sm:$0xff]  ;;  %v4057_v31 = vpack.c.bf16 %v507_v24, %v506_v23  ;;  %v611_v37 = vld [vmem:[#allocation9 + $0x60] sm:$0xff] }
  0xf4   :  { %4037 = vmatpush3.bf16.msra.mxu1 %v4036_v10  ;;  %4014 = vmatprep.subr.bf16.mxu0 %v4013_v45  ;;  %v4084_v10 = vpack.c.bf16 %v604_v4, %v603_v0  ;;  %v4093_v36 = vpack.c.bf16 %v610_v30, %v609_v29  ;;  %v613_v44 = vld [vmem:[#allocation9 + $0x70] sm:$0xff]  ;;  %v513_v46 = vld [vmem:[#allocation7 + $0x48] sm:$0xff]  ;;  %v598_v51 = vld [vmem:[%s6609_s25] sm:$0xff] }
  0xf5   :  { %4038 = vmatprep.subr.bf16.mxu1 %v4864_v3  ;;  %v517_v52 = vld [vmem:[#allocation7 + $0x68] sm:$0xff]  ;;  %v819_v55 = vld [vmem:[#allocation12 + $0x10] sm:$0xff]  ;;  %v820_v57 = vld [vmem:[#allocation12 + $0x18] sm:$0xff] }
  0xf6   :  { %v822_v58 = vld [vmem:[#allocation12 + $0x28] sm:$0xff]  ;;  %v824_v61 = vld [vmem:[#allocation12 + $0x38] sm:$0xff]  ;;  %v831_v18 = vld [vmem:[#allocation12 + $0x70] sm:$0xff] }
  0xf7   :  { %4016 = vmatpush3.bf16.msra.mxu0 %v4013_v45  ;;  %v826_v0 = vld [vmem:[#allocation12 + $0x48] sm:$0xff]  ;;  %v735_v49 = vld [vmem:[#allocation10 + $0x50] sm:$0xff] }
  0xf8   :  { %4040 = vmatpush3.bf16.msra.mxu1 %v4039_v13  ;;  %4018 = vmatprep.subr.bf16.mxu0 %v4017_v53  ;;  %v605_v13 = vld [vmem:[#allocation9 + $0x30] sm:$0xff]  ;;  %v830_v16 = vld [vmem:[#allocation12 + $0x68] sm:$0xff] }
  0xf9   :  { %4041 = vmatprep.subr.bf16.mxu1 %v4864_v3  ;;  %v4087_v19 = vpack.c.bf16 %v606_v15, %v605_v13  ;;  %v829_v15 = vld [vmem:[#allocation12 + $0x60] sm:$0xff] }
  0xfb   :  { %4020 = vmatpush3.bf16.msra.mxu0 %v4017_v53  ;;  %v519_v53 = vld [vmem:[#allocation7 + $0x78] sm:$0xff] }
  0xfc   :  { %4043 = vmatpush3.bf16.msra.mxu1 %v4042_v25  ;;  %4022 = vmatprep.subr.bf16.mxu0 %v4021_v59  ;;  %v4090_v25 = vpack.c.bf16 %v608_v21, %v607_v20  ;;  %v832_v20 = vld [vmem:[#allocation12 + $0x78] sm:$0xff]  ;;  %v5335_v21 = vld [vmem:[#allocation13] sm:$0xff] }
  0xfd   :  { %4044 = vmatprep.subr.bf16.mxu1 %v4864_v3  ;;  %v4147_v23 = vpack.c.bf16 %v832_v20, %v831_v18  ;;  %v5427_v18 = vld [vmem:[#allocation13 + $0x48] sm:$0xff]  ;;  %v5434_v20 = vld [vmem:[#allocation13 + $0x50] sm:$0xff] }
  0xff   :  { %4024 = vmatpush3.bf16.msra.mxu0 %v4021_v59 }
 0x100   :  { %4046 = vmatpush3.bf16.msra.mxu1 %v4045_v32  ;;  %4026 = vmatprep.subr.bf16.mxu0 %v4025_v7  ;;  %v508_v32 = vld [vmem:[#allocation7 + $0x20] sm:$0xff] }
 0x101   :  { %4047 = vmatprep.subr.bf16.mxu1 %v4864_v3  ;;  %v4060_v38 = vpack.c.bf16 %v509_v35, %v508_v32  ;;  %v5352_v32 = vld [vmem:[%s6610_s12] ss:$0 sm:$0xff]  ;;  %s6638_s12 = sld [smem:[#allocation45_spill]] }
 0x103   :  { %4028 = vmatpush3.bf16.msra.mxu0 %v4025_v7  ;;  %v827_v7 = vld [vmem:[#allocation12 + $0x50] sm:$0xff] }
 0x104   :  { %4049 = vmatpush3.bf16.msra.mxu1 %v4048_v39  ;;  %4053 = vmatprep.subr.bf16.mxu0 %v4864_v3  ;;  %v511_v39 = vld [vmem:[#allocation7 + $0x38] sm:$0xff] }
 0x105   :  { %4050 = vmatprep.subr.bf16.mxu1 %v4864_v3 }
 0x106   :  { %3446 = vmatmul.mubr.f32.vlgmr.msra.gmra.mrb[0].mxu0 %v5164_v1  ;;  %v612_v1 = vld [vmem:[#allocation9 + $0x68] sm:$0xff] }
 0x107   :  { %3448 = vmatprep.mubr.f32.mxu0 %v5169_v2  ;;  %4055 = vmatpush3.bf16.msra.mxu0 %v4054_v22  ;;  %v510_v2 = vld [vmem:[#allocation7 + $0x30] sm:$0xff]  ;;  %v4096_v43 = vpack.c.bf16 %v612_v1, %v611_v37  ;;  %v5337_v22 = vld [vmem:[#allocation13 + $0x8] sm:$0xff]  ;;  %s3045_s28 = sshll.u32 %s6638_s12, 4  ;;  %s3046_s28 = int_to_ptr.vmem [resolvable:$true] %s3045_s28 }
 0x108   :  { %4052 = vmatpush3.bf16.msra.mxu1 %v4051_v48  ;;  %4056 = vmatprep.subr.bf16.mxu0 %v4864_v3  ;;  %v4063_v45 = vpack.c.bf16 %v511_v39, %v510_v2  ;;  %v514_v48 = vld [vmem:[#allocation7 + $0x50] sm:$0xff]  ;;  %v5342_v24 = vpack.c.bf16 %v5337_v22, %v5335_v21  ;;  %p4828_p2 = scmp.lt.s32.totalorder %s3046_s28, %s3046_s28 }
 0x109   :  { %4077 = vmatprep.subr.bf16.mxu1 %v4864_v3 }
 0x10a   :  { %3449 = vmatmul.mubr.f32.gmra.mrb[2].mxu0 %v5176_v5  ;;  %v614_v5 = vld [vmem:[#allocation9 + $0x78] sm:$0xff] }
 0x10b   :  { %3502 = vmatmul.mubr.msk.f32.vlgmr.msra.gmra.mrb[0].mxu1 %vm432_vm3, %v6574_v60  ;;  %3451 = vmatprep.mubr.f32.mxu0 %v5186_v8  ;;  %v512_v8 = vld [vmem:[#allocation7 + $0x40] sm:$0xff]  ;;  %v4099_v47 = vpack.c.bf16 %v614_v5, %v613_v44 }
 0x10c   :  { %4079 = vmatpush3.bf16.msra.mxu1 %v4078_v56  ;;  %3571 = vmatprep.mubr.msk.f32.mxu1 %vm4865_vm0, %v6575_v6 }
 0x10d   :  { %4080 = vmatprep.subr.bf16.mxu1 %v4864_v3  ;;  %4058 = vmatpush3.bf16.msra.mxu0 %v4057_v31 }
 0x10e   :  { %4059 = vmatprep.subr.bf16.mxu0 %v4864_v3  ;;  %3452 = vmatmul.mubr.f32.gmra.mrb[4].mxu0 %v5191_v9  ;;  %v4066_v9 = vpack.c.bf16 %v513_v46, %v512_v8 }
 0x10f   :  { %3454 = vmatprep.mubr.f32.mxu0 %v5199_v11  ;;  %v515_v11 = vld [vmem:[#allocation7 + $0x58] sm:$0xff] }
 0x110   :  { %4082 = vmatpush3.bf16.msra.mxu1 %v4081_v63  ;;  %v825_v63 = vld [vmem:[#allocation12 + $0x40] sm:$0xff] }
 0x111   :  { %4083 = vmatprep.subr.bf16.mxu1 %v4864_v3  ;;  %4061 = vmatpush3.bf16.msra.mxu0 %v4060_v38  ;;  %v4138_v4 = vpack.c.bf16 %v826_v0, %v825_v63  ;;  %v5413_v0 = vld [vmem:[#allocation13 + $0x20] sm:$0xff] }
 0x112   :  { %4062 = vmatprep.subr.bf16.mxu0 %v4864_v3  ;;  %3455 = vmatmul.mubr.f32.gmra.mrb[6].mxu0 %v5204_v12  ;;  %v4069_v12 = vpack.c.bf16 %v515_v11, %v514_v48 }
 0x113   :  { %3457 = vmatprep.mubr.f32.mxu0 %v5211_v14  ;;  %v516_v14 = vld [vmem:[#allocation7 + $0x60] sm:$0xff] }
 0x114   :  { %4085 = vmatpush3.bf16.msra.mxu1 %v4084_v10  ;;  %v828_v10 = vld [vmem:[#allocation12 + $0x58] sm:$0xff] }
 0x115   :  { %4086 = vmatprep.subr.bf16.mxu1 %v4864_v3  ;;  %4064 = vmatpush3.bf16.msra.mxu0 %v4063_v45  ;;  %v4141_v13 = vpack.c.bf16 %v828_v10, %v827_v7  ;;  %v5419_v10 = vld [vmem:[#allocation13 + $0x30] sm:$0xff] }
 0x116   :  { %4065 = vmatprep.subr.bf16.mxu0 %v4864_v3  ;;  %3458 = vmatmul.mubr.f32.gmra.mrb[8].mxu0 %v5217_v17  ;;  %v4072_v17 = vpack.c.bf16 %v517_v52, %v516_v14 }
 0x117   :  { %3460 = vmatprep.mubr.f32.mxu0 %v5225_v26  ;;  %v518_v26 = vld [vmem:[#allocation7 + $0x70] sm:$0xff] }
 0x118   :  { %4088 = vmatpush3.bf16.msra.mxu1 %v4087_v19  ;;  %v4075_v54 = vpack.c.bf16 %v519_v53, %v518_v26  ;;  %v4144_v19 = vpack.c.bf16 %v830_v16, %v829_v15  ;;  %v5425_v16 = vld [vmem:[#allocation13 + $0x40] sm:$0xff] }
 0x119   :  { %4089 = vmatprep.subr.bf16.mxu1 %v4864_v3  ;;  %4067 = vmatpush3.bf16.msra.mxu0 %v4066_v9 }
 0x11a   :  { %4068 = vmatprep.subr.bf16.mxu0 %v4864_v3  ;;  %3461 = vmatmul.mubr.f32.gmra.mrb[10].mxu0 %v5230_v27  ;;  %v817_v27 = vld [vmem:[#allocation12] sm:$0xff] }
 0x11b   :  { %3463 = vmatprep.mubr.f32.mxu0 %v5240_v33  ;;  %v818_v33 = vld [vmem:[#allocation12 + $0x8] sm:$0xff] }
 0x11c   :  { %4091 = vmatpush3.bf16.msra.mxu1 %v4090_v25  ;;  %v4126_v56 = vpack.c.bf16 %v818_v33, %v817_v27 }
 0x11d   :  { %4092 = vmatprep.subr.bf16.mxu1 %v4864_v3  ;;  %4070 = vmatpush3.bf16.msra.mxu0 %v4069_v12 }
 0x11e   :  { %4071 = vmatprep.subr.bf16.mxu0 %v4864_v3  ;;  %3464 = vmatmul.mubr.f32.gmra.mrb[12].mxu0 %v5245_v34  ;;  %v4129_v34 = vpack.c.bf16 %v820_v57, %v819_v55  ;;  %v5394_v57 = vld [vmem:[#allocation13 + $0x10] sm:$0xff] }
 0x11f   :  { %3466 = vmatprep.mubr.f32.mxu0 %v5254_v40  ;;  %v821_v40 = vld [vmem:[#allocation12 + $0x20] sm:$0xff] }
 0x120   :  { %4094 = vmatpush3.bf16.msra.mxu1 %v4093_v36  ;;  %v4132_v59 = vpack.c.bf16 %v822_v58, %v821_v40 }
 0x121   :  { %4095 = vmatprep.subr.bf16.mxu1 %v4864_v3  ;;  %4073 = vmatpush3.bf16.msra.mxu0 %v4072_v17 }
 0x122   :  { %4074 = vmatprep.subr.bf16.mxu0 %v4864_v3  ;;  %3467 = vmatmul.mubr.f32.gmra.mrb[14].mxu0 %v5259_v41  ;;  %v823_v41 = vld [vmem:[#allocation12 + $0x30] sm:$0xff] }
 0x123   :  { %3536 = vmatprep.mubr.msk.f32.mxu0 %vm4865_vm0, %v6575_v6  ;;  %v4135_v62 = vpack.c.bf16 %v824_v61, %v823_v41 }
 0x124   :  { %4097 = vmatpush3.bf16.msra.mxu1 %v4096_v43 }
 0x125   :  { %4098 = vmatprep.subr.bf16.mxu1 %v4864_v3  ;;  %4076 = vmatpush3.bf16.msra.mxu0 %v4075_v54 }
 0x126   :  { %4101 = vmatprep.subr.bf16.mxu0 %v4864_v3 }
 0x128   :  { %4100 = vmatpush3.bf16.msra.mxu1 %v4099_v47  ;;  %v3066_v47 = vld [vmem:[%s6554_s8] ss:$0 sm:$0xff] }
 0x129   :  { %4125 = vmatprep.subr.bf16.mxu1 %v4864_v3 }
 0x12b   :  { %3572 = vmatmul.mubr.f32.vlgmr.msra.gmra.mrb[2].mxu1 %v598_v51 }
 0x12c   :  { %3641 = vmatprep.mubr.msk.f32.mxu1 %vm4865_vm0, %v6575_v6  ;;  %4127 = vmatpush3.bf16.msra.mxu1 %v4126_v56 }
 0x12d   :  { %4128 = vmatprep.subr.bf16.mxu1 %v4864_v3 }
 0x130   :  { %4130 = vmatpush3.bf16.msra.mxu1 %v4129_v34  ;;  %v5396_v34 = vld [vmem:[#allocation13 + $0x18] sm:$0xff] }
 0x131   :  { %4131 = vmatprep.subr.bf16.mxu1 %v4864_v3 }
 0x134   :  { %4133 = vmatpush3.bf16.msra.mxu1 %v4132_v59 }
 0x135   :  { %4134 = vmatprep.subr.bf16.mxu1 %v4864_v3 }
 0x138   :  { %4136 = vmatpush3.bf16.msra.mxu1 %v4135_v62  ;;  %v4153_v62 = vpack.c.bf16 %v5396_v34, %v5394_v57 }
 0x139   :  { %4137 = vmatprep.subr.bf16.mxu1 %v4864_v3 }
 0x13c   :  { %4139 = vmatpush3.bf16.msra.mxu1 %v4138_v4  ;;  %v5415_v4 = vld [vmem:[#allocation13 + $0x28] sm:$0xff] }
 0x13d   :  { %4140 = vmatprep.subr.bf16.mxu1 %v4864_v3  ;;  %v4157_v7 = vpack.c.bf16 %v5415_v4, %v5413_v0 }
 0x140   :  { %4142 = vmatpush3.bf16.msra.mxu1 %v4141_v13  ;;  %v5421_v13 = vld [vmem:[#allocation13 + $0x38] sm:$0xff] }
 0x141   :  { %4143 = vmatprep.subr.bf16.mxu1 %v4864_v3  ;;  %v4161_v15 = vpack.c.bf16 %v5421_v13, %v5419_v10 }
 0x144   :  { %4145 = vmatpush3.bf16.msra.mxu1 %v4144_v19  ;;  %v5431_v19 = vpack.c.bf16 %v5427_v18, %v5425_v16 }
 0x145   :  { %4146 = vmatprep.subr.bf16.mxu1 %v4864_v3 }
 0x148   :  { %4148 = vmatpush3.bf16.msra.mxu1 %v4147_v23  ;;  %v5436_v23 = vld [vmem:[#allocation13 + $0x58] sm:$0xff] }
 0x149   :  { %4150 = vmatprep.subr.bf16.mxu1 %v5342_v24 }
 0x1d9   :  { %v5347_v30 = vpop.f32.mrb[0].mxu0 }
 0x1da   :  { %v328_v31 = vpop.f32.mrb[1].mxu0 }
 0x1db   :  { %v329_v9 = vadd.f32 %v5352_v32, %v328_v31  ;;  %v5446_v31 = vld [vmem:[#allocation13 + $0x68] sm:$0xff] }
 0x1dd   :  { %v3450_v35 = vpop.f32.mrb[2].mxu0  ;;  %4409 = vtanh.f32 %v329_v9 }
 0x1de   :  { %v500_v25 = vpop.f32.mrb[0].mxu1  ;;  %v5355_v36 = vadd.f32 %v3450_v35, %v5352_v32  ;;  %v338_v37 = vpop.f32.mrb[3].mxu0 }
 0x1df   :  { %v3503_v29 = vpop.f32.mrb[1].mxu1  ;;  %3537 = vmatmul.mubr.f32.vlgmr.msra.gmra.mrb[16].mxu0 %v500_v25  ;;  %v5358_v1 = vadd.f32 %v5352_v32, %v338_v37  ;;  %v5440_v25 = vpack.c.bf16 %v5436_v23, %v5434_v20  ;;  %v5454_v37 = vld [vmem:[#allocation13 + $0x70] sm:$0xff] }
 0x1e0   :  { %3606 = vmatprep.mubr.msk.f32.mxu0 %vm4865_vm0, %v6575_v6  ;;  %v5444_v29 = vld [vmem:[#allocation13 + $0x60] sm:$0xff] }
 0x1e1   :  { %v3453_v38 = vpop.f32.mrb[4].mxu0  ;;  %v5450_v35 = vpack.c.bf16 %v5446_v31, %v5444_v29  ;;  %v733_v6 = vld [vmem:[#allocation10 + $0x40] sm:$0xff] }
 0x1e2   :  { %v5361_v2 = vadd.f32 %v3453_v38, %v5352_v32  ;;  %v348_v39 = vpop.f32.mrb[5].mxu0  ;;  %v5456_v38 = vld [vmem:[#allocation13 + $0x78] sm:$0xff] }
 0x1e3   :  { %v5364_v43 = vadd.f32 %v5352_v32, %v348_v39  ;;  %v5460_v39 = vpack.c.bf16 %v5456_v38, %v5454_v37 }
 0x1e5   :  { %v3456_v44 = vpop.f32.mrb[6].mxu0 }
 0x1e6   :  { %v5367_v5 = vadd.f32 %v3456_v44, %v5352_v32  ;;  %v358_v45 = vpop.f32.mrb[7].mxu0  ;;  %v334_v44 = vadd.f32 %v5347_v30, %v5352_v32 }
 0x1e7   :  { %v5370_v8 = vadd.f32 %v5352_v32, %v358_v45  ;;  %v5404_v61 = vpop.eup %4409 }
 0x1e9   :  { %v3459_v46 = vpop.f32.mrb[8].mxu0 }
 0x1ea   :  { %v5377_v48 = vadd.f32 %v3459_v46, %v5352_v32  ;;  %v368_v11 = vpop.f32.mrb[9].mxu0 }
 0x1eb   :  { %v5380_v51 = vadd.f32 %v5352_v32, %v368_v11 }
 0x1ed   :  { %v3462_v52 = vpop.f32.mrb[10].mxu0 }
 0x1ee   :  { %v5383_v26 = vadd.f32 %v3462_v52, %v5352_v32  ;;  %v378_v53 = vpop.f32.mrb[11].mxu0 }
 0x1ef   :  { %v5386_v54 = vadd.f32 %v5352_v32, %v378_v53  ;;  %v726_v53 = vld [vmem:[#allocation10 + $0x8] sm:$0xff] }
 0x1f1   :  { %v3465_v27 = vpop.f32.mrb[12].mxu0 }
 0x1f2   :  { %v5389_v33 = vadd.f32 %v3465_v27, %v5352_v32  ;;  %v388_v55 = vpop.f32.mrb[13].mxu0 }
 0x1f3   :  { %v5392_v56 = vadd.f32 %v5352_v32, %v388_v55 }
 0x1f5   :  { %v3468_v40 = vpop.f32.mrb[14].mxu0 }
 0x1f6   :  { %v5399_v58 = vadd.f32 %v3468_v40, %v5352_v32  ;;  %v398_v59 = vpop.f32.mrb[15].mxu0  ;;  %v730_v40 = vld [vmem:[#allocation10 + $0x28] sm:$0xff] }
 0x1f7   :  { %v5402_v41 = vadd.f32 %v5352_v32, %v398_v59 }
 0x1fe   :  { %v688_v12 = vpop.f32.mrb[2].mxu1 }
 0x1ff   :  { %v689_v14 = vadd.f32 %v3066_v47, %v688_v12  ;;  %v3573_v17 = vpop.f32.mrb[3].mxu1 }
 0x201   :  { %4411 = vtanh.f32 %v689_v14 }
 0x202   :  { %4413 = vtanh.f32 %v334_v44 }
 0x203   :  { %4415 = vtanh.f32 %v5358_v1 }
 0x204   :  { %4417 = vtanh.f32 %v5355_v36 }
 0x205   :  { %4419 = vtanh.f32 %v5364_v43 }
 0x206   :  { %4421 = vtanh.f32 %v5361_v2 }
 0x207   :  { %4423 = vtanh.f32 %v5370_v8 }
 0x208   :  { %4425 = vtanh.f32 %v5367_v5 }
 0x209   :  { %4427 = vtanh.f32 %v5380_v51  ;;  %v3065_v51 = vld [vmem:[%s6615_s2] ss:$0 sm:$0xff] }
 0x20a   :  { %4429 = vtanh.f32 %v5377_v48 }
 0x20b   :  { %v5408_v63 = vpop.eup %4411  ;;  %4431 = vtanh.f32 %v5386_v54  ;;  %v727_v54 = vld [vmem:[#allocation10 + $0x10] sm:$0xff] }
 0x20c   :  { %6611 = vst [vmem:[#allocation32_spill] sm:$0xff] %v5408_v63  ;;  %3642 = vmatmul.mubr.f32.vlgmr.msra.gmra.mrb[4].mxu1 %v5408_v63  ;;  %v5473_v30 = vpop.eup %4413  ;;  %4433 = vtanh.f32 %v5383_v26  ;;  %v725_v26 = vld [vmem:[#allocation10] sm:$0xff]  ;;  %v734_v63 = vld [vmem:[#allocation10 + $0x48] sm:$0xff] }
 0x20d   :  { %4152 = vmatpush3.bf16.xpose.msra.mxu1 %v5342_v24  ;;  %3681 = vmatprep.mubr.f32.mxu1 %v5404_v61  ;;  %v5475_v32 = vpop.eup %4415  ;;  %4435 = vtanh.f32 %v5392_v56  ;;  %v4102_v27 = vpack.c.bf16 %v726_v53, %v725_v26  ;;  %v729_v56 = vld [vmem:[#allocation10 + $0x20] sm:$0xff]  ;;  %v4114_v50 = vpack.c.bf16 %v734_v63, %v733_v6  ;;  %v6616_v6 = vmov 0.0  }
 0x20e   :  { %4154 = vmatprep.subr.bf16.mxu1 %v4153_v62  ;;  %v5480_v36 = vpop.eup %4417  ;;  %4437 = vtanh.f32 %v5389_v33  ;;  %v728_v33 = vld [vmem:[#allocation10 + $0x18] sm:$0xff] }
 0x20f   :  { %v5484_v1 = vpop.eup %4419  ;;  %4439 = vtanh.f32 %v5402_v41  ;;  %4103 = vmatpush3.bf16.msra.mxu0 %v4102_v27  ;;  %v4105_v55 = vpack.c.bf16 %v728_v33, %v727_v54 }
 0x210   :  { %v5489_v2 = vpop.eup %4421  ;;  %4441 = vtanh.f32 %v5399_v58  ;;  %4104 = vmatprep.subr.bf16.mxu0 %v4864_v3  ;;  %v4108_v58 = vpack.c.bf16 %v730_v40, %v729_v56 }
 0x211   :  { %v5492_v43 = vpop.eup %4423 }
 0x213   :  { %4106 = vmatpush3.bf16.msra.mxu0 %v4105_v55 }
 0x214   :  { %4107 = vmatprep.subr.bf16.mxu0 %v4864_v3 }
 0x215   :  { %4156 = vmatpush3.bf16.xpose.msra.mxu1 %v4153_v62 }
 0x216   :  { %4158 = vmatprep.subr.bf16.mxu1 %v4157_v7 }
 0x217   :  { %4109 = vmatpush3.bf16.msra.mxu0 %v4108_v58  ;;  %v731_v58 = vld [vmem:[#allocation10 + $0x30] sm:$0xff] }
 0x218   :  { %4110 = vmatprep.subr.bf16.mxu0 %v4864_v3 }
 0x21d   :  { %4160 = vmatpush3.bf16.xpose.msra.mxu1 %v4157_v7 }
 0x21e   :  { %4162 = vmatprep.subr.bf16.mxu1 %v4161_v15 }
 0x225   :  { %4164 = vmatpush3.bf16.xpose.msra.mxu1 %v4161_v15 }
 0x226   :  { %4166 = vmatprep.subr.bf16.mxu1 %v5431_v19 }
 0x22d   :  { %4168 = vmatpush3.bf16.xpose.msra.mxu1 %v5431_v19 }
 0x22e   :  { %4170 = vmatprep.subr.bf16.mxu1 %v5440_v25 }
 0x235   :  { %4172 = vmatpush3.bf16.xpose.msra.mxu1 %v5440_v25 }
 0x236   :  { %4174 = vmatprep.subr.bf16.mxu1 %v5450_v35 }
 0x23d   :  { %4176 = vmatpush3.bf16.xpose.msra.mxu1 %v5450_v35 }
 0x23e   :  { %4178 = vmatprep.subr.bf16.mxu1 %v5460_v39 }
 0x245   :  { %4180 = vmatpush3.bf16.xpose.msra.mxu1 %v5460_v39 }
 0x246   :  { %4206 = vmatprep.subr.bf16.mxu1 %v5342_v24 }
 0x24c   :  { %3682 = vmatmul.mubr.f32.vlgmr.msra.gmra.mrb[6].mxu1 %v5473_v30 }
 0x24d   :  { %3684 = vmatprep.mubr.f32.mxu1 %v5475_v32  ;;  %4208 = vmatpush3.bf16.msra.mxu1 %v5342_v24  ;;  %v5497_v24 = vpop.eup %4425 }
 0x24e   :  { %4210 = vmatprep.subr.bf16.mxu1 %v4153_v62  ;;  %v5500_v5 = vpop.eup %4427 }
 0x24f   :  { %v5505_v45 = vpop.eup %4429 }
 0x250   :  { %3685 = vmatmul.mubr.f32.gmra.mrb[8].mxu1 %v5480_v36  ;;  %v5508_v8 = vpop.eup %4431 }
 0x251   :  { %3687 = vmatprep.mubr.f32.mxu1 %v5484_v1  ;;  %4212 = vmatpush3.bf16.msra.mxu1 %v4153_v62  ;;  %v5513_v46 = vpop.eup %4433 }
 0x252   :  { %4214 = vmatprep.subr.bf16.mxu1 %v4157_v7  ;;  %v5517_v47 = vpop.eup %4435 }
 0x253   :  { %6612 = vst [vmem:[#allocation33_spill] sm:$0xff] %v5517_v47  ;;  %v5521_v9 = vpop.eup %4437 }
 0x254   :  { %3688 = vmatmul.mubr.f32.gmra.mrb[10].mxu1 %v5489_v2  ;;  %v5525_v48 = vpop.eup %4439 }
 0x255   :  { %3690 = vmatprep.mubr.f32.mxu1 %v5492_v43  ;;  %4216 = vmatpush3.bf16.msra.mxu1 %v4157_v7  ;;  %6613 = vst [vmem:[#allocation34_spill] sm:$0xff] %v5525_v48  ;;  %v5529_v11 = vpop.eup %4441 }
 0x256   :  { %4218 = vmatprep.subr.bf16.mxu1 %v4161_v15  ;;  %6614 = vst [vmem:[#allocation35_spill] sm:$0xff] %v5529_v11 }
 0x258   :  { %3691 = vmatmul.mubr.f32.gmra.mrb[12].mxu1 %v5497_v24 }
 0x259   :  { %3693 = vmatprep.mubr.f32.mxu1 %v5500_v5  ;;  %4220 = vmatpush3.bf16.msra.mxu1 %v4161_v15 }
 0x25a   :  { %4222 = vmatprep.subr.bf16.mxu1 %v5431_v19 }
 0x25c   :  { %3694 = vmatmul.mubr.f32.gmra.mrb[14].mxu1 %v5505_v45 }
 0x25d   :  { %3696 = vmatprep.mubr.f32.mxu1 %v5508_v8  ;;  %4224 = vmatpush3.bf16.msra.mxu1 %v5431_v19 }
 0x25e   :  { %4226 = vmatprep.subr.bf16.mxu1 %v5440_v25 }
 0x260   :  { %3697 = vmatmul.mubr.f32.gmra.mrb[16].mxu1 %v5513_v46 }
 0x261   :  { %3699 = vmatprep.mubr.f32.mxu1 %v5517_v47  ;;  %4228 = vmatpush3.bf16.msra.mxu1 %v5440_v25  ;;  %v737_v47 = vld [vmem:[#allocation10 + $0x60] sm:$0xff] }
 0x262   :  { %4230 = vmatprep.subr.bf16.mxu1 %v5450_v35 }
 0x264   :  { %3700 = vmatmul.mubr.f32.gmra.mrb[18].mxu1 %v5521_v9 }
 0x265   :  { %3702 = vmatprep.mubr.f32.mxu1 %v5525_v48  ;;  %4232 = vmatpush3.bf16.msra.mxu1 %v5450_v35  ;;  %v736_v48 = vld [vmem:[#allocation10 + $0x58] sm:$0xff] }
 0x266   :  { %4234 = vmatprep.subr.bf16.mxu1 %v5460_v39 }
 0x268   :  { %3703 = vmatmul.mubr.f32.gmra.mrb[20].mxu1 %v5529_v11  ;;  %v4117_v11 = vpack.c.bf16 %v736_v48, %v735_v49 }
 0x269   :  { %4236 = vmatpush3.bf16.msra.mxu1 %v5460_v39 }
 0x26a   :  { %4269 = vmatprep.subr.bf16.mxu1 %v4864_v3 }
 0x2b2   :  { %v593_v12 = vpop.f32.mrb[16].mxu0 }
 0x2b3   :  { %v594_v14 = vadd.f32 %v3065_v51, %v593_v12  ;;  %v3538_v52 = vpop.f32.mrb[17].mxu0 }
 0x2b5   :  { %4443 = vtanh.f32 %v594_v14 }
 0x2bf   :  { %v4444_v17 = vpop.eup %4443 }
 0x2c0   :  { %699 = vadd.xlane.f32.xlu0 %v4444_v17 }
 0x2df   :  { %v5542_v59 = vpop.f32.mrb[4].mxu1 }
 0x2e0   :  { %v3643_v41 = vpop.f32.mrb[5].mxu1  ;;  %v903_v49 = vmul.f32 %v5542_v59, %v5542_v59 }
 0x2e1   :  { %v732_v41 = vld [vmem:[#allocation10 + $0x38] sm:$0xff] }
 0x2e2   :  { %v4111_v60 = vpack.c.bf16 %v732_v41, %v731_v58  ;;  %904 = vadd.xlane.f32.xlu1 %v903_v49  ;;  %v3068_v41 = vld [vmem:[%s6556_s10] ss:$0 sm:$0xff] }
 0x2e4   :  { %4112 = vmatpush3.bf16.msra.mxu0 %v4111_v60 }
 0x2e5   :  { %4113 = vmatprep.subr.bf16.mxu0 %v4864_v3 }
 0x2e8   :  { %4115 = vmatpush3.bf16.msra.mxu0 %v4114_v50 }
 0x2e9   :  { %4116 = vmatprep.subr.bf16.mxu0 %v4864_v3 }
 0x2ec   :  { %4118 = vmatpush3.bf16.msra.mxu0 %v4117_v11  ;;  %v3067_v11 = vld [vmem:[%s6555_s9] ss:$0 sm:$0xff]  ;;  %s693_s9 = sld [smem:[#allocation2]] }
 0x2ed   :  { %4119 = vmatprep.subr.bf16.mxu0 %v4864_v3 }
 0x31f   :  { %v5545_v62 = vpop.f32.mrb[6].mxu1 }
 0x320   :  { %v5547_v7 = vpop.f32.mrb[7].mxu1 }
 0x323   :  { %v5549_v15 = vpop.f32.mrb[8].mxu1 }
 0x324   :  { %v5551_v19 = vpop.f32.mrb[9].mxu1 }
 0x327   :  { %v5553_v25 = vpop.f32.mrb[10].mxu1 }
 0x328   :  { %v5555_v35 = vpop.f32.mrb[11].mxu1 }
 0x32b   :  { %v5557_v39 = vpop.f32.mrb[12].mxu1 }
 0x32c   :  { %v5559_v44 = vpop.f32.mrb[13].mxu1 }
 0x32f   :  { %v5561_v51 = vpop.f32.mrb[14].mxu1 }
 0x330   :  { %v5563_v12 = vpop.f32.mrb[15].mxu1 }
 0x333   :  { %v5565_v14 = vpop.f32.mrb[16].mxu1 }
 0x334   :  { %v5567_v52 = vpop.f32.mrb[17].mxu1 }
 0x337   :  { %v5569_v26 = vpop.f32.mrb[18].mxu1 }
 0x338   :  { %v5571_v53 = vpop.f32.mrb[19].mxu1 }
 0x33b   :  { %v5573_v54 = vpop.f32.mrb[20].mxu1 }
 0x33c   :  { %v5575_v27 = vpop.f32.mrb[21].mxu1 }
 0x34d   :  { %v700_v33 = vpop.xlane.xlu0 %699 }
 0x34e   :  { %v702_v55 = vmul.f32 0.0078125, %v700_v33  ;;  %v738_v33 = vld [vmem:[#allocation10 + $0x68] sm:$0xff] }
 0x350   :  { %v703_v56 = vsub.f32 %v4444_v17, %v702_v55  ;;  %v4120_v17 = vpack.c.bf16 %v738_v33, %v737_v47  ;;  %v739_v55 = vld [vmem:[#allocation10 + $0x70] sm:$0xff] }
 0x352   :  { %v704_v40 = vmul.f32 %v703_v56, %v703_v56  ;;  %4121 = vmatpush3.bf16.msra.mxu0 %v4120_v17 }
 0x353   :  { %4122 = vmatprep.subr.bf16.mxu0 %v4864_v3 }
 0x354   :  { %705 = vadd.xlane.f32.xlu0 %v704_v40  ;;  %v740_v40 = vld [vmem:[#allocation10 + $0x78] sm:$0xff] }
 0x355   :  { %v4123_v60 = vpack.c.bf16 %v740_v40, %v739_v55 }
 0x357   :  { %4124 = vmatpush3.bf16.msra.mxu0 %v4123_v60 }
 0x358   :  { %3644 = vmatprep.subr.mxu0 %v6616_v6 }
 0x36f   :  { %v905_v55 = vpop.xlane.xlu1 %904 }
 0x370   :  { %v906_v40 = vadd.f32 1e-12, %v905_v55 }
 0x3e1   :  { %v706_v50 = vpop.xlane.xlu0 %705 }
 0x3e2   :  { %v707_v63 = vmul.f32 0.0078125, %v706_v50 }
 0x3e4   :  { %v708_v48 = vadd.f32 1e-05, %v707_v63 }
 0x3e6   :  { %4445 = vrsqrt.f32 %v708_v48  ;;  %v694_v48 = vstv %s693_s9 }
 0x3e7   :  { %4447 = vrsqrt.f32 %v906_v40  ;;  %v1285_v40 = vmul.f32 %v5394_v57, %v5394_v57  ;;  %v1289_v57 = vmul.f32 %v5419_v10, %v5419_v10  ;;  %v1293_v10 = vmul.f32 %v5434_v20, %v5434_v20 }
 0x3e8   :  { %4449 = vrcp.f32 %v694_v48  ;;  %v1297_v20 = vmul.f32 %v5454_v37, %v5454_v37 }
 0x3f0   :  { %v4446_v47 = vpop.eup %4445 }
 0x3f1   :  { %v710_v58 = vmul.f32 %v4446_v47, %v703_v56  ;;  %v4448_v60 = vpop.eup %4447 }
 0x3f2   :  { %v908_v49 = vmul.f32 %v4448_v60, %v5542_v59  ;;  %v4450_v47 = vpop.eup %4449  ;;  %v1284_v59 = vmul.f32 %v5337_v22, %v5337_v22  ;;  %v1286_v60 = vmul.f32 %v5396_v34, %v5396_v34  ;;  %v1287_v22 = vmul.f32 %v5413_v0, %v5413_v0 }
 0x3f3   :  { %v717_v33 = vmul.f32 %v3067_v11, %v710_v58  ;;  %4365 = vpush %v4450_v47  ;;  %v1290_v34 = vmul.f32 %v5421_v13, %v5421_v13  ;;  %v1291_v0 = vmul.f32 %v5425_v16, %v5425_v16  ;;  %v1294_v13 = vmul.f32 %v5436_v23, %v5436_v23 }
 0x3f4   :  { %v1295_v16 = vmul.f32 %v5444_v29, %v5444_v29  ;;  %v1298_v23 = vmul.f32 %v5456_v38, %v5456_v38 }
 0x3f5   :  { %v724_v17 = vadd.f32 %v3068_v41, %v717_v33  ;;  %v1283_v41 = vmul.f32 %v5335_v21, %v5335_v21  ;;  %v4185_v21 = vpack.c.bf16 %v1286_v60, %v1285_v40  ;;  %v4197_v48 = vpack.c.bf16 %v1294_v13, %v1293_v10 }
 0x3f7   :  { %3607 = vmatmul.mubr.f32.vlgmr.msra.gmra.mrb[18].mxu0 %v724_v17  ;;  %v4182_v17 = vpack.c.bf16 %v1284_v59, %v1283_v41  ;;  %v1372_v41 = vsub.s32 0, %v5232_v28 }
 0x3f8   :  { %3646 = vmatprep.mubr.msk.f32.mxu0 %vm4865_vm0, %v6616_v6  ;;  %3645 = vmatpush3.xpose.msra.mxu0 %v908_v49  ;;  %v1288_v49 = vmul.f32 %v5415_v4, %v5415_v4  ;;  %v1292_v4 = vmul.f32 %v5427_v18, %v5427_v18  ;;  %v1296_v18 = vmul.f32 %v5446_v31, %v5446_v31 }
 0x3f9   :  { %4181 = vmatprep.subr.bf16.mxu0 %v4864_v3 }
 0x3fa   :  { %v4200_v47 = vpack.c.bf16 %v1296_v18, %v1295_v16 }
 0x424   :  { %s4366_s11 = spop %4365 }
 0x4ca   :  { %v807_v56 = vpop.f32.mrb[18].mxu0 }
 0x4cb   :  { %v3608_v50 = vpop.f32.mrb[19].mxu0  ;;  %v811_v63 = vmul.f32 %v807_v56, %v807_v56 }
 0x4cc   :  { %v4191_v50 = vpack.c.bf16 %v1290_v34, %v1289_v57 }
 0x4cd   :  { %812 = vadd.xlane.f32.xlu1 %v811_v63  ;;  %v4194_v63 = vpack.c.bf16 %v1292_v4, %v1291_v0 }
 0x55a   :  { %v813_v11 = vpop.xlane.xlu1 %812 }
 0x55b   :  { %v814_v58 = vadd.f32 1e-12, %v813_v11  ;;  %v4203_v11 = vpack.c.bf16 %v1298_v23, %v1297_v20 }
 0x55d   :  { %4451 = vrsqrt.f32 %v814_v58  ;;  %v4868_v58 = vmov 1.0  }
 0x567   :  { %v4452_v33 = vpop.eup %4451 }
 0x568   :  { %v816_v55 = vmul.f32 %v4452_v33, %v807_v56  ;;  %v4188_v56 = vpack.c.bf16 %v1288_v49, %v1287_v22 }
 0x56a   :  { %3647 = vmatmul.mubr.f32.vlgmr.msra.gmra.mrb[20].mxu0 %v816_v55 }
 0x56b   :  { %4183 = vmatpush3.bf16.xpose.msra.mxu0 %v4182_v17  ;;  %3737 = vmatprep.mubr.msk.f32.mxu0 %vm4865_vm0, %v6616_v6 }
 0x56c   :  { %4184 = vmatprep.subr.bf16.mxu0 %v4864_v3 }
 0x573   :  { %4186 = vmatpush3.bf16.xpose.msra.mxu0 %v4185_v21 }
 0x574   :  { %4187 = vmatprep.subr.bf16.mxu0 %v4864_v3 }
 0x57b   :  { %4189 = vmatpush3.bf16.xpose.msra.mxu0 %v4188_v56 }
 0x57c   :  { %4190 = vmatprep.subr.bf16.mxu0 %v4864_v3 }
 0x583   :  { %4192 = vmatpush3.bf16.xpose.msra.mxu0 %v4191_v50 }
 0x584   :  { %4193 = vmatprep.subr.bf16.mxu0 %v4864_v3 }
 0x58b   :  { %4195 = vmatpush3.bf16.xpose.msra.mxu0 %v4194_v63 }
 0x58c   :  { %4196 = vmatprep.subr.bf16.mxu0 %v4864_v3 }
 0x593   :  { %4198 = vmatpush3.bf16.xpose.msra.mxu0 %v4197_v48 }
 0x594   :  { %4199 = vmatprep.subr.bf16.mxu0 %v4864_v3 }
 0x59b   :  { %4201 = vmatpush3.bf16.xpose.msra.mxu0 %v4200_v47 }
 0x59c   :  { %4202 = vmatprep.subr.bf16.mxu0 %v4864_v3 }
 0x5a3   :  { %4204 = vmatpush3.bf16.xpose.msra.mxu0 %v4203_v11 }
 0x5aa   :  { %3738 = vmatmul.mubr.f32.vlgmr.msra.gmra.mrb[22].mxu0 %v4868_v58 }
 0x63d   :  { %v5636_v29 = vpop.f32.mrb[20].mxu0 }
 0x63e   :  { %v3648_v31 = vpop.f32.mrb[21].mxu0 }
 0x67d   :  { %v1365_v59 = vpop.f32.mrb[22].mxu0 }
 0x67e   :  { %v1369_v33 = vmul.f32 0.5, %v1365_v59  ;;  %v3739_v17 = vpop.f32.mrb[23].mxu0 }
 0x680   :  { %v1373_v55 = vrot.slane %v1369_v33, %v1372_v41 }
 0x682   :  { %v1375_v37 = vsub.f32 %v5545_v62, %v1373_v55  ;;  %v1374_v38 = vsub.f32 %v5547_v7, %v1373_v55  ;;  %v1377_v40 = vsub.f32 %v5549_v15, %v1373_v55  ;;  %v1376_v60 = vsub.f32 %v5551_v19, %v1373_v55 }
 0x683   :  { %v1379_v21 = vsub.f32 %v5553_v25, %v1373_v55  ;;  %v1378_v22 = vsub.f32 %v5555_v35, %v1373_v55  ;;  %v5646_v49 = vsub.f32 %v5557_v39, %v1373_v55  ;;  %v5649_v56 = vsub.f32 %v5559_v44, %v1373_v55 }
 0x684   :  { %1392 = vmax.xlane.f32.xlu1 %v1375_v37  ;;  %1390 = vmax.xlane.f32.xlu0 %v1374_v38  ;;  %v5652_v62 = vsub.f32 %v5561_v51, %v1373_v55  ;;  %v5655_v7 = vsub.f32 %v5563_v12, %v1373_v55  ;;  %v5658_v15 = vsub.f32 %v5565_v14, %v1373_v55 }
 0x685   :  { %v5661_v19 = vsub.f32 %v5567_v52, %v1373_v55  ;;  %v5664_v25 = vsub.f32 %v5569_v26, %v1373_v55  ;;  %v5667_v35 = vsub.f32 %v5571_v53, %v1373_v55  ;;  %v5670_v39 = vsub.f32 %v5573_v54, %v1373_v55 }
 0x686   :  { %v5673_v44 = vsub.f32 %v5575_v27, %v1373_v55 }
 0x688   :  { %1396 = vmax.xlane.f32.xlu1 %v1377_v40  ;;  %1394 = vmax.xlane.f32.xlu0 %v1376_v60 }
 0x68c   :  { %1400 = vmax.xlane.f32.xlu1 %v1379_v21  ;;  %1398 = vmax.xlane.f32.xlu0 %v1378_v22 }
 0x690   :  { %1404 = vmax.xlane.f32.xlu1 %v5646_v49  ;;  %1402 = vmax.xlane.f32.xlu0 %v5649_v56 }
 0x694   :  { %1408 = vmax.xlane.f32.xlu1 %v5652_v62  ;;  %1406 = vmax.xlane.f32.xlu0 %v5655_v7 }
 0x698   :  { %1412 = vmax.xlane.f32.xlu1 %v5658_v15  ;;  %1410 = vmax.xlane.f32.xlu0 %v5661_v19 }
 0x69c   :  { %1416 = vmax.xlane.f32.xlu1 %v5664_v25  ;;  %1414 = vmax.xlane.f32.xlu0 %v5667_v35 }
 0x6a0   :  { %1420 = vmax.xlane.f32.xlu1 %v5670_v39  ;;  %1418 = vmax.xlane.f32.xlu0 %v5673_v44 }
 0x711   :  { %v1393_v51 = vpop.xlane.xlu1 %1392  ;;  %v1391_v12 = vpop.xlane.xlu0 %1390 }
 0x712   :  { %vm1423_vm4 = vcmp.eq.f32.partialorder %v1375_v37, %v1393_v51  ;;  %vm1422_vm5 = vcmp.eq.f32.partialorder %v1374_v38, %v1391_v12 }
 0x713   :  { %v5686_v14 = vsel %vm1423_vm4, %v5261_v42, 128  ;;  %v5689_v52 = vsel %vm1422_vm5, %v5261_v42, 128 }
 0x714   :  { %v1469_v26 = vshra.s32 %v5686_v14, 16  ;;  %v1455_v53 = vshra.s32 %v5689_v52, 16 }
 0x715   :  { %v1397_v54 = vpop.xlane.xlu1 %1396  ;;  %v1395_v27 = vpop.xlane.xlu0 %1394 }
 0x716   :  { %vm1425_vm6 = vcmp.eq.f32.partialorder %v1377_v40, %v1397_v54  ;;  %vm1424_vm7 = vcmp.eq.f32.partialorder %v1376_v60, %v1395_v27  ;;  %v5693_v57 = vcvt.s32.f32 %v1469_v26  ;;  %v5695_v34 = vcvt.s32.f32 %v1455_v53 }
 0x717   :  { %v5698_v50 = vsel %vm1425_vm6, %v5261_v42, 128  ;;  %v5701_v0 = vsel %vm1424_vm7, %v5261_v42, 128 }
 0x718   :  { %1472 = vmin.xlane.f32.xlu1 %v5693_v57  ;;  %1458 = vmin.xlane.f32.xlu0 %v5695_v34  ;;  %v1497_v4 = vshra.s32 %v5698_v50, 16  ;;  %v1483_v63 = vshra.s32 %v5701_v0, 16 }
 0x719   :  { %v1401_v10 = vpop.xlane.xlu1 %1400  ;;  %v1399_v13 = vpop.xlane.xlu0 %1398 }
 0x71a   :  { %vm1427_vm8 = vcmp.eq.f32.partialorder %v1379_v21, %v1401_v10  ;;  %vm1426_vm9 = vcmp.eq.f32.partialorder %v1378_v22, %v1399_v13  ;;  %v5707_v48 = vcvt.s32.f32 %v1497_v4  ;;  %v5709_v16 = vcvt.s32.f32 %v1483_v63 }
 0x71b   :  { %v5712_v18 = vsel %vm1427_vm8, %v5261_v42, 128  ;;  %v5715_v47 = vsel %vm1426_vm9, %v5261_v42, 128 }
 0x71c   :  { %1500 = vmin.xlane.f32.xlu1 %v5707_v48  ;;  %1486 = vmin.xlane.f32.xlu0 %v5709_v16  ;;  %v1525_v20 = vshra.s32 %v5712_v18, 16  ;;  %v1511_v23 = vshra.s32 %v5715_v47, 16 }
 0x71d   :  { %v1405_v11 = vpop.xlane.xlu1 %1404  ;;  %v1403_v31 = vpop.xlane.xlu0 %1402 }
 0x71e   :  { %vm1429_vm10 = vcmp.eq.f32.partialorder %v5646_v49, %v1405_v11  ;;  %vm1428_vm11 = vcmp.eq.f32.partialorder %v5649_v56, %v1403_v31  ;;  %v5723_v41 = vcvt.s32.f32 %v1525_v20  ;;  %v5725_v59 = vcvt.s32.f32 %v1511_v23 }
 0x71f   :  { %v5728_v33 = vsel %vm1429_vm10, %v5261_v42, 128  ;;  %v5731_v17 = vsel %vm1428_vm11, %v5261_v42, 128 }
 0x720   :  { %1528 = vmin.xlane.f32.xlu1 %v5723_v41  ;;  %1514 = vmin.xlane.f32.xlu0 %v5725_v59  ;;  %v1553_v55 = vshra.s32 %v5728_v33, 16  ;;  %v1539_v37 = vshra.s32 %v5731_v17, 16 }
 0x721   :  { %v1409_v38 = vpop.xlane.xlu1 %1408  ;;  %v1407_v40 = vpop.xlane.xlu0 %1406 }
 0x722   :  { %vm1431_vm12 = vcmp.eq.f32.partialorder %v5652_v62, %v1409_v38  ;;  %vm1430_vm13 = vcmp.eq.f32.partialorder %v5655_v7, %v1407_v40  ;;  %v5739_v60 = vcvt.s32.f32 %v1553_v55  ;;  %v5741_v21 = vcvt.s32.f32 %v1539_v37 }
 0x723   :  { %v5744_v22 = vsel %vm1431_vm12, %v5261_v42, 128  ;;  %v5747_v49 = vsel %vm1430_vm13, %v5261_v42, 128 }
 0x724   :  { %1556 = vmin.xlane.f32.xlu1 %v5739_v60  ;;  %1542 = vmin.xlane.f32.xlu0 %v5741_v21  ;;  %v1581_v56 = vshra.s32 %v5744_v22, 16  ;;  %v1567_v62 = vshra.s32 %v5747_v49, 16 }
 0x725   :  { %v1413_v51 = vpop.xlane.xlu1 %1412  ;;  %v1411_v7 = vpop.xlane.xlu0 %1410 }
 0x726   :  { %vm1433_vm14 = vcmp.eq.f32.partialorder %v5658_v15, %v1413_v51  ;;  %vm1432_vm15 = vcmp.eq.f32.partialorder %v5661_v19, %v1411_v7  ;;  %v5755_v12 = vcvt.s32.f32 %v1581_v56  ;;  %v5757_v26 = vcvt.s32.f32 %v1567_v62 }
 0x727   :  { %v5760_v53 = vsel %vm1433_vm14, %v5261_v42, 128  ;;  %v5763_v54 = vsel %vm1432_vm15, %v5261_v42, 128  ;;  %v1468_v62 = vand.u32 65535, %v5686_v14  ;;  %v1454_v51 = vand.u32 65535, %v5689_v52 }
 0x728   :  { %1584 = vmin.xlane.f32.xlu1 %v5755_v12  ;;  %1570 = vmin.xlane.f32.xlu0 %v5757_v26  ;;  %v1609_v27 = vshra.s32 %v5760_v53, 16  ;;  %v1595_v15 = vshra.s32 %v5763_v54, 16 }
 0x729   :  { %v1417_v4 = vpop.xlane.xlu1 %1416  ;;  %v1415_v19 = vpop.xlane.xlu0 %1414 }
 0x72a   :  { %vm1435_vm4 = vcmp.eq.f32.partialorder %v5664_v25, %v1417_v4  ;;  %vm1434_vm5 = vcmp.eq.f32.partialorder %v5667_v35, %v1415_v19  ;;  %v5771_v63 = vcvt.s32.f32 %v1609_v27  ;;  %v5773_v10 = vcvt.s32.f32 %v1595_v15 }
 0x72b   :  { %v5776_v13 = vsel %vm1435_vm4, %v5261_v42, 128  ;;  %v5779_v20 = vsel %vm1434_vm5, %v5261_v42, 128  ;;  %v1470_v15 = vcvt.s32.f32 %v1468_v62  ;;  %v1456_v4 = vcvt.s32.f32 %v1454_v51 }
 0x72c   :  { %1612 = vmin.xlane.f32.xlu1 %v5771_v63  ;;  %1598 = vmin.xlane.f32.xlu0 %v5773_v10  ;;  %v1637_v23 = vshra.s32 %v5776_v13, 16  ;;  %v1623_v25 = vshra.s32 %v5779_v20, 16  ;;  %v1496_v19 = vand.u32 65535, %v5698_v50  ;;  %v1524_v50 = vand.u32 65535, %v5712_v18 }
 0x72d   :  { %v1421_v11 = vpop.xlane.xlu1 %1420  ;;  %v1419_v35 = vpop.xlane.xlu0 %1418  ;;  %v1552_v18 = vand.u32 65535, %v5728_v33  ;;  %v1580_v33 = vand.u32 65535, %v5744_v22  ;;  %v1608_v22 = vand.u32 65535, %v5760_v53  ;;  %v1636_v53 = vand.u32 65535, %v5776_v13 }
 0x72e   :  { %vm1437_vm6 = vcmp.eq.f32.partialorder %v5670_v39, %v1421_v11  ;;  %vm1436_vm7 = vcmp.eq.f32.partialorder %v5673_v44, %v1419_v35  ;;  %v5787_v31 = vcvt.s32.f32 %v1637_v23  ;;  %v5789_v55 = vcvt.s32.f32 %v1623_v25 }
 0x72f   :  { %v5792_v37 = vsel %vm1437_vm6, %v5261_v42, 128  ;;  %v5795_v38 = vsel %vm1436_vm7, %v5261_v42, 128  ;;  %v1482_v23 = vand.u32 65535, %v5701_v0  ;;  %v1498_v35 = vcvt.s32.f32 %v1496_v19 }
 0x730   :  { %1640 = vmin.xlane.f32.xlu1 %v5787_v31  ;;  %1626 = vmin.xlane.f32.xlu0 %v5789_v55  ;;  %v1665_v40 = vshra.s32 %v5792_v37, 16  ;;  %v1651_v39 = vshra.s32 %v5795_v38, 16  ;;  %v1510_v0 = vand.u32 65535, %v5715_v47  ;;  %v1526_v51 = vcvt.s32.f32 %v1524_v50 }
 0x731   :  { %v1538_v47 = vand.u32 65535, %v5731_v17  ;;  %v1566_v17 = vand.u32 65535, %v5747_v49  ;;  %v1594_v49 = vand.u32 65535, %v5763_v54  ;;  %v1622_v54 = vand.u32 65535, %v5779_v20 }
 0x732   :  { %v5801_v56 = vcvt.s32.f32 %v1665_v40  ;;  %v5803_v44 = vcvt.s32.f32 %v1651_v39  ;;  %v1484_v40 = vcvt.s32.f32 %v1482_v23  ;;  %v1554_v23 = vcvt.s32.f32 %v1552_v18 }
 0x733   :  { %v1568_v50 = vcvt.s32.f32 %v1566_v17  ;;  %v1664_v13 = vand.u32 65535, %v5792_v37  ;;  %v1650_v20 = vand.u32 65535, %v5795_v38  ;;  %v1931_v38 = vld [vmem:[#allocation15 + $0x8] sm:$0xff]  ;;  %v1932_v17 = vld [vmem:[#allocation15 + $0x10] sm:$0xff] }
 0x734   :  { %1668 = vmin.xlane.f32.xlu1 %v5801_v56  ;;  %1654 = vmin.xlane.f32.xlu0 %v5803_v44 }
 0x7a5   :  { %v5809_v7 = vpop.xlane.xlu1 %1472  ;;  %v5811_v27 = vpop.xlane.xlu0 %1458 }
 0x7a6   :  { %vm1474_vm8 = vcmp.eq.f32.partialorder %v5693_v57, %v5809_v7  ;;  %vm1460_vm9 = vcmp.eq.f32.partialorder %v5695_v34, %v5811_v27 }
 0x7a7   :  { %v1475_v25 = vsel %vm1474_vm8, %v1470_v15, inf  ;;  %v1461_v14 = vsel %vm1460_vm9, %v1456_v4, inf  ;;  %v1512_v15 = vcvt.s32.f32 %v1510_v0 }
 0x7a8   :  { %1476 = vmin.xlane.f32.xlu1 %v1475_v25  ;;  %1462 = vmin.xlane.f32.xlu0 %v1461_v14  ;;  %v1540_v25 = vcvt.s32.f32 %v1538_v47  ;;  %v1638_v47 = vcvt.s32.f32 %v1636_v53  ;;  %v1940_v53 = vld [vmem:[#allocation15 + $0x50] sm:$0xff] }
 0x7a9   :  { %v5819_v52 = vpop.xlane.xlu1 %1500  ;;  %v5821_v11 = vpop.xlane.xlu0 %1486 }
 0x7aa   :  { %vm1502_vm10 = vcmp.eq.f32.partialorder %v5707_v48, %v5819_v52  ;;  %vm1488_vm11 = vcmp.eq.f32.partialorder %v5709_v16, %v5821_v11 }
 0x7ab   :  { %v1503_v57 = vsel %vm1502_vm10, %v1498_v35, inf  ;;  %v1489_v34 = vsel %vm1488_vm11, %v1484_v40, inf  ;;  %v1582_v40 = vcvt.s32.f32 %v1580_v33  ;;  %v1652_v33 = vcvt.s32.f32 %v1650_v20  ;;  %v1945_v20 = vld [vmem:[#allocation15 + $0x78] sm:$0xff] }
 0x7ac   :  { %1504 = vmin.xlane.f32.xlu1 %v1503_v57  ;;  %1490 = vmin.xlane.f32.xlu0 %v1489_v34  ;;  %v1610_v34 = vcvt.s32.f32 %v1608_v22  ;;  %v1935_v22 = vld [vmem:[#allocation15 + $0x28] sm:$0xff] }
 0x7ad   :  { %v5829_v39 = vpop.xlane.xlu1 %1528  ;;  %v5831_v62 = vpop.xlane.xlu0 %1514 }
 0x7ae   :  { %vm1530_vm12 = vcmp.eq.f32.partialorder %v5723_v41, %v5829_v39  ;;  %vm1516_vm13 = vcmp.eq.f32.partialorder %v5725_v59, %v5831_v62 }
 0x7af   :  { %v1531_v48 = vsel %vm1530_vm12, %v1526_v51, inf  ;;  %v1517_v16 = vsel %vm1516_vm13, %v1512_v15, inf  ;;  %v1596_v51 = vcvt.s32.f32 %v1594_v49  ;;  %vm1002_vm12 = vcmask 7168  }
 0x7b0   :  { %1532 = vmin.xlane.f32.xlu1 %v1531_v48  ;;  %1518 = vmin.xlane.f32.xlu0 %v1517_v16  ;;  %v1624_v48 = vcvt.s32.f32 %v1622_v54  ;;  %v1941_v54 = vld [vmem:[#allocation15 + $0x58] sm:$0xff] }
 0x7b1   :  { %v5839_v4 = vpop.xlane.xlu1 %1556  ;;  %v5841_v19 = vpop.xlane.xlu0 %1542 }
 0x7b2   :  { %vm1558_vm14 = vcmp.eq.f32.partialorder %v5739_v60, %v5839_v4  ;;  %vm1544_vm15 = vcmp.eq.f32.partialorder %v5741_v21, %v5841_v19 }
 0x7b3   :  { %v1559_v41 = vsel %vm1558_vm14, %v1554_v23, inf  ;;  %v1545_v59 = vsel %vm1544_vm15, %v1540_v25, inf  ;;  %v1666_v25 = vcvt.s32.f32 %v1664_v13  ;;  %v1944_v13 = vld [vmem:[#allocation15 + $0x70] sm:$0xff] }
 0x7b4   :  { %1560 = vmin.xlane.f32.xlu1 %v1559_v41  ;;  %1546 = vmin.xlane.f32.xlu0 %v1545_v59  ;;  %v1933_v59 = vld [vmem:[#allocation15 + $0x18] sm:$0xff] }
 0x7b5   :  { %v5849_v14 = vpop.xlane.xlu1 %1584  ;;  %v5851_v35 = vpop.xlane.xlu0 %1570 }
 0x7b6   :  { %vm1586_vm4 = vcmp.eq.f32.partialorder %v5755_v12, %v5849_v14  ;;  %vm1572_vm5 = vcmp.eq.f32.partialorder %v5757_v26, %v5851_v35 }
 0x7b7   :  { %v1587_v60 = vsel %vm1586_vm4, %v1582_v40, inf  ;;  %v1573_v21 = vsel %vm1572_vm5, %v1568_v50, inf  ;;  %v4241_v40 = vpack.c.bf16 %v1933_v59, %v1932_v17  ;;  %v1934_v50 = vld [vmem:[#allocation15 + $0x20] sm:$0xff] }
 0x7b8   :  { %1588 = vmin.xlane.f32.xlu1 %v1587_v60  ;;  %1574 = vmin.xlane.f32.xlu0 %v1573_v21  ;;  %v4245_v49 = vpack.c.bf16 %v1935_v22, %v1934_v50  ;;  %v1937_v60 = vld [vmem:[#allocation15 + $0x38] sm:$0xff]  ;;  %v1938_v21 = vld [vmem:[#allocation15 + $0x40] sm:$0xff] }
 0x7b9   :  { %v5859_v0 = vpop.xlane.xlu1 %1612  ;;  %v5861_v57 = vpop.xlane.xlu0 %1598 }
 0x7ba   :  { %vm1614_vm6 = vcmp.eq.f32.partialorder %v5771_v63, %v5859_v0  ;;  %vm1600_vm7 = vcmp.eq.f32.partialorder %v5773_v10, %v5861_v57 }
 0x7bb   :  { %v1615_v12 = vsel %vm1614_vm6, %v1610_v34, inf  ;;  %v1601_v26 = vsel %vm1600_vm7, %v1596_v51, inf  ;;  %v1939_v34 = vld [vmem:[#allocation15 + $0x48] sm:$0xff] }
 0x7bc   :  { %1616 = vmin.xlane.f32.xlu1 %v1615_v12  ;;  %1602 = vmin.xlane.f32.xlu0 %v1601_v26  ;;  %v4253_v51 = vpack.c.bf16 %v1939_v34, %v1938_v21  ;;  %v4257_v12 = vpack.c.bf16 %v1941_v54, %v1940_v53  ;;  %v1942_v26 = vld [vmem:[#allocation15 + $0x60] sm:$0xff]  ;;  %v1563_v34 = vcvt.f32.s32 %v5839_v4 }
 0x7bd   :  { %v5869_v15 = vpop.xlane.xlu1 %1640  ;;  %v5871_v18 = vpop.xlane.xlu0 %1626 }
 0x7be   :  { %vm1642_vm8 = vcmp.eq.f32.partialorder %v5787_v31, %v5869_v15  ;;  %vm1628_vm9 = vcmp.eq.f32.partialorder %v5789_v55, %v5871_v18  ;;  %v1930_v55 = vld [vmem:[#allocation15] sm:$0xff] }
 0x7bf   :  { %v1643_v63 = vsel %vm1642_vm8, %v1638_v47, inf  ;;  %v1629_v10 = vsel %vm1628_vm9, %v1624_v48, inf  ;;  %v4237_v41 = vpack.c.bf16 %v1931_v38, %v1930_v55  ;;  %v1943_v47 = vld [vmem:[#allocation15 + $0x68] sm:$0xff] }
 0x7c0   :  { %1644 = vmin.xlane.f32.xlu1 %v1643_v63  ;;  %1630 = vmin.xlane.f32.xlu0 %v1629_v10  ;;  %v4261_v48 = vpack.c.bf16 %v1943_v47, %v1942_v26  ;;  %v4265_v63 = vpack.c.bf16 %v1945_v20, %v1944_v13  ;;  %v1479_v10 = vcvt.f32.s32 %v5809_v7  ;;  %v1521_v7 = vcvt.f32.s32 %v5831_v62 }
 0x7c1   :  { %v5879_v16 = vpop.xlane.xlu1 %1668  ;;  %v5881_v23 = vpop.xlane.xlu0 %1654  ;;  %4238 = vmatprep.subr.bf16.mxu0 %v4237_v41  ;;  %v1564_v47 = vshll.u32 %v1563_v34, 16  ;;  %v1591_v13 = vcvt.f32.s32 %v5849_v14  ;;  %v1577_v20 = vcvt.f32.s32 %v5851_v35 }
 0x7c2   :  { %vm1670_vm10 = vcmp.eq.f32.partialorder %v5801_v56, %v5879_v16  ;;  %vm1656_vm11 = vcmp.eq.f32.partialorder %v5803_v44, %v5881_v23  ;;  %4240 = vmatpush3.bf16.msra.mxu0 %v4237_v41  ;;  %v1936_v56 = vld [vmem:[#allocation15 + $0x30] sm:$0xff]  ;;  %v1480_v38 = vshll.u32 %v1479_v10, 16  ;;  %v1522_v21 = vshll.u32 %v1521_v7, 16 }
 0x7c3   :  { %v1671_v31 = vsel %vm1670_vm10, %v1666_v25, inf  ;;  %v1657_v37 = vsel %vm1656_vm11, %v1652_v33, inf  ;;  %4242 = vmatprep.subr.bf16.mxu0 %v4241_v40  ;;  %v4249_v44 = vpack.c.bf16 %v1937_v60, %v1936_v56  ;;  %v1465_v25 = vcvt.f32.s32 %v5811_v27 }
 0x7c4   :  { %1672 = vmin.xlane.f32.xlu1 %v1671_v31  ;;  %1658 = vmin.xlane.f32.xlu0 %v1657_v37  ;;  %v1507_v33 = vcvt.f32.s32 %v5819_v52  ;;  %v1493_v31 = vcvt.f32.s32 %v5821_v11  ;;  %v1535_v56 = vcvt.f32.s32 %v5829_v39 }
 0x7c5   :  { %v1466_v17 = vshll.u32 %v1465_v25, 16 }
 0x7c6   :  { %4244 = vmatpush3.bf16.msra.mxu0 %v4241_v40  ;;  %v1508_v22 = vshll.u32 %v1507_v33, 16 }
 0x7c7   :  { %4246 = vmatprep.subr.bf16.mxu0 %v4245_v49 }
 0x7ca   :  { %4248 = vmatpush3.bf16.msra.mxu0 %v4245_v49  ;;  %v1494_v49 = vshll.u32 %v1493_v31, 16  ;;  %v1592_v31 = vshll.u32 %v1591_v13, 16 }
 0x7cb   :  { %4250 = vmatprep.subr.bf16.mxu0 %v4249_v44 }
 0x7ce   :  { %4252 = vmatpush3.bf16.msra.mxu0 %v4249_v44  ;;  %v1536_v44 = vshll.u32 %v1535_v56, 16  ;;  %v1633_v56 = vcvt.f32.s32 %v5871_v18 }
 0x7cf   :  { %4254 = vmatprep.subr.bf16.mxu0 %v4253_v51 }
 0x7d2   :  { %4256 = vmatpush3.bf16.msra.mxu0 %v4253_v51  ;;  %v1549_v51 = vcvt.f32.s32 %v5841_v19 }
 0x7d3   :  { %4258 = vmatprep.subr.bf16.mxu0 %v4257_v12 }
 0x7d6   :  { %4260 = vmatpush3.bf16.msra.mxu0 %v4257_v12 }
 0x7d7   :  { %4262 = vmatprep.subr.bf16.mxu0 %v4261_v48 }
 0x7da   :  { %4264 = vmatpush3.bf16.msra.mxu0 %v4261_v48  ;;  %v1550_v48 = vshll.u32 %v1549_v51, 16 }
 0x7db   :  { %4266 = vmatprep.subr.bf16.mxu0 %v4265_v63 }
 0x7de   :  { %4268 = vmatpush3.bf16.msra.mxu0 %v4265_v63 }
 0x7df   :  { %4293 = vmatprep.subr.bf16.mxu0 %v4864_v3 }
 0x835   :  { %v1477_v37 = vpop.xlane.xlu1 %1476  ;;  %v1463_v55 = vpop.xlane.xlu0 %1462 }
 0x836   :  { %v1478_v41 = vcvt.f32.s32 %v1477_v37  ;;  %v1464_v59 = vcvt.f32.s32 %v1463_v55  ;;  %v1578_v37 = vshll.u32 %v1577_v20, 16  ;;  %v1619_v55 = vcvt.f32.s32 %v5859_v0 }
 0x838   :  { %v1481_v40 = vadd.s32 %v1480_v38, %v1478_v41  ;;  %v1467_v50 = vadd.s32 %v1466_v17, %v1464_v59  ;;  %v1605_v38 = vcvt.f32.s32 %v5861_v57 }
 0x839   :  { %v1505_v27 = vpop.xlane.xlu1 %1504  ;;  %v1491_v60 = vpop.xlane.xlu0 %1490 }
 0x83a   :  { %vm1679_vm13 = vcmp.eq.s32.totalorder %v1481_v40, %v5261_v42  ;;  %3001 = vst.msk [vmem:[%s6568_s22 + $0x8] sm:$0xff] %vm1002_vm12, %v1481_v40  ;;  %3000 = vst.msk [vmem:[%s6568_s22] sm:$0xff] %vm1002_vm12, %v1467_v50  ;;  %v1506_v52 = vcvt.f32.s32 %v1505_v27  ;;  %v1492_v11 = vcvt.f32.s32 %v1491_v60  ;;  %vm1678_vm14 = vcmp.eq.s32.totalorder %v1467_v50, %v5261_v42 }
 0x83b   :  { %3772 = vmatprep.mubr.msk.f32.mxu1 %vm1678_vm14, %v4868_v58  ;;  %v1620_v50 = vshll.u32 %v1619_v55, 16 }
 0x83c   :  { %v1509_v39 = vadd.s32 %v1508_v22, %v1506_v52  ;;  %v1495_v62 = vadd.s32 %v1494_v49, %v1492_v11  ;;  %3773 = vmatmul.mubr.msk.f32.vlgmr.msra.gmra.mrb[22].mxu1 %vm1679_vm13, %v4868_v58  ;;  %v1606_v22 = vshll.u32 %v1605_v38, 16  ;;  %v1647_v49 = vcvt.f32.s32 %v5869_v15 }
 0x83d   :  { %v1533_v53 = vpop.xlane.xlu1 %1532  ;;  %v1519_v54 = vpop.xlane.xlu0 %1518 }
 0x83e   :  { %3003 = vst.msk [vmem:[%s6568_s22 + $0x18] sm:$0xff] %vm1002_vm12, %v1509_v39  ;;  %3002 = vst.msk [vmem:[%s6568_s22 + $0x10] sm:$0xff] %vm1002_vm12, %v1495_v62  ;;  %v1534_v12 = vcvt.f32.s32 %v1533_v53  ;;  %v1520_v26 = vcvt.f32.s32 %v1519_v54  ;;  %vm1680_vm15 = vcmp.eq.s32.totalorder %v1495_v62, %v5261_v42  ;;  %vm1681_vm4 = vcmp.eq.s32.totalorder %v1509_v39, %v5261_v42 }
 0x83f   :  { %3775 = vmatprep.mubr.msk.f32.mxu1 %vm1680_vm15, %v4868_v58  ;;  %v1648_v11 = vshll.u32 %v1647_v49, 16  ;;  %v1634_v39 = vshll.u32 %v1633_v56, 16  ;;  %v1675_v62 = vcvt.f32.s32 %v5879_v16 }
 0x840   :  { %v1537_v4 = vadd.s32 %v1536_v44, %v1534_v12  ;;  %v1523_v19 = vadd.s32 %v1522_v21, %v1520_v26  ;;  %3776 = vmatmul.mubr.msk.f32.gmra.mrb[24].mxu1 %vm1681_vm4, %v4868_v58  ;;  %v1661_v44 = vcvt.f32.s32 %v5881_v23 }
 0x841   :  { %v1561_v63 = vpop.xlane.xlu1 %1560  ;;  %v1547_v10 = vpop.xlane.xlu0 %1546  ;;  %v1676_v54 = vshll.u32 %v1675_v62, 16 }
 0x842   :  { %3005 = vst.msk [vmem:[%s6568_s22 + $0x28] sm:$0xff] %vm1002_vm12, %v1537_v4  ;;  %3004 = vst.msk [vmem:[%s6568_s22 + $0x20] sm:$0xff] %vm1002_vm12, %v1523_v19  ;;  %v1562_v25 = vcvt.f32.s32 %v1561_v63  ;;  %v1548_v33 = vcvt.f32.s32 %v1547_v10  ;;  %vm1682_vm5 = vcmp.eq.s32.totalorder %v1523_v19, %v5261_v42  ;;  %vm1683_vm6 = vcmp.eq.s32.totalorder %v1537_v4, %v5261_v42 }
 0x843   :  { %3778 = vmatprep.mubr.msk.f32.mxu1 %vm1682_vm5, %v4868_v58  ;;  %v1662_v12 = vshll.u32 %v1661_v44, 16 }
 0x844   :  { %v1565_v14 = vadd.s32 %v1564_v47, %v1562_v25  ;;  %v1551_v35 = vadd.s32 %v1550_v48, %v1548_v33  ;;  %3779 = vmatmul.mubr.msk.f32.gmra.mrb[26].mxu1 %vm1683_vm6, %v4868_v58 }
 0x845   :  { %v1589_v17 = vpop.xlane.xlu1 %1588  ;;  %v1575_v41 = vpop.xlane.xlu0 %1574 }
 0x846   :  { %3007 = vst.msk [vmem:[%s6568_s22 + $0x38] sm:$0xff] %vm1002_vm12, %v1565_v14  ;;  %3006 = vst.msk [vmem:[%s6568_s22 + $0x30] sm:$0xff] %vm1002_vm12, %v1551_v35  ;;  %v1590_v59 = vcvt.f32.s32 %v1589_v17  ;;  %v1576_v40 = vcvt.f32.s32 %v1575_v41  ;;  %vm1684_vm7 = vcmp.eq.s32.totalorder %v1551_v35, %v5261_v42  ;;  %vm1685_vm8 = vcmp.eq.s32.totalorder %v1565_v14, %v5261_v42 }
 0x847   :  { %3781 = vmatprep.mubr.msk.f32.mxu1 %vm1684_vm7, %v4868_v58 }
 0x848   :  { %v1593_v0 = vadd.s32 %v1592_v31, %v1590_v59  ;;  %v1579_v57 = vadd.s32 %v1578_v37, %v1576_v40  ;;  %3782 = vmatmul.mubr.msk.f32.gmra.mrb[28].mxu1 %vm1685_vm8, %v4868_v58 }
 0x849   :  { %v1617_v7 = vpop.xlane.xlu1 %1616  ;;  %v1603_v27 = vpop.xlane.xlu0 %1602 }
 0x84a   :  { %3009 = vst.msk [vmem:[%s6568_s22 + $0x48] sm:$0xff] %vm1002_vm12, %v1593_v0  ;;  %3008 = vst.msk [vmem:[%s6568_s22 + $0x40] sm:$0xff] %vm1002_vm12, %v1579_v57  ;;  %v1618_v60 = vcvt.f32.s32 %v1617_v7  ;;  %v1604_v52 = vcvt.f32.s32 %v1603_v27  ;;  %vm1686_vm9 = vcmp.eq.s32.totalorder %v1579_v57, %v5261_v42  ;;  %vm1687_vm10 = vcmp.eq.s32.totalorder %v1593_v0, %v5261_v42 }
 0x84b   :  { %3784 = vmatprep.mubr.msk.f32.mxu1 %vm1686_vm9, %v4868_v58 }
 0x84c   :  { %v1621_v15 = vadd.s32 %v1620_v50, %v1618_v60  ;;  %v1607_v18 = vadd.s32 %v1606_v22, %v1604_v52  ;;  %3785 = vmatmul.mubr.msk.f32.gmra.mrb[30].mxu1 %vm1687_vm10, %v4868_v58  ;;  %vm1045_vm10 = vcmask 57344  }
 0x84d   :  { %v1645_v21 = vpop.xlane.xlu1 %1644  ;;  %v1631_v34 = vpop.xlane.xlu0 %1630 }
 0x84e   :  { %3011 = vst.msk [vmem:[%s6568_s22 + $0x58] sm:$0xff] %vm1002_vm12, %v1621_v15  ;;  %3010 = vst.msk [vmem:[%s6568_s22 + $0x50] sm:$0xff] %vm1002_vm12, %v1607_v18  ;;  %v1646_v51 = vcvt.f32.s32 %v1645_v21  ;;  %v1632_v53 = vcvt.f32.s32 %v1631_v34  ;;  %vm1688_vm11 = vcmp.eq.s32.totalorder %v1607_v18, %v5261_v42  ;;  %vm1689_vm13 = vcmp.eq.s32.totalorder %v1621_v15, %v5261_v42 }
 0x84f   :  { %3787 = vmatprep.mubr.msk.f32.mxu1 %vm1688_vm11, %v4868_v58 }
 0x850   :  { %v1649_v16 = vadd.s32 %v1648_v11, %v1646_v51  ;;  %v1635_v23 = vadd.s32 %v1634_v39, %v1632_v53  ;;  %3788 = vmatmul.mubr.msk.f32.gmra.mrb[32].mxu1 %vm1689_vm13, %v4868_v58 }
 0x851   :  { %v1673_v26 = vpop.xlane.xlu1 %1672  ;;  %v1659_v4 = vpop.xlane.xlu0 %1658 }
 0x852   :  { %3013 = vst.msk [vmem:[%s6568_s22 + $0x68] sm:$0xff] %vm1002_vm12, %v1649_v16  ;;  %3012 = vst.msk [vmem:[%s6568_s22 + $0x60] sm:$0xff] %vm1002_vm12, %v1635_v23  ;;  %v1674_v19 = vcvt.f32.s32 %v1673_v26  ;;  %v1660_v47 = vcvt.f32.s32 %v1659_v4  ;;  %vm1690_vm14 = vcmp.eq.s32.totalorder %v1635_v23, %v5261_v42  ;;  %vm1691_vm15 = vcmp.eq.s32.totalorder %v1649_v16, %v5261_v42 }
 0x853   :  { %3790 = vmatprep.mubr.msk.f32.mxu1 %vm1690_vm14, %v4868_v58 }
 0x854   :  { %v1677_v48 = vadd.s32 %v1676_v54, %v1674_v19  ;;  %v1663_v13 = vadd.s32 %v1662_v12, %v1660_v47  ;;  %3791 = vmatmul.mubr.msk.f32.gmra.mrb[34].mxu1 %vm1691_vm15, %v4868_v58 }
 0x856   :  { %3015 = vst.msk [vmem:[%s6568_s22 + $0x78] sm:$0xff] %vm1002_vm12, %v1677_v48  ;;  %3014 = vst.msk [vmem:[%s6568_s22 + $0x70] sm:$0xff] %vm1002_vm12, %v1663_v13  ;;  %vm1692_vm4 = vcmp.eq.s32.totalorder %v1663_v13, %v5261_v42  ;;  %vm1693_vm5 = vcmp.eq.s32.totalorder %v1677_v48, %v5261_v42  ;;  %v6617_v13 = vld [vmem:[#allocation33_spill] sm:$0xff] }
 0x857   :  { %3793 = vmatprep.mubr.msk.f32.mxu1 %vm1692_vm4, %v4868_v58 }
 0x858   :  { %3794 = vmatmul.mubr.msk.f32.gmra.mrb[36].mxu1 %vm1693_vm5, %v4868_v58 }
 0x859   :  { %3884 = vmatprep.mubr.msk.f32.mxu1 %vm4865_vm0, %v6616_v6 }
 0x90f   :  { %v3774_v20 = vpop.f32.mrb[22].mxu1 }
 0x910   :  { %v1872_v63 = vsub.f32 %v3774_v20, %v5473_v30  ;;  %v1792_v10 = vpop.f32.mrb[23].mxu1 }
 0x911   :  { %v1871_v25 = vsub.f32 %v1792_v10, %v5404_v61  ;;  %v4270_v33 = vpack.c.bf16 %v3774_v20, %v1792_v10  ;;  %3828 = vmatprep.mubr.f32.mxu0 %v1792_v10 }
 0x912   :  { %v1888_v14 = vmul.f32 %v1872_v63, %v1872_v63  ;;  %3829 = vmatmul.mubr.f32.vlgmr.msra.gmra.mrb[24].mxu0 %v3774_v20 }
 0x913   :  { %v1887_v35 = vmul.f32 %v1871_v25, %v1871_v25  ;;  %v3777_v31 = vpop.f32.mrb[24].mxu1  ;;  %4271 = vmatpush3.bf16.msra.mxu1 %v4270_v33 }
 0x914   :  { %v1802_v37 = vpop.f32.mrb[25].mxu1  ;;  %4272 = vmatprep.subr.bf16.mxu1 %v4864_v3  ;;  %v1874_v55 = vsub.f32 %v3777_v31, %v5480_v36 }
 0x915   :  { %v1903_v58 = vadd.f32 %v1888_v14, %v1887_v35  ;;  %v1873_v38 = vsub.f32 %v1802_v37, %v5475_v32  ;;  %v4273_v17 = vpack.c.bf16 %v3777_v31, %v1802_v37  ;;  %3831 = vmatprep.mubr.f32.mxu0 %v1802_v37 }
 0x916   :  { %3832 = vmatmul.mubr.f32.gmra.mrb[26].mxu0 %v3777_v31  ;;  %v1890_v40 = vmul.f32 %v1874_v55, %v1874_v55  ;;  %v6619_v31 = vld [vmem:[#allocation34_spill] sm:$0xff] }
 0x917   :  { %v1889_v30 = vmul.f32 %v1873_v38, %v1873_v38  ;;  %v3780_v61 = vpop.f32.mrb[26].mxu1  ;;  %4274 = vmatpush3.bf16.msra.mxu1 %v4273_v17 }
 0x918   :  { %v1876_v41 = vsub.f32 %v3780_v61, %v5489_v2  ;;  %v1812_v59 = vpop.f32.mrb[27].mxu1  ;;  %4275 = vmatprep.subr.bf16.mxu1 %v4864_v3 }
 0x919   :  { %v1904_v0 = vadd.f32 %v1903_v58, %v1889_v30  ;;  %v1875_v57 = vsub.f32 %v1812_v59, %v5484_v1  ;;  %v4276_v50 = vpack.c.bf16 %v3780_v61, %v1812_v59  ;;  %3834 = vmatprep.mubr.f32.mxu0 %v1812_v59 }
 0x91a   :  { %3835 = vmatmul.mubr.f32.gmra.mrb[28].mxu0 %v3780_v61  ;;  %v1892_v49 = vmul.f32 %v1876_v41, %v1876_v41  ;;  %v6620_v61 = vmov 0.0625  }
 0x91b   :  { %v1891_v36 = vmul.f32 %v1875_v57, %v1875_v57  ;;  %v1905_v32 = vadd.f32 %v1904_v0, %v1890_v40  ;;  %v3783_v22 = vpop.f32.mrb[28].mxu1  ;;  %4277 = vmatpush3.bf16.msra.mxu1 %v4276_v50  ;;  %v2184_v0 = vld [vmem:[#allocation16] sm:$0xff]  ;;  %v2185_v57 = vld [vmem:[#allocation16 + $0x8] sm:$0xff] }
 0x91c   :  { %v1822_v56 = vpop.f32.mrb[29].mxu1  ;;  %4278 = vmatprep.subr.bf16.mxu1 %v4864_v3  ;;  %v1878_v2 = vsub.f32 %v3783_v22, %v5497_v24  ;;  %v4294_v50 = vpack.c.bf16 %v2185_v57, %v2184_v0  ;;  %v2702_v57 = vld [vmem:[#allocation19 + $0x10] sm:$0xff] }
 0x91d   :  { %v1906_v7 = vadd.f32 %v1905_v32, %v1891_v36  ;;  %v1877_v27 = vsub.f32 %v1822_v56, %v5492_v43  ;;  %v4279_v60 = vpack.c.bf16 %v3783_v22, %v1822_v56  ;;  %3837 = vmatprep.mubr.f32.mxu0 %v1822_v56  ;;  %v2186_v36 = vld [vmem:[#allocation16 + $0x10] sm:$0xff]  ;;  %v2187_v32 = vld [vmem:[#allocation16 + $0x18] sm:$0xff]  ;;  %v2189_v56 = vld [vmem:[#allocation16 + $0x28] sm:$0xff] }
 0x91e   :  { %3838 = vmatmul.mubr.f32.gmra.mrb[30].mxu0 %v3783_v22  ;;  %v1894_v39 = vmul.f32 %v1878_v2, %v1878_v2  ;;  %v4297_v22 = vpack.c.bf16 %v2187_v32, %v2186_v36  ;;  %v2190_v2 = vld [vmem:[#allocation16 + $0x30] sm:$0xff] }
 0x91f   :  { %v1893_v1 = vmul.f32 %v1877_v27, %v1877_v27  ;;  %v1907_v52 = vadd.f32 %v1906_v7, %v1892_v49  ;;  %v3786_v15 = vpop.f32.mrb[30].mxu1  ;;  %4280 = vmatpush3.bf16.msra.mxu1 %v4279_v60  ;;  %4295 = vmatpush3.bf16.msra.mxu0 %v4294_v50  ;;  %v2188_v49 = vld [vmem:[#allocation16 + $0x20] sm:$0xff]  ;;  %v2191_v27 = vld [vmem:[#allocation16 + $0x38] sm:$0xff] }
 0x920   :  { %v1880_v18 = vsub.f32 %v3786_v15, %v5505_v45  ;;  %v1832_v11 = vpop.f32.mrb[31].mxu1  ;;  %4281 = vmatprep.subr.bf16.mxu1 %v4864_v3  ;;  %4296 = vmatprep.subr.bf16.mxu0 %v4864_v3  ;;  %v4300_v7 = vpack.c.bf16 %v2189_v56, %v2188_v49  ;;  %v4303_v60 = vpack.c.bf16 %v2191_v27, %v2190_v2  ;;  %v2703_v50 = vld [vmem:[#allocation19 + $0x18] sm:$0xff]  ;;  %v2704_v49 = vld [vmem:[#allocation19 + $0x20] sm:$0xff]  ;;  %v2705_v56 = vld [vmem:[#allocation19 + $0x28] sm:$0xff] }
 0x921   :  { %v1908_v62 = vadd.f32 %v1907_v52, %v1893_v1  ;;  %v1879_v44 = vsub.f32 %v1832_v11, %v5500_v5  ;;  %v4282_v21 = vpack.c.bf16 %v3786_v15, %v1832_v11  ;;  %3840 = vmatprep.mubr.f32.mxu0 %v1832_v11  ;;  %v2192_v1 = vld [vmem:[#allocation16 + $0x40] sm:$0xff]  ;;  %v2193_v52 = vld [vmem:[#allocation16 + $0x48] sm:$0xff]  ;;  %v2195_v11 = vld [vmem:[#allocation16 + $0x58] sm:$0xff] }
 0x922   :  { %3841 = vmatmul.mubr.f32.gmra.mrb[32].mxu0 %v3786_v15  ;;  %v1896_v51 = vmul.f32 %v1880_v18, %v1880_v18  ;;  %v4306_v15 = vpack.c.bf16 %v2193_v52, %v2192_v1  ;;  %v2194_v18 = vld [vmem:[#allocation16 + $0x50] sm:$0xff]  ;;  %v2707_v27 = vld [vmem:[#allocation19 + $0x38] sm:$0xff]  ;;  %v2708_v1 = vld [vmem:[#allocation19 + $0x40] sm:$0xff] }
 0x923   :  { %v1895_v43 = vmul.f32 %v1879_v44, %v1879_v44  ;;  %v1909_v24 = vadd.f32 %v1908_v62, %v1894_v39  ;;  %v3789_v34 = vpop.f32.mrb[32].mxu1  ;;  %4283 = vmatpush3.bf16.msra.mxu1 %v4282_v21  ;;  %4298 = vmatpush3.bf16.msra.mxu0 %v4297_v22  ;;  %v4309_v39 = vpack.c.bf16 %v2195_v11, %v2194_v18  ;;  %v2196_v62 = vld [vmem:[#allocation16 + $0x60] sm:$0xff]  ;;  %v2197_v44 = vld [vmem:[#allocation16 + $0x68] sm:$0xff]  ;;  %v2706_v2 = vld [vmem:[#allocation19 + $0x30] sm:$0xff] }
 0x924   :  { %v1842_v53 = vpop.f32.mrb[33].mxu1  ;;  %4284 = vmatprep.subr.bf16.mxu1 %v4864_v3  ;;  %v1882_v45 = vsub.f32 %v3789_v34, %v5513_v46  ;;  %4299 = vmatprep.subr.bf16.mxu0 %v4864_v3  ;;  %v4312_v21 = vpack.c.bf16 %v2197_v44, %v2196_v62  ;;  %v4345_v22 = vpack.c.bf16 %v2703_v50, %v2702_v57  ;;  %v2709_v52 = vld [vmem:[#allocation19 + $0x48] sm:$0xff]  ;;  %v2710_v18 = vld [vmem:[#allocation19 + $0x50] sm:$0xff]  ;;  %v2711_v11 = vld [vmem:[#allocation19 + $0x58] sm:$0xff] }
 0x925   :  { %v1910_v16 = vadd.f32 %v1909_v24, %v1895_v43  ;;  %v1881_v23 = vsub.f32 %v1842_v53, %v5508_v8  ;;  %v4285_v54 = vpack.c.bf16 %v3789_v34, %v1842_v53  ;;  %3843 = vmatprep.mubr.f32.mxu0 %v1842_v53  ;;  %v2198_v43 = vld [vmem:[#allocation16 + $0x70] sm:$0xff]  ;;  %v2199_v24 = vld [vmem:[#allocation16 + $0x78] sm:$0xff]  ;;  %v2712_v62 = vld [vmem:[#allocation19 + $0x60] sm:$0xff] }
 0x926   :  { %3844 = vmatmul.mubr.f32.gmra.mrb[34].mxu0 %v3789_v34  ;;  %v1898_v47 = vmul.f32 %v1882_v45, %v1882_v45  ;;  %v4315_v34 = vpack.c.bf16 %v2199_v24, %v2198_v43  ;;  %v2713_v44 = vld [vmem:[#allocation19 + $0x68] sm:$0xff]  ;;  %v2714_v43 = vld [vmem:[#allocation19 + $0x70] sm:$0xff]  ;;  %v2715_v24 = vld [vmem:[#allocation19 + $0x78] sm:$0xff] }
 0x927   :  { %v1897_v5 = vmul.f32 %v1881_v23, %v1881_v23  ;;  %v1911_v12 = vadd.f32 %v1910_v16, %v1896_v51  ;;  %v3792_v26 = vpop.f32.mrb[34].mxu1  ;;  %4286 = vmatpush3.bf16.msra.mxu1 %v4285_v54  ;;  %4301 = vmatpush3.bf16.msra.mxu0 %v4300_v7  ;;  %v6049_v51 = vld [vmem:[%s6561_s15] ss:$0 sm:$0xff]  ;;  %v4348_v7 = vpack.c.bf16 %v2705_v56, %v2704_v49  ;;  %v6161_v50 = vld [vmem:[%s6602_s13 + $0x28] sm:$0xff]  ;;  %v6175_v49 = vld [vmem:[%s6602_s13 + $0x38] sm:$0xff] }
 0x928   :  { %v1884_v4 = vsub.f32 %v3792_v26, %v5521_v9  ;;  %v1852_v19 = vpop.f32.mrb[35].mxu1  ;;  %4287 = vmatprep.subr.bf16.mxu1 %v4864_v3  ;;  %v6618_v9 = vld [vmem:[#allocation35_spill] sm:$0xff]  ;;  %4302 = vmatprep.subr.bf16.mxu0 %v4864_v3  ;;  %v2408_v56 = vmul.f32 %v6175_v49, %v6175_v49 }
 0x929   :  { %v1912_v48 = vadd.f32 %v1911_v12, %v1897_v5  ;;  %v1883_v20 = vsub.f32 %v1852_v19, %v6617_v13  ;;  %v4288_v63 = vpack.c.bf16 %v3792_v26, %v1852_v19  ;;  %3846 = vmatprep.mubr.f32.mxu0 %v1852_v19 }
 0x92a   :  { %3847 = vmatmul.mubr.f32.gmra.mrb[36].mxu0 %v3792_v26  ;;  %v1900_v25 = vmul.f32 %v1884_v4, %v1884_v4 }
 0x92b   :  { %v1899_v8 = vmul.f32 %v1883_v20, %v1883_v20  ;;  %v1913_v46 = vadd.f32 %v1912_v48, %v1898_v47  ;;  %v3795_v10 = vpop.f32.mrb[36].mxu1  ;;  %4289 = vmatpush3.bf16.msra.mxu1 %v4288_v63  ;;  %4304 = vmatpush3.bf16.msra.mxu0 %v4303_v60  ;;  %v4351_v60 = vpack.c.bf16 %v2707_v27, %v2706_v2  ;;  %v6189_v27 = vld [vmem:[%s6602_s13 + $0x48] sm:$0xff] }
 0x92c   :  { %v1862_v33 = vpop.f32.mrb[37].mxu1  ;;  %4290 = vmatprep.subr.bf16.mxu1 %v4864_v3  ;;  %v1886_v35 = vsub.f32 %v3795_v10, %v6618_v9  ;;  %4305 = vmatprep.subr.bf16.mxu0 %v4864_v3 }
 0x92d   :  { %v1914_v14 = vadd.f32 %v1913_v46, %v1899_v8  ;;  %v1885_v37 = vsub.f32 %v1862_v33, %v6619_v31  ;;  %v4291_v58 = vpack.c.bf16 %v3795_v10, %v1862_v33  ;;  %3849 = vmatprep.mubr.f32.mxu0 %v1862_v33 }
 0x92e   :  { %3850 = vmatmul.mubr.f32.gmra.mrb[38].mxu0 %v3795_v10  ;;  %v1902_v17 = vmul.f32 %v1886_v35, %v1886_v35 }
 0x92f   :  { %v1901_v55 = vmul.f32 %v1885_v37, %v1885_v37  ;;  %4292 = vmatpush3.bf16.msra.mxu1 %v4291_v58  ;;  %3919 = vmatprep.mubr.msk.f32.mxu0 %vm4865_vm0, %v6616_v6  ;;  %v1915_v38 = vadd.f32 %v1914_v14, %v1900_v25 }
 0x930   :  { %4317 = vmatprep.subr.bf16.mxu1 %v4864_v3  ;;  %4307 = vmatpush3.bf16.msra.mxu0 %v4306_v15  ;;  %v4354_v15 = vpack.c.bf16 %v2709_v52, %v2708_v1  ;;  %v6196_v1 = vld [vmem:[%s6602_s13 + $0x50] sm:$0xff] }
 0x931   :  { %v1916_v30 = vadd.f32 %v1915_v38, %v1901_v55  ;;  %4308 = vmatprep.subr.bf16.mxu0 %v4864_v3  ;;  %v2700_v38 = vld [vmem:[#allocation19] sm:$0xff]  ;;  %v2411_v52 = vmul.f32 %v6196_v1, %v6196_v1 }
 0x932   :  { %3885 = vmatmul.mubr.msk.f32.vlgmr.msra.gmra.mrb[38].mxu1 %vm432_vm3, %v6620_v61 }
 0x933   :  { %3954 = vmatprep.mubr.msk.f32.mxu1 %vm4865_vm0, %v6616_v6  ;;  %v6036_v40 = vadd.f32 %v1916_v30, %v1902_v17  ;;  %v2701_v17 = vld [vmem:[#allocation19 + $0x8] sm:$0xff] }
 0x934   :  { %4310 = vmatpush3.bf16.msra.mxu0 %v4309_v39  ;;  %v4342_v0 = vpack.c.bf16 %v2701_v17, %v2700_v38  ;;  %v4357_v39 = vpack.c.bf16 %v2711_v11, %v2710_v18  ;;  %v6145_v38 = vld [vmem:[%s6602_s13 + $0x18] sm:$0xff]  ;;  %v6210_v11 = vld [vmem:[%s6602_s13 + $0x60] sm:$0xff] }
 0x935   :  { %6623 = vst [vmem:[#allocation33_spill] sm:$0xff] %v6036_v40  ;;  %4311 = vmatprep.subr.bf16.mxu0 %v4864_v3  ;;  %v2404_v17 = vmul.f32 %v6145_v38, %v6145_v38 }
 0x938   :  { %4313 = vmatpush3.bf16.msra.mxu0 %v4312_v21  ;;  %v4360_v21 = vpack.c.bf16 %v2713_v44, %v2712_v62  ;;  %v6217_v62 = vld [vmem:[%s6602_s13 + $0x68] sm:$0xff] }
 0x939   :  { %4314 = vmatprep.subr.bf16.mxu0 %v4864_v3  ;;  %v2414_v44 = vmul.f32 %v6217_v62, %v6217_v62 }
 0x93c   :  { %4316 = vmatpush3.bf16.msra.mxu0 %v4315_v34  ;;  %v4363_v34 = vpack.c.bf16 %v2715_v24, %v2714_v43 }
 0x93d   :  { %4341 = vmatprep.subr.bf16.mxu0 %v4864_v3 }
 0x9e5   :  { %v6051_v53 = vpop.f32.mrb[24].mxu0 }
 0x9e6   :  { %v2019_v16 = vpop.f32.mrb[25].mxu0 }
 0x9e7   :  { %v6054_v45 = vadd.f32 %v6049_v51, %v2019_v16  ;;  %v6624_v16 = vld [vmem:[#allocation32_spill] sm:$0xff] }
 0x9e9   :  { %v3833_v23 = vpop.f32.mrb[26].mxu0 }
 0x9ea   :  { %v6057_v54 = vadd.f32 %v3833_v23, %v6049_v51  ;;  %v2029_v5 = vpop.f32.mrb[27].mxu0  ;;  %v3105_v23 = vld [vmem:[%s6563_s17] ss:$0 sm:$0xff] }
 0x9eb   :  { %v6060_v12 = vadd.f32 %v6049_v51, %v2029_v5 }
 0x9ed   :  { %v3836_v26 = vpop.f32.mrb[28].mxu0 }
 0x9ee   :  { %v6063_v4 = vadd.f32 %v3836_v26, %v6049_v51  ;;  %v2039_v19 = vpop.f32.mrb[29].mxu0 }
 0x9ef   :  { %v6066_v47 = vadd.f32 %v6049_v51, %v2039_v19 }
 0x9f1   :  { %v3839_v48 = vpop.f32.mrb[30].mxu0 }
 0x9f2   :  { %v6069_v13 = vadd.f32 %v3839_v48, %v6049_v51  ;;  %v2049_v20 = vpop.f32.mrb[31].mxu0  ;;  %v2025_v48 = vadd.f32 %v6051_v53, %v6049_v51 }
 0x9f3   :  { %v6072_v63 = vadd.f32 %v6049_v51, %v2049_v20  ;;  %v979_v20 = vstv %s4366_s11 }
 0x9f5   :  { %v3842_v8 = vpop.f32.mrb[32].mxu0 }
 0x9f6   :  { %v6075_v46 = vadd.f32 %v3842_v8, %v6049_v51  ;;  %v2059_v10 = vpop.f32.mrb[33].mxu0 }
 0x9f7   :  { %v6078_v25 = vadd.f32 %v6049_v51, %v2059_v10  ;;  %v6116_v10 = vmul.f32 %v979_v20, %v5636_v29  ;;  %v6131_v29 = vld [vmem:[%s6602_s13 + $0x8] sm:$0xff] }
 0x9f8   :  { %v2402_v53 = vmul.f32 %v6131_v29, %v6131_v29 }
 0x9f9   :  { %v3845_v33 = vpop.f32.mrb[34].mxu0 }
 0x9fa   :  { %v6081_v14 = vadd.f32 %v3845_v33, %v6049_v51  ;;  %v2069_v9 = vpop.f32.mrb[35].mxu0 }
 0x9fb   :  { %v6084_v35 = vadd.f32 %v6049_v51, %v2069_v9  ;;  %v6123_v9 = vsel %vm983_vm1, %v6116_v10, -inf }
 0x9fd   :  { %v3848_v31 = vpop.f32.mrb[36].mxu0 }
 0x9fe   :  { %v6087_v37 = vadd.f32 %v3848_v31, %v6049_v51  ;;  %v2079_v58 = vpop.f32.mrb[37].mxu0  ;;  %v6138_v31 = vld [vmem:[%s6602_s13 + $0x10] sm:$0xff] }
 0x9ff   :  { %v6090_v55 = vadd.f32 %v6049_v51, %v2079_v58  ;;  %v2403_v58 = vmul.f32 %v6138_v31, %v6138_v31 }
 0xa01   :  { %v3851_v30 = vpop.f32.mrb[38].mxu0 }
 0xa02   :  { %v6093_v61 = vadd.f32 %v3851_v30, %v6049_v51  ;;  %v2089_v41 = vpop.f32.mrb[39].mxu0 }
 0xa03   :  { %v6096_v59 = vadd.f32 %v6049_v51, %v2089_v41 }
 0xa05   :  { %v2180_v36 = vpop.f32.mrb[38].mxu1 }
 0xa06   :  { %v3886_v32 = vpop.f32.mrb[39].mxu1  ;;  %3920 = vmatmul.mubr.f32.vlgmr.msra.gmra.mrb[40].mxu0 %v2180_v36  ;;  %v2406_v36 = vmul.f32 %v6161_v50, %v6161_v50 }
 0xa07   :  { %4343 = vmatpush3.bf16.msra.mxu0 %v4342_v0  ;;  %3989 = vmatprep.mubr.msk.f32.mxu0 %vm4865_vm0, %v6616_v6  ;;  %v6154_v0 = vld [vmem:[%s6602_s13 + $0x20] sm:$0xff]  ;;  %v6168_v32 = vld [vmem:[%s6602_s13 + $0x30] sm:$0xff] }
 0xa08   :  { %4344 = vmatprep.subr.bf16.mxu0 %v4864_v3  ;;  %v2405_v57 = vmul.f32 %v6154_v0, %v6154_v0 }
 0xa0b   :  { %4346 = vmatpush3.bf16.msra.mxu0 %v4345_v22  ;;  %v2407_v22 = vmul.f32 %v6168_v32, %v6168_v32 }
 0xa0c   :  { %4347 = vmatprep.subr.bf16.mxu0 %v4864_v3 }
 0xa0f   :  { %4349 = vmatpush3.bf16.msra.mxu0 %v4348_v7  ;;  %v6182_v7 = vld [vmem:[%s6602_s13 + $0x40] sm:$0xff] }
 0xa10   :  { %4350 = vmatprep.subr.bf16.mxu0 %v4864_v3  ;;  %v2409_v2 = vmul.f32 %v6182_v7, %v6182_v7 }
 0xa13   :  { %4352 = vmatpush3.bf16.msra.mxu0 %v4351_v60  ;;  %v2410_v60 = vmul.f32 %v6189_v27, %v6189_v27 }
 0xa14   :  { %4353 = vmatprep.subr.bf16.mxu0 %v4864_v3 }
 0xa17   :  { %4355 = vmatpush3.bf16.msra.mxu0 %v4354_v15  ;;  %v6203_v15 = vld [vmem:[%s6602_s13 + $0x58] sm:$0xff] }
 0xa18   :  { %4356 = vmatprep.subr.bf16.mxu0 %v4864_v3  ;;  %v2412_v18 = vmul.f32 %v6203_v15, %v6203_v15 }
 0xa1b   :  { %4358 = vmatpush3.bf16.msra.mxu0 %v4357_v39  ;;  %v2413_v39 = vmul.f32 %v6210_v11, %v6210_v11 }
 0xa1c   :  { %4359 = vmatprep.subr.bf16.mxu0 %v4864_v3 }
 0xa1f   :  { %4361 = vmatpush3.bf16.msra.mxu0 %v4360_v21  ;;  %v6224_v21 = vld [vmem:[%s6602_s13 + $0x70] sm:$0xff] }
 0xa20   :  { %4362 = vmatprep.subr.bf16.mxu0 %v4864_v3  ;;  %v2415_v43 = vmul.f32 %v6224_v21, %v6224_v21 }
 0xa23   :  { %4364 = vmatpush3.bf16.msra.mxu0 %v4363_v34  ;;  %v6233_v34 = vld [vmem:[%s6602_s13 + $0x78] sm:$0xff] }
 0xa24   :  { %6625 = vst [vmem:[#allocation35_spill] sm:$0xff] %v6233_v34 }
 0xa26   :  { %3990 = vmatmul.mubr.f32.vlgmr.msra.gmra.mrb[42].mxu0 %v6624_v16  ;;  %v2416_v16 = vmul.f32 %v6233_v34, %v6233_v34 }
 0xad9   :  { %v2273_v5 = vpop.f32.mrb[40].mxu0 }
 0xada   :  { %v2274_v26 = vadd.f32 %v3105_v23, %v2273_v5  ;;  %v3921_v19 = vpop.f32.mrb[41].mxu0  ;;  %v2608_v23 = vld [vmem:[#allocation18] sm:$0xff]  ;;  %v2609_v5 = vld [vmem:[#allocation18 + $0x8] sm:$0xff] }
 0xadb   :  { %v4318_v19 = vpack.c.bf16 %v2609_v5, %v2608_v23 }
 0xadc   :  { %4453 = vtanh.f32 %v2274_v26  ;;  %v2610_v26 = vld [vmem:[#allocation18 + $0x10] sm:$0xff] }
 0xadd   :  { %4455 = vtanh.f32 %v2025_v48  ;;  %v2611_v48 = vld [vmem:[#allocation18 + $0x18] sm:$0xff]  ;;  %4319 = vmatpush3.bf16.msra.mxu1 %v4318_v19 }
 0xade   :  { %v4321_v20 = vpack.c.bf16 %v2611_v48, %v2610_v26  ;;  %4320 = vmatprep.subr.bf16.mxu1 %v4864_v3  ;;  %4457 = vtanh.f32 %v6054_v45 }
 0xadf   :  { %4459 = vtanh.f32 %v6060_v12 }
 0xae0   :  { %4461 = vtanh.f32 %v6057_v54 }
 0xae1   :  { %4322 = vmatpush3.bf16.msra.mxu1 %v4321_v20  ;;  %4463 = vtanh.f32 %v6066_v47  ;;  %v2616_v20 = vld [vmem:[#allocation18 + $0x40] sm:$0xff] }
 0xae2   :  { %4323 = vmatprep.subr.bf16.mxu1 %v4864_v3 }
 0xae6   :  { %v6113_v8 = vpop.eup %4453 }
 0xae7   :  { %2280 = vadd.xlane.f32.xlu0 %v6113_v8  ;;  %v6119_v33 = vpop.eup %4455 }
 0xae8   :  { %v2306_v51 = vmul.f32 %v6119_v33, %v6119_v33 }
 0xaeb   :  { %985 = vmax.xlane.f32.xlu0 %v6123_v9 }
 0xaef   :  { %2323 = vadd.xlane.f32.xlu0 %v2306_v51  ;;  %v2612_v51 = vld [vmem:[#allocation18 + $0x20] sm:$0xff] }
 0xaf3   :  { %2419 = vadd.xlane.f32.xlu0 %v2402_v53  ;;  %v2613_v53 = vld [vmem:[#allocation18 + $0x28] sm:$0xff] }
 0xaf7   :  { %2421 = vadd.xlane.f32.xlu0 %v2403_v58  ;;  %v4324_v58 = vpack.c.bf16 %v2613_v53, %v2612_v51  ;;  %v2617_v51 = vld [vmem:[#allocation18 + $0x48] sm:$0xff] }
 0xaf9   :  { %v6149_v30 = vpop.f32.mrb[42].mxu0  ;;  %4325 = vmatpush3.bf16.msra.mxu1 %v4324_v58  ;;  %v4330_v58 = vpack.c.bf16 %v2617_v51, %v2616_v20 }
 0xafa   :  { %v3991_v41 = vpop.f32.mrb[43].mxu0  ;;  %v2786_v24 = vmul.f32 %v6149_v30, %v6149_v30  ;;  %4326 = vmatprep.subr.bf16.mxu1 %v4864_v3 }
 0xafb   :  { %2423 = vadd.xlane.f32.xlu0 %v2404_v17  ;;  %v2614_v17 = vld [vmem:[#allocation18 + $0x30] sm:$0xff]  ;;  %v2615_v41 = vld [vmem:[#allocation18 + $0x38] sm:$0xff] }
 0xaff   :  { %2425 = vadd.xlane.f32.xlu0 %v2405_v57  ;;  %v4327_v57 = vpack.c.bf16 %v2615_v41, %v2614_v17 }
 0xb01   :  { %4328 = vmatpush3.bf16.msra.mxu1 %v4327_v57 }
 0xb02   :  { %4329 = vmatprep.subr.bf16.mxu1 %v4864_v3 }
 0xb03   :  { %2427 = vadd.xlane.f32.xlu0 %v2406_v36 }
 0xb05   :  { %4331 = vmatpush3.bf16.msra.mxu1 %v4330_v58 }
 0xb06   :  { %4332 = vmatprep.subr.bf16.mxu1 %v4864_v3 }
 0xb07   :  { %2429 = vadd.xlane.f32.xlu0 %v2407_v22 }
 0xb0b   :  { %2431 = vadd.xlane.f32.xlu0 %v2408_v56 }
 0xb0f   :  { %2433 = vadd.xlane.f32.xlu0 %v2409_v2 }
 0xb13   :  { %2435 = vadd.xlane.f32.xlu0 %v2410_v60 }
 0xb17   :  { %2437 = vadd.xlane.f32.xlu0 %v2411_v52  ;;  %v6252_v52 = vpop.eup %4457 }
 0xb18   :  { %v6273_v5 = vpop.eup %4459 }
 0xb19   :  { %v2307_v26 = vmul.f32 %v6273_v5, %v6273_v5  ;;  %v6278_v19 = vpop.eup %4461 }
 0xb1a   :  { %v2308_v47 = vmul.f32 %v6278_v19, %v6278_v19  ;;  %v6283_v48 = vpop.eup %4463 }
 0xb1b   :  { %2439 = vadd.xlane.f32.xlu0 %v2412_v18  ;;  %v2309_v17 = vmul.f32 %v6283_v48, %v6283_v48 }
 0xb1f   :  { %2441 = vadd.xlane.f32.xlu0 %v2413_v39 }
 0xb23   :  { %2443 = vadd.xlane.f32.xlu0 %v2414_v44  ;;  %v2305_v44 = vmul.f32 %v6252_v52, %v6252_v52 }
 0xb27   :  { %2445 = vadd.xlane.f32.xlu0 %v2415_v43 }
 0xb2b   :  { %2787 = vadd.xlane.f32.xlu0 %v2786_v24  ;;  %v6267_v24 = vld [vmem:[%s6602_s13] sm:$0xff] }
 0xb2f   :  { %2447 = vadd.xlane.f32.xlu0 %v2416_v16  ;;  %v2401_v16 = vmul.f32 %v6267_v24, %v6267_v24 }
 0xb74   :  { %v2281_v36 = vpop.xlane.xlu0 %2280 }
 0xb75   :  { %v2282_v22 = vmul.f32 0.0078125, %v2281_v36  ;;  %v2618_v36 = vld [vmem:[#allocation18 + $0x50] sm:$0xff] }
 0xb77   :  { %v6243_v56 = vsub.f32 %v6113_v8, %v2282_v22  ;;  %v2619_v22 = vld [vmem:[#allocation18 + $0x58] sm:$0xff] }
 0xb78   :  { %v6246_v2 = vpop.xlane.xlu0 %985 }
 0xb79   :  { %6626 = vst [vmem:[#allocation34_spill] sm:$0xff] %v6246_v2  ;;  %vm1061_vm2 = vcmp.eq.f32.partialorder %v6116_v10, %v6246_v2  ;;  %v2284_v60 = vmul.f32 %v6243_v56, %v6243_v56  ;;  %v987_v20 = vsub.f32 %v6116_v10, %v6246_v2 }
 0xb7a   :  { %v1062_v18 = vsel %vm1061_vm2, %v5261_v42, 8 }
 0xb7b   :  { %2285 = vadd.xlane.f32.xlu1 %v2284_v60  ;;  %v6256_v45 = vsel %vm983_vm1, %v1062_v18, 2147483647  ;;  %v4333_v60 = vpack.c.bf16 %v2619_v22, %v2618_v36 }
 0xb7c   :  { %6627 = vst [vmem:[#allocation30_spill] sm:$0xff] %v6256_v45  ;;  %v2324_v8 = vpop.xlane.xlu0 %2323  ;;  %v1065_v12 = vshra.s32 %v6256_v45, 16 }
 0xb7d   :  { %v2354_v39 = vadd.f32 1e-12, %v2324_v8  ;;  %4334 = vmatpush3.bf16.msra.mxu1 %v4333_v60 }
 0xb7e   :  { %v6262_v43 = vcvt.s32.f32 %v1065_v12  ;;  %4335 = vmatprep.subr.bf16.mxu1 %v4864_v3 }
 0xb7f   :  { %2321 = vadd.xlane.f32.xlu1 %v2305_v44  ;;  %4465 = vrsqrt.f32 %v2354_v39  ;;  %v2622_v44 = vld [vmem:[#allocation18 + $0x70] sm:$0xff] }
 0xb80   :  { %6628 = vst [vmem:[#allocation31_spill] sm:$0xff] %v6262_v43  ;;  %v2420_v54 = vpop.xlane.xlu0 %2419  ;;  %1068 = vmin.xlane.f32.xlu0 %v6262_v43 }
 0xb81   :  { %v2450_v23 = vadd.f32 1e-12, %v2420_v54 }
 0xb83   :  { %4467 = vrsqrt.f32 %v2450_v23  ;;  %2417 = vadd.xlane.f32.xlu1 %v2401_v16  ;;  %v2623_v16 = vld [vmem:[#allocation18 + $0x78] sm:$0xff] }
 0xb84   :  { %4469 = vtanh.f32 %v6063_v4  ;;  %v4339_v54 = vpack.c.bf16 %v2623_v16, %v2622_v44  ;;  %v2422_v60 = vpop.xlane.xlu0 %2421 }
 0xb85   :  { %4471 = vtanh.f32 %v6072_v63 }
 0xb86   :  { %4473 = vtanh.f32 %v6069_v13 }
 0xb87   :  { %2325 = vadd.xlane.f32.xlu1 %v2307_v26  ;;  %4475 = vtanh.f32 %v6078_v25 }
 0xb88   :  { %4477 = vtanh.f32 %v6075_v46 }
 0xb89   :  { %v4466_v53 = vpop.eup %4465  ;;  %4479 = vtanh.f32 %v6084_v35 }
 0xb8a   :  { %v2386_v63 = vmul.f32 %v4466_v53, %v6119_v33  ;;  %v2620_v33 = vld [vmem:[#allocation18 + $0x60] sm:$0xff]  ;;  %4481 = vtanh.f32 %v6081_v14 }
 0xb8b   :  { %2327 = vadd.xlane.f32.xlu1 %v2308_v47  ;;  %4483 = vtanh.f32 %v6090_v55  ;;  %v988_v55 = vmul.f32 1.442695, %v987_v20 }
 0xb8c   :  { %4485 = vtanh.f32 %v6087_v37 }
 0xb8d   :  { %v4468_v4 = vpop.eup %4467  ;;  %4487 = vtanh.f32 %v6096_v59 }
 0xb8e   :  { %v6288_v41 = vpop.eup %4469  ;;  %v2482_v57 = vmul.f32 %v6131_v29, %v4468_v4  ;;  %v2621_v29 = vld [vmem:[#allocation18 + $0x68] sm:$0xff]  ;;  %4489 = vpow2.f32 %v988_v55 }
 0xb8f   :  { %2329 = vadd.xlane.f32.xlu1 %v2309_v17  ;;  %v2310_v18 = vmul.f32 %v6288_v41, %v6288_v41  ;;  %v6296_v8 = vpop.eup %4471  ;;  %v4336_v12 = vpack.c.bf16 %v2621_v29, %v2620_v33  ;;  %4491 = vtanh.f32 %v6093_v61 }
 0xb90   :  { %v2498_v13 = vmul.f32 %v2482_v57, %v2386_v63  ;;  %v2311_v39 = vmul.f32 %v6296_v8, %v6296_v8  ;;  %v6302_v25 = vpop.eup %4473 }
 0xb91   :  { %4337 = vmatpush3.bf16.msra.mxu1 %v4336_v12  ;;  %v2312_v23 = vmul.f32 %v6302_v25, %v6302_v25  ;;  %v6308_v26 = vpop.eup %4475 }
 0xb92   :  { %2515 = vadd.xlane.f32.xlu0 %v2498_v13  ;;  %4338 = vmatprep.subr.bf16.mxu1 %v4864_v3  ;;  %v2313_v3 = vmul.f32 %v6308_v26, %v6308_v26  ;;  %v6314_v46 = vpop.eup %4477  ;;  %v2424_v13 = vpop.xlane.xlu0 %2423 }
 0xb93   :  { %2331 = vadd.xlane.f32.xlu1 %v2310_v18  ;;  %v2314_v35 = vmul.f32 %v6314_v46, %v6314_v46  ;;  %v6319_v47 = vpop.eup %4479  ;;  %v2452_v45 = vadd.f32 1e-12, %v2424_v13 }
 0xb94   :  { %v2315_v14 = vmul.f32 %v6319_v47, %v6319_v47  ;;  %v6326_v51 = vpop.eup %4481 }
 0xb95   :  { %4340 = vmatpush3.bf16.msra.mxu1 %v4339_v54  ;;  %v2316_v53 = vmul.f32 %v6326_v51, %v6326_v51  ;;  %v6331_v58 = vpop.eup %4483 }
 0xb96   :  { %3992 = vmatprep.subr.mxu1 %v6616_v6  ;;  %v2317_v37 = vmul.f32 %v6331_v58, %v6331_v58  ;;  %v6335_v4 = vpop.eup %4485  ;;  %v2426_v18 = vpop.xlane.xlu0 %2425 }
 0xb97   :  { %2333 = vadd.xlane.f32.xlu1 %v2311_v39  ;;  %v2318_v17 = vmul.f32 %v6335_v4, %v6335_v4  ;;  %v6340_v59 = vpop.eup %4487  ;;  %v1016_v39 = vrot.slane %v6123_v9, 4 }
 0xb98   :  { %6629 = vst [vmem:[#allocation32_spill] sm:$0xff] %v6340_v59  ;;  %v2319_v63 = vmul.f32 %v6340_v59, %v6340_v59  ;;  %v4490_v57 = vpop.eup %4489 }
 0xb99   :  { %v6344_v36 = vpop.eup %4491  ;;  %v990_v22 = vsel %vm983_vm1, %v4490_v57, 0.0  ;;  %v1017_v16 = vmax.f32 %v6123_v9, %v1016_v39 }
 0xb9a   :  { %6630 = vst [vmem:[#allocation36_spill] sm:$0xff] %v6344_v36  ;;  %v2320_v61 = vmul.f32 %v6344_v36, %v6344_v36  ;;  %v2428_v33 = vpop.xlane.xlu0 %2427  ;;  %v2451_v36 = vadd.f32 1e-12, %v2422_v60 }
 0xb9b   :  { %2335 = vadd.xlane.f32.xlu1 %v2312_v23  ;;  %v1018_v54 = vrot.slane %v1017_v16, 2 }
 0xb9e   :  { %v6349_v29 = vpop.xlane.xlu0 %2429 }
 0xb9f   :  { %2337 = vadd.xlane.f32.xlu1 %v2313_v3  ;;  %v1019_v3 = vmax.f32 %v1017_v16, %v1018_v54 }
 0xba1   :  { %v1020_v20 = vrot.slane %v1019_v3, 1 }
 0xba2   :  { %v6351_v12 = vpop.xlane.xlu0 %2431 }
 0xba3   :  { %2339 = vadd.xlane.f32.xlu1 %v2314_v35 }
 0xba6   :  { %v6354_v44 = vpop.xlane.xlu0 %2433 }
 0xba7   :  { %2341 = vadd.xlane.f32.xlu1 %v2315_v14  ;;  %v6361_v14 = vmax.f32 %v1019_v3, %v1020_v20 }
 0xba9   :  { %vm1094_vm3 = vcmp.eq.f32.partialorder %v6116_v10, %v6361_v14 }
 0xbaa   :  { %v6357_v23 = vpop.xlane.xlu0 %2435 }
 0xbab   :  { %2343 = vadd.xlane.f32.xlu1 %v2316_v53  ;;  %v1022_v53 = vsub.f32 %v6116_v10, %v6361_v14 }
 0xbae   :  { %v6359_v35 = vpop.xlane.xlu0 %2437 }
 0xbaf   :  { %2345 = vadd.xlane.f32.xlu1 %v2317_v37 }
 0xbb2   :  { %v6363_v55 = vpop.xlane.xlu0 %2439 }
 0xbb3   :  { %2347 = vadd.xlane.f32.xlu1 %v2318_v17  ;;  %v1023_v17 = vmul.f32 1.442695, %v1022_v53 }
 0xbb5   :  { %4493 = vpow2.f32 %v1023_v17 }
 0xbb6   :  { %v6367_v37 = vpop.xlane.xlu0 %2441 }
 0xbb7   :  { %2349 = vadd.xlane.f32.xlu1 %v2319_v63 }
 0xbba   :  { %v6369_v63 = vpop.xlane.xlu0 %2443 }
 0xbbb   :  { %991 = vadd.xlane.f32.xlu1 %v990_v22 }
 0xbbe   :  { %v6371_v9 = vpop.xlane.xlu0 %2445 }
 0xbbf   :  { %2351 = vadd.xlane.f32.xlu1 %v2320_v61  ;;  %v4494_v57 = vpop.eup %4493 }
 0xbc0   :  { %v1025_v61 = vsel %vm983_vm1, %v4494_v57, 0.0 }
 0xbc1   :  { %v1026_v3 = vrot.slane %v1025_v61, 4 }
 0xbc2   :  { %v2788_v39 = vpop.xlane.xlu0 %2787 }
 0xbc3   :  { %v2789_v20 = vadd.f32 1e-12, %v2788_v39  ;;  %v1027_v43 = vadd.f32 %v1026_v3, %v1025_v61 }
 0xbc5   :  { %v1028_v2 = vrot.slane %v1027_v43, 2 }
 0xbc7   :  { %v1029_v60 = vadd.f32 %v1028_v2, %v1027_v43 }
 0xbc9   :  { %v1030_v3 = vrot.slane %v1029_v60, 1 }
 0xc08   :  { %v2286_v22 = vpop.xlane.xlu1 %2285 }
 0xc09   :  { %v2287_v16 = vmul.f32 0.0078125, %v2286_v22  ;;  %v2453_v22 = vadd.f32 1e-12, %v2426_v18 }
 0xc0b   :  { %v2288_v54 = vadd.f32 1e-05, %v2287_v16 }
 0xc0c   :  { %v2322_v40 = vpop.xlane.xlu1 %2321 }
 0xc0d   :  { %4495 = vrsqrt.f32 %v2288_v54  ;;  %v2353_v34 = vadd.f32 1e-12, %v2322_v40  ;;  %v3106_v40 = vld [vmem:[%s6564_s18] ss:$0 sm:$0xff] }
 0xc0e   :  { %4497 = vrsqrt.f32 %v2789_v20 }
 0xc0f   :  { %4499 = vrsqrt.f32 %v2353_v34 }
 0xc10   :  { %v2418_v53 = vpop.xlane.xlu1 %2417  ;;  %4501 = vrsqrt.f32 %v2451_v36  ;;  %v3107_v36 = vld [vmem:[%s6565_s19] ss:$0 sm:$0xff] }
 0xc11   :  { %v2449_v17 = vadd.f32 1e-12, %v2418_v53 }
 0xc13   :  { %4503 = vrsqrt.f32 %v2449_v17 }
 0xc14   :  { %v2326_v59 = vpop.xlane.xlu1 %2325  ;;  %4505 = vrsqrt.f32 %v2452_v45 }
 0xc15   :  { %v2355_v57 = vadd.f32 1e-12, %v2326_v59  ;;  %v2454_v59 = vadd.f32 1e-12, %v2428_v33 }
 0xc17   :  { %v4496_v16 = vpop.eup %4495  ;;  %4507 = vrsqrt.f32 %v2355_v57 }
 0xc18   :  { %v2328_v61 = vpop.xlane.xlu1 %2327  ;;  %v2290_v39 = vmul.f32 %v4496_v16, %v6243_v56  ;;  %v4498_v13 = vpop.eup %4497  ;;  %4509 = vrsqrt.f32 %v2453_v22  ;;  %v2455_v56 = vadd.f32 1e-12, %v6349_v29  ;;  %v1031_v16 = vadd.f32 %v1030_v3, %v1029_v60 }
 0xc19   :  { %v2356_v34 = vadd.f32 1e-12, %v2328_v61  ;;  %v4500_v18 = vpop.eup %4499  ;;  %v2791_v43 = vmul.f32 %v4498_v13, %v6149_v30  ;;  %v2456_v29 = vadd.f32 1e-12, %v6351_v12 }
 0xc1a   :  { %v2297_v45 = vmul.f32 %v3106_v40, %v2290_v39  ;;  %v4502_v54 = vpop.eup %4501  ;;  %v2385_v57 = vmul.f32 %v4500_v18, %v6252_v52 }
 0xc1b   :  { %4511 = vrsqrt.f32 %v2356_v34  ;;  %v2483_v30 = vmul.f32 %v6138_v31, %v4502_v54  ;;  %v2457_v31 = vadd.f32 1e-12, %v6354_v44 }
 0xc1c   :  { %v2330_v20 = vpop.xlane.xlu1 %2329  ;;  %v2304_v53 = vadd.f32 %v3107_v36, %v2297_v45  ;;  %4513 = vrsqrt.f32 %v2454_v59 }
 0xc1d   :  { %v4504_v17 = vpop.eup %4503  ;;  %v2357_v2 = vadd.f32 1e-12, %v2330_v20 }
 0xc1e   :  { %3955 = vmatmul.mubr.f32.vlgmr.msra.gmra.mrb[40].mxu1 %v2304_v53  ;;  %v2481_v22 = vmul.f32 %v6267_v24, %v4504_v17  ;;  %v4506_v33 = vpop.eup %4505 }
 0xc1f   :  { %4515 = vrsqrt.f32 %v2357_v2  ;;  %3993 = vmatpush3.xpose.msra.mxu1 %v2791_v43  ;;  %3994 = vmatprep.mubr.msk.f32.mxu1 %vm4865_vm0, %v6616_v6  ;;  %v2484_v13 = vmul.f32 %v6145_v38, %v4506_v33  ;;  %v2458_v38 = vadd.f32 1e-12, %v6357_v23  ;;  %vm981_vm0 = vcmp.eq.s32.totalorder %v5232_v28, %v5261_v42 }
 0xc20   :  { %v2332_v40 = vpop.xlane.xlu1 %2331  ;;  %v6387_v61 = vmul.f32 %v2481_v22, %v2385_v57  ;;  %4517 = vrsqrt.f32 %v2455_v56 }
 0xc21   :  { %v4508_v39 = vpop.eup %4507  ;;  %v2358_v34 = vadd.f32 1e-12, %v2332_v40 }
 0xc22   :  { %v2387_v52 = vmul.f32 %v4508_v39, %v6273_v5  ;;  %v4510_v24 = vpop.eup %4509 }
 0xc23   :  { %4519 = vrsqrt.f32 %v2358_v34  ;;  %v2485_v5 = vmul.f32 %v6154_v0, %v4510_v24  ;;  %v2459_v0 = vadd.f32 1e-12, %v6359_v35 }
 0xc24   :  { %4521 = vlog2.f32 %v1031_v16  ;;  %v2334_v36 = vpop.xlane.xlu1 %2333  ;;  %v6393_v59 = vmul.f32 %v2483_v30, %v2387_v52 }
 0xc25   :  { %v4512_v60 = vpop.eup %4511  ;;  %v2359_v45 = vadd.f32 1e-12, %v2334_v36  ;;  %4523 = vrsqrt.f32 %v2456_v29 }
 0xc26   :  { %v2388_v18 = vmul.f32 %v4512_v60, %v6278_v19  ;;  %v4514_v54 = vpop.eup %4513 }
 0xc27   :  { %4525 = vrsqrt.f32 %v2359_v45  ;;  %v2486_v44 = vmul.f32 %v6161_v50, %v4514_v54  ;;  %v2460_v50 = vadd.f32 1e-12, %v6363_v55  ;;  %v2461_v55 = vadd.f32 1e-12, %v6367_v37 }
 0xc28   :  { %v2336_v12 = vpop.xlane.xlu1 %2335  ;;  %v2500_v3 = vmul.f32 %v2484_v13, %v2388_v18  ;;  %4527 = vrsqrt.f32 %v2457_v31  ;;  %v2462_v37 = vadd.f32 1e-12, %v6369_v63  ;;  %v2463_v63 = vadd.f32 1e-12, %v6371_v9 }
 0xc29   :  { %v4516_v20 = vpop.eup %4515  ;;  %v2360_v53 = vadd.f32 1e-12, %v2336_v12  ;;  %v4869_v12 = vmov 0.0125  }
 0xc2a   :  { %2519 = vadd.xlane.f32.xlu0 %v2500_v3  ;;  %v2389_v17 = vmul.f32 %v4516_v20, %v6283_v48  ;;  %v4518_v2 = vpop.eup %4517  ;;  %v6419_v3 = vsel %vm981_vm0, 0.9125, %v4869_v12 }
 0xc2b   :  { %4529 = vrsqrt.f32 %v2360_v53  ;;  %v2487_v48 = vmul.f32 %v6168_v32, %v4518_v2 }
 0xc2c   :  { %v2338_v43 = vpop.xlane.xlu1 %2337  ;;  %v6401_v19 = vmul.f32 %v2485_v5, %v2389_v17  ;;  %4531 = vrsqrt.f32 %v2458_v38 }
 0xc2d   :  { %v4520_v56 = vpop.eup %4519  ;;  %v2361_v57 = vadd.f32 1e-12, %v2338_v43 }
 0xc2e   :  { %v4522_v22 = vpop.eup %4521  ;;  %v2390_v33 = vmul.f32 %v4520_v56, %v6288_v41 }
 0xc2f   :  { %4533 = vrsqrt.f32 %v2361_v57  ;;  %v4524_v23 = vpop.eup %4523  ;;  %v1033_v39 = vmul.f32 0.6931472, %v4522_v22 }
 0xc30   :  { %v2340_v16 = vpop.xlane.xlu1 %2339  ;;  %v2502_v40 = vmul.f32 %v2486_v44, %v2390_v33  ;;  %4535 = vrsqrt.f32 %v2459_v0  ;;  %v2488_v41 = vmul.f32 %v6175_v49, %v4524_v23 }
 0xc31   :  { %v4526_v30 = vpop.eup %4525  ;;  %v2362_v34 = vadd.f32 1e-12, %v2340_v16  ;;  %v1034_v13 = vadd.f32 %v1033_v39, %v6361_v14 }
 0xc32   :  { %2523 = vadd.xlane.f32.xlu0 %v2502_v40  ;;  %v2391_v29 = vmul.f32 %v4526_v30, %v6296_v8  ;;  %v4528_v52 = vpop.eup %4527 }
 0xc33   :  { %4537 = vrsqrt.f32 %v2362_v34  ;;  %v2489_v31 = vmul.f32 %v6182_v7, %v4528_v52  ;;  %v1035_v5 = vsub.f32 %v6116_v10, %v1034_v13 }
 0xc34   :  { %v2342_v35 = vpop.xlane.xlu1 %2341  ;;  %v6409_v24 = vmul.f32 %v2487_v48, %v2391_v29  ;;  %4539 = vrsqrt.f32 %v2460_v50 }
 0xc35   :  { %v4530_v36 = vpop.eup %4529  ;;  %v2363_v32 = vadd.f32 1e-12, %v2342_v35  ;;  %v1036_v43 = vmul.f32 %v1035_v5, %v6419_v3  ;;  %v6631_v5 = vld [vmem:[#allocation32_spill] sm:$0xff] }
 0xc36   :  { %v2392_v60 = vmul.f32 %v4530_v36, %v6302_v25  ;;  %v4532_v8 = vpop.eup %4531  ;;  %v1095_v25 = vsel %vm1094_vm3, %v5232_v28, 8 }
 0xc37   :  { %4541 = vrsqrt.f32 %v2363_v32  ;;  %v2490_v7 = vmul.f32 %v6189_v27, %v4532_v8  ;;  %v1096_v44 = vsel %vm983_vm1, %v1095_v25, 2147483647  ;;  %v1037_v16 = vsel %vm983_vm1, %v1036_v43, 0.0 }
 0xc38   :  { %v2344_v49 = vpop.xlane.xlu1 %2343  ;;  %v2504_v45 = vmul.f32 %v2488_v41, %v2392_v60  ;;  %4543 = vrsqrt.f32 %v2461_v55  ;;  %v1097_v0 = vrot.slane %v1096_v44, 4  ;;  %v1038_v30 = vrot.slane %v1037_v16, 4 }
 0xc39   :  { %v4534_v18 = vpop.eup %4533  ;;  %v2364_v54 = vadd.f32 1e-12, %v2344_v49 }
 0xc3a   :  { %2527 = vadd.xlane.f32.xlu0 %v2504_v45  ;;  %v2393_v14 = vmul.f32 %v4534_v18, %v6308_v26  ;;  %v4536_v20 = vpop.eup %4535  ;;  %vm1098_vm6 = vcmp.lt.s32.totalorder %v1096_v44, %v1097_v0  ;;  %v1039_v36 = vadd.f32 %v1038_v30, %v1037_v16 }
 0xc3b   :  { %4545 = vrsqrt.f32 %v2364_v54  ;;  %v2491_v27 = vmul.f32 %v6196_v1, %v4536_v20  ;;  %v1099_v29 = vsel %vm1098_vm6, %v1096_v44, %v1097_v0 }
 0xc3c   :  { %v2346_v53 = vpop.xlane.xlu1 %2345  ;;  %v6426_v38 = vmul.f32 %v2489_v31, %v2393_v14  ;;  %4547 = vrsqrt.f32 %v2462_v37  ;;  %v1040_v8 = vrot.slane %v1039_v36, 2 }
 0xc3d   :  { %v4538_v17 = vpop.eup %4537  ;;  %v2365_v2 = vadd.f32 1e-12, %v2346_v53  ;;  %v6632_v53 = vld [vmem:[#allocation34_spill] sm:$0xff] }
 0xc3e   :  { %v2394_v56 = vmul.f32 %v4538_v17, %v6314_v46  ;;  %v4540_v26 = vpop.eup %4539  ;;  %v1041_v54 = vadd.f32 %v1040_v8, %v1039_v36  ;;  %v6636_v36 = vld [vmem:[#allocation35_spill] sm:$0xff] }
 0xc3f   :  { %4549 = vrsqrt.f32 %v2365_v2  ;;  %v2492_v46 = vmul.f32 %v6203_v15, %v4540_v26  ;;  %v1100_v15 = vrot.slane %v1099_v29, 2 }
 0xc40   :  { %v2348_v57 = vpop.xlane.xlu1 %2347  ;;  %v2506_v22 = vmul.f32 %v2490_v7, %v2394_v56  ;;  %4551 = vrsqrt.f32 %v2463_v63  ;;  %v1042_v20 = vrot.slane %v1041_v54, 1 }
 0xc41   :  { %v4542_v33 = vpop.eup %4541  ;;  %v2366_v23 = vadd.f32 1e-12, %v2348_v57  ;;  %vm1101_vm7 = vcmp.lt.s32.totalorder %v1099_v29, %v1100_v15 }
 0xc42   :  { %2531 = vadd.xlane.f32.xlu0 %v2506_v22  ;;  %v2395_v40 = vmul.f32 %v4542_v33, %v6319_v47  ;;  %v4544_v48 = vpop.eup %4543  ;;  %v1102_v12 = vsel %vm1101_vm7, %v1099_v29, %v1100_v15  ;;  %v1043_v17 = vadd.f32 %v1042_v20, %v1041_v54 }
 0xc43   :  { %4553 = vrsqrt.f32 %v2366_v23  ;;  %v2493_v47 = vmul.f32 %v6210_v11, %v4544_v48 }
 0xc44   :  { %v2350_v9 = vpop.xlane.xlu1 %2349  ;;  %v6436_v39 = vmul.f32 %v2491_v27, %v2395_v40  ;;  %v1044_v44 = vsub.f32 0.0, %v1043_v17 }
 0xc45   :  { %v4546_v34 = vpop.eup %4545  ;;  %v2367_v50 = vadd.f32 1e-12, %v2350_v9 }
 0xc46   :  { %v2396_v1 = vmul.f32 %v4546_v34, %v6326_v51  ;;  %v4548_v52 = vpop.eup %4547  ;;  %v1046_v63 = vsel %vm1045_vm10, %v1044_v44, 0.0 }
 0xc47   :  { %4555 = vrsqrt.f32 %v2367_v50  ;;  %v2494_v60 = vmul.f32 %v6217_v62, %v4548_v52  ;;  %v1103_v62 = vrot.slane %v1102_v12, 1 }
 0xc48   :  { %v992_v35 = vpop.xlane.xlu1 %991  ;;  %v2508_v41 = vmul.f32 %v2492_v46, %v2396_v1 }
 0xc49   :  { %v4550_v13 = vpop.eup %4549  ;;  %4557 = vlog2.f32 %v992_v35  ;;  %vm1104_vm8 = vcmp.lt.s32.totalorder %v1102_v12, %v1103_v62  ;;  %v6635_v35 = vld [vmem:[#allocation36_spill] sm:$0xff] }
 0xc4a   :  { %2535 = vadd.xlane.f32.xlu0 %v2508_v41  ;;  %v2397_v32 = vmul.f32 %v4550_v13, %v6331_v58  ;;  %v4552_v55 = vpop.eup %4551  ;;  %v1105_v2 = vsel %vm1104_vm8, %v1102_v12, %v1103_v62 }
 0xc4b   :  { %v2495_v18 = vmul.f32 %v6224_v21, %v4552_v55  ;;  %vm1106_vm9 = vcmp.eq.s32.totalorder %v1105_v2, %v5261_v42 }
 0xc4c   :  { %v2509_v49 = vmul.f32 %v2493_v47, %v2397_v32  ;;  %v3070_v56 = vsel %vm1106_vm9, 1.0, %v6616_v6  ;;  %v2352_v40 = vpop.xlane.xlu1 %2351 }
 0xc4d   :  { %v4554_v51 = vpop.eup %4553  ;;  %v1109_v26 = vsel %vm1045_vm10, %v3070_v56, 0.0  ;;  %v2368_v46 = vadd.f32 1e-12, %v2352_v40 }
 0xc4e   :  { %v2398_v45 = vmul.f32 %v4554_v51, %v6335_v4 }
 0xc50   :  { %v2510_v31 = vmul.f32 %v2494_v60, %v2398_v45 }
 0xc51   :  { %v4556_v11 = vpop.eup %4555 }
 0xc52   :  { %2539 = vadd.xlane.f32.xlu0 %v2510_v31  ;;  %v2399_v37 = vmul.f32 %v4556_v11, %v6631_v5 }
 0xc53   :  { %v4558_v25 = vpop.eup %4557 }
 0xc54   :  { %v994_v58 = vmul.f32 0.6931472, %v4558_v25  ;;  %v2511_v14 = vmul.f32 %v2495_v18, %v2399_v37 }
 0xc56   :  { %v995_v7 = vadd.f32 %v994_v58, %v6632_v53  ;;  %2541 = vadd.xlane.f32.xlu0 %v2511_v14 }
 0xc58   :  { %v996_v4 = vsub.f32 %v6116_v10, %v995_v7  ;;  %v2448_v10 = vpop.xlane.xlu0 %2447 }
 0xc59   :  { %v2464_v9 = vadd.f32 1e-12, %v2448_v10 }
 0xc5a   :  { %v997_v21 = vmul.f32 %v996_v4, %v6419_v3 }
 0xc5b   :  { %4559 = vrsqrt.f32 %v2464_v9 }
 0xc5c   :  { %v998_v43 = vsel %vm983_vm1, %v997_v21, 0.0  ;;  %v6453_v57 = vpop.xlane.xlu0 %1068  ;;  %4561 = vrsqrt.f32 %v2368_v46 }
 0xc5d   :  { %999 = vadd.xlane.f32.xlu0 %v998_v43 }
 0xc60   :  { %v2516_v0 = vpop.xlane.xlu0 %2515 }
 0xc61   :  { %1047 = vadd.xlane.f32.xlu0 %v1046_v63  ;;  %v2546_v51 = vsub.f32 1.0, %v2516_v0 }
 0xc63   :  { %v2562_v18 = vsel %vm1002_vm12, %v2546_v51, 0.0 }
 0xc65   :  { %1110 = vadd.xlane.f32.xlu0 %v1109_v26  ;;  %v4560_v1 = vpop.eup %4559 }
 0xc66   :  { %v4562_v29 = vpop.eup %4561  ;;  %v2496_v47 = vmul.f32 %v6636_v36, %v4560_v1 }
 0xc67   :  { %v2400_v41 = vmul.f32 %v4562_v29, %v6635_v35 }
 0xc69   :  { %v2512_v15 = vmul.f32 %v2496_v47, %v2400_v41 }
 0xcb7   :  { %v2520_v23 = vpop.xlane.xlu0 %2519 }
 0xcb8   :  { %v2548_v54 = vsub.f32 1.0, %v2520_v23 }
 0xcba   :  { %v2566_v14 = vsel %vm1002_vm12, %v2548_v54, 0.0 }
 0xcbf   :  { %v2524_v16 = vpop.xlane.xlu0 %2523 }
 0xcc0   :  { %v2550_v20 = vsub.f32 1.0, %v2524_v16 }
 0xcc2   :  { %v2570_v2 = vsel %vm1002_vm12, %v2550_v20, 0.0 }
 0xcc7   :  { %v2528_v48 = vpop.xlane.xlu0 %2527 }
 0xcc8   :  { %v2552_v43 = vsub.f32 1.0, %v2528_v48 }
 0xcca   :  { %v2574_v0 = vsel %vm1002_vm12, %v2552_v43, 0.0 }
 0xccf   :  { %v6458_v30 = vpop.xlane.xlu0 %2531 }
 0xcd7   :  { %v6461_v34 = vpop.xlane.xlu0 %2535 }
 0xcd8   :  { %v2556_v48 = vsub.f32 1.0, %v6461_v34 }
 0xcf1   :  { %v2690_v22 = vpop.f32.mrb[40].mxu1 }
 0xcf2   :  { %v3956_v27 = vpop.f32.mrb[41].mxu1  ;;  %v2694_v33 = vmul.f32 %v2690_v22, %v2690_v22 }
 0xcf3   :  { %v2554_v27 = vsub.f32 1.0, %v6458_v30  ;;  %v2582_v30 = vsel %vm1002_vm12, %v2556_v48, 0.0 }
 0xcf4   :  { %2695 = vadd.xlane.f32.xlu1 %v2694_v33 }
 0xcf5   :  { %v2578_v9 = vsel %vm1002_vm12, %v2554_v27, 0.0 }
 0xcf8   :  { %2513 = vadd.xlane.f32.xlu1 %v6387_v61  ;;  %v6464_v61 = vpop.xlane.xlu0 %2539 }
 0xcfc   :  { %2517 = vadd.xlane.f32.xlu1 %v6393_v59  ;;  %v6633_v59 = vld [vmem:[#allocation30_spill] sm:$0xff]  ;;  %v6470_v52 = vpop.xlane.xlu0 %2541 }
 0xcfd   :  { %v1064_v50 = vand.u32 65535, %v6633_v59  ;;  %v2559_v47 = vsub.f32 1.0, %v6470_v52 }
 0xd00   :  { %2521 = vadd.xlane.f32.xlu1 %v6401_v19  ;;  %v6634_v19 = vld [vmem:[#allocation31_spill] sm:$0xff]  ;;  %v1000_v13 = vpop.xlane.xlu0 %999 }
 0xd01   :  { %vm1070_vm11 = vcmp.eq.f32.partialorder %v6634_v19, %v6453_v57  ;;  %v1075_v19 = vcvt.f32.s32 %v6453_v57  ;;  %v2588_v57 = vsel %vm1002_vm12, %v2559_v47, 0.0 }
 0xd04   :  { %2525 = vadd.xlane.f32.xlu1 %v6409_v24  ;;  %v1066_v24 = vcvt.s32.f32 %v1064_v50  ;;  %v1048_v35 = vpop.xlane.xlu0 %1047 }
 0xd05   :  { %v1049_v34 = vrot.slane %v1048_v35, 4 }
 0xd07   :  { %v1050_v51 = vadd.f32 %v1049_v34, %v1048_v35 }
 0xd08   :  { %2529 = vadd.xlane.f32.xlu1 %v6426_v38  ;;  %v1071_v38 = vsel %vm1070_vm11, %v1066_v24, inf  ;;  %v2558_v24 = vsub.f32 1.0, %v6464_v61 }
 0xd09   :  { %v1051_v54 = vrot.slane %v1050_v51, 2 }
 0xd0c   :  { %2533 = vadd.xlane.f32.xlu1 %v6436_v39  ;;  %v1001_v39 = vsub.f32 0.0, %v1000_v13 }
 0xd0e   :  { %v1003_v32 = vsel %vm1002_vm12, %v1001_v39, 0.0  ;;  %v1076_v39 = vshll.u32 %v1075_v19, 16 }
 0xd10   :  { %2537 = vadd.xlane.f32.xlu1 %v2509_v49 }
 0xd14   :  { %1072 = vmin.xlane.f32.xlu1 %v1071_v38 }
 0xd18   :  { %2543 = vadd.xlane.f32.xlu1 %v2512_v15 }
 0xd1c   :  { %1004 = vadd.xlane.f32.xlu1 %v1003_v32  ;;  %v2586_v32 = vsel %vm1002_vm12, %v2558_v24, 0.0 }
 0xd81   :  { %v2696_v55 = vpop.xlane.xlu1 %2695 }
 0xd82   :  { %v2697_v60 = vadd.f32 1e-12, %v2696_v55 }
 0xd84   :  { %4563 = vrsqrt.f32 %v2697_v60 }
 0xd85   :  { %v2514_v8 = vpop.xlane.xlu1 %2513 }
 0xd86   :  { %v2545_v49 = vsub.f32 1.0, %v2514_v8 }
 0xd88   :  { %v2561_v45 = vsel %vm1002_vm12, %v2545_v49, 0.0 }
 0xd89   :  { %v2518_v31 = vpop.xlane.xlu1 %2517  ;;  %v2563_v12 = vadd.f32 %v2562_v18, %v2561_v45 }
 0xd8a   :  { %v2547_v11 = vsub.f32 1.0, %v2518_v31 }
 0xd8c   :  { %v2564_v5 = vsel %vm1002_vm12, %v2547_v11, 0.0 }
 0xd8d   :  { %v2565_v37 = vadd.f32 %v2564_v5, %v2563_v12  ;;  %v2522_v25 = vpop.xlane.xlu1 %2521 }
 0xd8e   :  { %v4564_v58 = vpop.eup %4563  ;;  %v2549_v62 = vsub.f32 1.0, %v2522_v25  ;;  %v6637_v25 = vld [vmem:[#allocation33_spill] sm:$0xff] }
 0xd8f   :  { %v2567_v53 = vadd.f32 %v2566_v14, %v2565_v37  ;;  %v2699_v7 = vmul.f32 %v4564_v58, %v2690_v22  ;;  %v1052_v58 = vadd.f32 %v1051_v54, %v1050_v51 }
 0xd90   :  { %v2568_v4 = vsel %vm1002_vm12, %v2549_v62, 0.0 }
 0xd91   :  { %v2569_v17 = vadd.f32 %v2568_v4, %v2567_v53  ;;  %3995 = vmatmul.mubr.f32.vlgmr.msra.gmra.mrb[42].mxu1 %v2699_v7  ;;  %v2526_v21 = vpop.xlane.xlu1 %2525  ;;  %v1053_v62 = vrot.slane %v1052_v58, 1 }
 0xd92   :  { %v2551_v44 = vsub.f32 1.0, %v2526_v21 }
 0xd93   :  { %v2571_v63 = vadd.f32 %v2570_v2, %v2569_v17  ;;  %v1054_v4 = vadd.f32 %v1053_v62, %v1052_v58  ;;  %v1111_v17 = vpop.xlane.xlu0 %1110 }
 0xd94   :  { %v2572_v56 = vsel %vm1002_vm12, %v2551_v44, 0.0  ;;  %v1112_v21 = vrot.slane %v1111_v17, 4 }
 0xd95   :  { %v2573_v26 = vadd.f32 %v2572_v56, %v2571_v63  ;;  %v2530_v10 = vpop.xlane.xlu1 %2529 }
 0xd96   :  { %v2553_v33 = vsub.f32 1.0, %v2530_v10  ;;  %v1113_v2 = vadd.f32 %v1112_v21, %v1111_v17 }
 0xd97   :  { %v2575_v22 = vadd.f32 %v2574_v0, %v2573_v26  ;;  %v2605_v0 = vstv %s3108_s20 }
 0xd98   :  { %v2576_v23 = vsel %vm1002_vm12, %v2553_v33, 0.0  ;;  %v1114_v43 = vrot.slane %v1113_v2, 2  ;;  %4565 = vrcp.f32 %v2605_v0 }
 0xd99   :  { %v2577_v16 = vadd.f32 %v2576_v23, %v2575_v22  ;;  %v2534_v40 = vpop.xlane.xlu1 %2533 }
 0xd9a   :  { %v2555_v46 = vsub.f32 1.0, %v2534_v40  ;;  %v1115_v33 = vadd.f32 %v1114_v43, %v1113_v2 }
 0xd9b   :  { %v2579_v59 = vadd.f32 %v2578_v9, %v2577_v16 }
 0xd9c   :  { %v2580_v50 = vsel %vm1002_vm12, %v2555_v46, 0.0  ;;  %v1116_v46 = vrot.slane %v1115_v33, 1 }
 0xd9d   :  { %v2581_v1 = vadd.f32 %v2580_v50, %v2579_v59  ;;  %v2538_v29 = vpop.xlane.xlu1 %2537 }
 0xd9e   :  { %v2557_v41 = vsub.f32 1.0, %v2538_v29 }
 0xd9f   :  { %v2583_v36 = vadd.f32 %v2582_v30, %v2581_v1  ;;  %v1117_v30 = vadd.f32 %v1116_v46, %v1115_v33 }
 0xda0   :  { %v2584_v38 = vsel %vm1002_vm12, %v2557_v41, 0.0 }
 0xda1   :  { %v2585_v13 = vadd.f32 %v2584_v38, %v2583_v36  ;;  %v1073_v15 = vpop.xlane.xlu1 %1072 }
 0xda2   :  { %v1074_v55 = vcvt.f32.s32 %v1073_v15  ;;  %v4566_v36 = vpop.eup %4565 }
 0xda3   :  { %v2587_v60 = vadd.f32 %v2586_v32, %v2585_v13 }
 0xda4   :  { %v1077_v8 = vadd.s32 %v1076_v39, %v1074_v55 }
 0xda5   :  { %v2589_v61 = vadd.f32 %v2588_v57, %v2587_v60  ;;  %v2544_v49 = vpop.xlane.xlu1 %2543 }
 0xda6   :  { %v2560_v45 = vsub.f32 1.0, %v2544_v49  ;;  %vm1078_vm13 = vcmp.eq.s32.totalorder %v1077_v8, %v5232_v28 }
 0xda7   :  { %v3069_v52 = vsel %vm1078_vm13, 1.0, %v6616_v6 }
 0xda8   :  { %v2590_v31 = vsel %vm1002_vm12, %v2560_v45, 0.0  ;;  %v1081_v18 = vsel %vm1002_vm12, %v3069_v52, 0.0 }
 0xda9   :  { %v2591_v11 = vadd.f32 %v2590_v31, %v2589_v61  ;;  %1082 = vadd.xlane.f32.xlu1 %v1081_v18  ;;  %v1005_v12 = vpop.xlane.xlu1 %1004 }
 0xdaa   :  { %v1006_v5 = vrot.slane %v1005_v12, 4 }
 0xdab   :  { %2592 = vadd.xlane.f32.xlu0 %v2591_v11 }
 0xdac   :  { %v1007_v37 = vadd.f32 %v1006_v5, %v1005_v12 }
 0xdad   :  { %1918 = vadd.xlane.f32.xlu1 %v6637_v25 }
 0xdae   :  { %v1008_v14 = vrot.slane %v1007_v37, 2 }
 0xdb0   :  { %v1009_v20 = vadd.f32 %v1008_v14, %v1007_v37 }
 0xdb2   :  { %v1010_v53 = vrot.slane %v1009_v20, 1 }
 0xdb4   :  { %v1011_v7 = vadd.f32 %v1010_v53, %v1009_v20 }
 0xdb6   :  { %4367 = vpush %v1011_v7 }
 0xdb7   :  { %4369 = vpush %v1054_v4 }
 0xde7   :  { %s4368_s18 = spop %4367 }
 0xde8   :  { %s1015_s19 = smul.f32 0.125, %s4368_s18  ;;  %s4370_s5 = spop %4369 }
 0xde9   :  { %s1058_s8 = smul.f32 0.125, %s4370_s5  ;;  %s4823_s5 = scalar_lea.vmem %s3046_s28, 16 }
 0xdea   :  { %p4824_p1 = scmp.ne.s32.totalorder %s3046_s28, %s4823_s5  ;;  %p4829_p3 = scmp.lt.s32.totalorder %s4823_s5, %s4823_s5 }
 0xdeb   :  { %s6500_s1 = sadd.f32 %s1058_s8, %s1015_s19 }
 0xdec   :  { %p4830_p4 = por %p4829_p3, %p4828_p2 }
 0xded   :  { %s1060_s2 = smul.f32 0.5, %s6500_s1 }
 0xdee   :  { %p4831_p5 = pnand %p4830_p4, %p4824_p1 }
 0xdef   :  { %3020 = sst [smem:[#allocation21]] %s1060_s2 }
 0xe36   :  { %v1083_v44 = vpop.xlane.xlu1 %1082 }
 0xe37   :  { %v1084_v63 = vrot.slane %v1083_v44, 4 }
 0xe38   :  { %v2593_v56 = vpop.xlane.xlu0 %2592 }
 0xe39   :  { %v1085_v26 = vadd.f32 %v1084_v63, %v1083_v44  ;;  %v2594_v10 = vrot.slane %v2593_v56, 4 }
 0xe3a   :  { %v1919_v27 = vpop.xlane.xlu1 %1918 }
 0xe3b   :  { %v1086_v22 = vrot.slane %v1085_v26, 2  ;;  %v2595_v23 = vadd.f32 %v2594_v10, %v2593_v56  ;;  %v1920_v16 = vrot.slane %v1919_v27, 4 }
 0xe3d   :  { %v2596_v40 = vrot.slane %v2595_v23, 2  ;;  %v1921_v9 = vadd.f32 %v1920_v16, %v1919_v27  ;;  %v1087_v48 = vadd.f32 %v1086_v22, %v1085_v26 }
 0xe3f   :  { %v1922_v59 = vrot.slane %v1921_v9, 2  ;;  %v1088_v50 = vrot.slane %v1087_v48, 1  ;;  %v2597_v1 = vadd.f32 %v2596_v40, %v2595_v23 }
 0xe41   :  { %v1089_v29 = vadd.f32 %v1088_v50, %v1087_v48  ;;  %v1923_v19 = vadd.f32 %v1922_v59, %v1921_v9  ;;  %v2598_v24 = vrot.slane %v2597_v1, 1 }
 0xe43   :  { %4371 = vpush %v1089_v29  ;;  %v1924_v35 = vrot.slane %v1923_v19, 1  ;;  %v2599_v47 = vadd.f32 %v2598_v24, %v2597_v1 }
 0xe44   :  { %4373 = vpush %v1117_v30 }
 0xe45   :  { %v1925_v41 = vadd.f32 %v1924_v35, %v1923_v19 }
 0xe47   :  { %4375 = vpush %v1925_v41 }
 0xe48   :  { %4377 = vpush %v2599_v47 }
 0xe49   :  { %4379 = vpush %v4566_v36 }
 0xe64   :  { %v2858_v38 = vpop.f32.mrb[42].mxu1 }
 0xe65   :  { %v3996_v34 = vpop.f32.mrb[43].mxu1 }
 0xe74   :  { %s4372_s16 = spop %4371 }
 0xe75   :  { %s1093_s4 = smul.f32 0.125, %s4372_s16  ;;  %s4374_s7 = spop %4373 }
 0xe76   :  { %s1121_s9 = smul.f32 0.125, %s4374_s7 }
 0xe77   :  { %3022 = sst [smem:[#allocation21 + $0x1]] %s1093_s4 }
 0xe78   :  { %3024 = sst [smem:[#allocation21 + $0x2]] %s1121_s9  ;;  %s4376_s10 = spop %4375 }
 0xe79   :  { %s1929_s21 = smul.f32 6.1035156e-05, %s4376_s10  ;;  %s4378_s3 = spop %4377 }
 0xe7a   :  { %s2603_s0 = smul.f32 0.0078125, %s4378_s3  ;;  %s4380_s27 = spop %4379 }
 0xe7b   :  { %s3016_s23 = sadd.f32 %s1929_s21, %s1060_s2  ;;  %v2862_v13 = vstv %s4380_s27 }
 0xe7c   :  { %3026 = sst [smem:[#allocation21 + $0x3]] %s1929_s21  ;;  %v6507_v15 = vmul.f32 %v2862_v13, %v2858_v38 }
 0xe7d   :  { %s6509_s6 = sadd.f32 %s3016_s23, %s2603_s0 }
 0xe7e   :  { %3028 = sst [smem:[#allocation21 + $0x4]] %s2603_s0  ;;  %v2864_v39 = vsel %vm983_vm1, %v6507_v15, -inf }
 0xe7f   :  { %2865 = vmax.xlane.f32.xlu1 %v2864_v39  ;;  %v2895_v52 = vrot.slane %v2864_v39, 4 }
 0xe81   :  { %v2896_v31 = vmax.f32 %v2864_v39, %v2895_v52 }
 0xe83   :  { %v2897_v18 = vrot.slane %v2896_v31, 2 }
 0xe85   :  { %v2898_v54 = vmax.f32 %v2896_v31, %v2897_v18 }
 0xe87   :  { %v2899_v11 = vrot.slane %v2898_v54, 1 }
 0xe89   :  { %v2900_v12 = vmax.f32 %v2898_v54, %v2899_v11 }
 0xe8b   :  { %v2901_v5 = vsub.f32 %v6507_v15, %v2900_v12  ;;  %vm2972_vm15 = vcmp.eq.f32.partialorder %v6507_v15, %v2900_v12 }
 0xe8c   :  { %v2973_v44 = vsel %vm2972_vm15, %v5232_v28, 8 }
 0xe8d   :  { %v2902_v37 = vmul.f32 1.442695, %v2901_v5  ;;  %v2974_v56 = vsel %vm983_vm1, %v2973_v44, 2147483647 }
 0xe8e   :  { %v2975_v26 = vrot.slane %v2974_v56, 4 }
 0xe90   :  { %vm2976_vm4 = vcmp.lt.s32.totalorder %v2974_v56, %v2975_v26 }
 0xe91   :  { %v2977_v27 = vsel %vm2976_vm4, %v2974_v56, %v2975_v26 }
 0xe92   :  { %v2978_v22 = vrot.slane %v2977_v27, 2 }
 0xe94   :  { %vm2979_vm5 = vcmp.lt.s32.totalorder %v2977_v27, %v2978_v22 }
 0xe95   :  { %v2980_v40 = vsel %vm2979_vm5, %v2977_v27, %v2978_v22 }
 0xe96   :  { %v2981_v48 = vrot.slane %v2980_v40, 1 }
 0xe98   :  { %vm2982_vm2 = vcmp.lt.s32.totalorder %v2980_v40, %v2981_v48 }
 0xe99   :  { %v2983_v29 = vsel %vm2982_vm2, %v2980_v40, %v2981_v48 }
 0xe9a   :  { %vm2984_vm3 = vcmp.eq.s32.totalorder %v2983_v29, %v5261_v42 }
 0xe9b   :  { %v3110_v35 = vsel %vm2984_vm3, 1.0, %v6616_v6 }
 0xe9c   :  { %v2987_v36 = vsel %vm1045_vm10, %v3110_v35, 0.0 }
 0xf0c   :  { %v6513_v32 = vpop.xlane.xlu1 %2865 }
 0xf0d   :  { %v2867_v55 = vsub.f32 %v6507_v15, %v6513_v32  ;;  %vm2939_vm14 = vcmp.eq.f32.partialorder %v6507_v15, %v6513_v32 }
 0xf0e   :  { %v2940_v60 = vsel %vm2939_vm14, %v5261_v42, 8 }
 0xf0f   :  { %v2868_v57 = vmul.f32 1.442695, %v2867_v55  ;;  %v2941_v8 = vsel %vm983_vm1, %v2940_v60, 2147483647 }
 0xf10   :  { %v2943_v51 = vshra.s32 %v2941_v8, 16  ;;  %v2942_v46 = vand.u32 65535, %v2941_v8 }
 0xf11   :  { %4567 = vpow2.f32 %v2868_v57 }
 0xf12   :  { %v2945_v61 = vcvt.s32.f32 %v2943_v51  ;;  %4569 = vpow2.f32 %v2902_v37  ;;  %v2944_v1 = vcvt.s32.f32 %v2942_v46 }
 0xf14   :  { %2946 = vmin.xlane.f32.xlu1 %v2945_v61 }
 0xf1b   :  { %v4568_v49 = vpop.eup %4567 }
 0xf1c   :  { %v2870_v45 = vsel %vm983_vm1, %v4568_v49, 0.0  ;;  %v4570_v25 = vpop.eup %4569 }
 0xf1d   :  { %2871 = vadd.xlane.f32.xlu0 %v2870_v45  ;;  %v2904_v58 = vsel %vm983_vm1, %v4570_v25, 0.0 }
 0xf1e   :  { %v2905_v14 = vrot.slane %v2904_v58, 4 }
 0xf20   :  { %v2906_v20 = vadd.f32 %v2905_v14, %v2904_v58 }
 0xf22   :  { %v2907_v62 = vrot.slane %v2906_v20, 2 }
 0xf24   :  { %v2908_v53 = vadd.f32 %v2907_v62, %v2906_v20 }
 0xf26   :  { %v2909_v7 = vrot.slane %v2908_v53, 1 }
 0xf28   :  { %v2910_v4 = vadd.f32 %v2909_v7, %v2908_v53 }
 0xf2a   :  { %4571 = vlog2.f32 %v2910_v4 }
 0xf34   :  { %v4572_v17 = vpop.eup %4571 }
 0xf35   :  { %v2912_v21 = vmul.f32 0.6931472, %v4572_v17 }
 0xf37   :  { %v2913_v2 = vadd.f32 %v2912_v21, %v2900_v12 }
 0xf39   :  { %v2914_v43 = vsub.f32 %v6507_v15, %v2913_v2 }
 0xf3b   :  { %v2915_v63 = vmul.f32 %v2914_v43, %v6419_v3 }
 0xf3d   :  { %v2916_v10 = vsel %vm983_vm1, %v2915_v63, 0.0 }
 0xf3e   :  { %v2917_v0 = vrot.slane %v2916_v10, 4 }
 0xf40   :  { %v2918_v33 = vadd.f32 %v2917_v0, %v2916_v10 }
 0xf42   :  { %v2919_v23 = vrot.slane %v2918_v33, 2 }
 0xf44   :  { %v2920_v16 = vadd.f32 %v2919_v23, %v2918_v33 }
 0xf46   :  { %v2921_v9 = vrot.slane %v2920_v16, 1 }
 0xf48   :  { %v2922_v59 = vadd.f32 %v2921_v9, %v2920_v16 }
 0xf4a   :  { %v2923_v30 = vsub.f32 0.0, %v2922_v59 }
 0xf4c   :  { %v2924_v24 = vsel %vm1045_vm10, %v2923_v30, 0.0 }
 0xfa1   :  { %v2947_v50 = vpop.xlane.xlu1 %2946 }
 0xfa2   :  { %vm2948_vm0 = vcmp.eq.f32.partialorder %v2945_v61, %v2947_v50  ;;  %v2953_v60 = vcvt.f32.s32 %v2947_v50 }
 0xfa3   :  { %v2949_v19 = vsel %vm2948_vm0, %v2944_v1, inf }
 0xfa4   :  { %2950 = vmin.xlane.f32.xlu1 %v2949_v19  ;;  %v2954_v8 = vshll.u32 %v2953_v60, 16 }
 0xfa8   :  { %2925 = vadd.xlane.f32.xlu1 %v2924_v24 }
 0xfaa   :  { %v2872_v41 = vpop.xlane.xlu0 %2871 }
 0xfab   :  { %4573 = vlog2.f32 %v2872_v41 }
 0xfac   :  { %2988 = vadd.xlane.f32.xlu1 %v2987_v36 }
 0xfb5   :  { %v4574_v47 = vpop.eup %4573 }
 0xfb6   :  { %v2874_v38 = vmul.f32 0.6931472, %v4574_v47 }
 0xfb8   :  { %v2875_v34 = vadd.f32 %v2874_v38, %v6513_v32 }
 0xfba   :  { %v2876_v13 = vsub.f32 %v6507_v15, %v2875_v34 }
 0xfbc   :  { %v2877_v39 = vmul.f32 %v2876_v13, %v6419_v3 }
 0xfbe   :  { %v2878_v42 = vsel %vm983_vm1, %v2877_v39, 0.0 }
 0xfbf   :  { %2879 = vadd.xlane.f32.xlu0 %v2878_v42 }
0x1031   :  { %v2951_v55 = vpop.xlane.xlu1 %2950 }
0x1032   :  { %v2952_v57 = vcvt.f32.s32 %v2951_v55 }
0x1034   :  { %v2955_v51 = vadd.s32 %v2954_v8, %v2952_v57 }
0x1035   :  { %v2926_v3 = vpop.xlane.xlu1 %2925 }
0x1036   :  { %vm2956_vm6 = vcmp.eq.s32.totalorder %v2955_v51, %v5232_v28  ;;  %v2927_v52 = vrot.slane %v2926_v3, 4 }
0x1037   :  { %v3109_v32 = vsel %vm2956_vm6, 1.0, %v6616_v6 }
0x1038   :  { %v2959_v15 = vsel %vm1002_vm12, %v3109_v32, 0.0  ;;  %v2928_v18 = vadd.f32 %v2927_v52, %v2926_v3 }
0x1039   :  { %v2989_v31 = vpop.xlane.xlu1 %2988 }
0x103a   :  { %v2990_v54 = vrot.slane %v2989_v31, 4  ;;  %v2929_v11 = vrot.slane %v2928_v18, 2 }
0x103c   :  { %v2991_v12 = vadd.f32 %v2990_v54, %v2989_v31  ;;  %v2930_v14 = vadd.f32 %v2929_v11, %v2928_v18 }
0x103e   :  { %v2992_v58 = vrot.slane %v2991_v12, 2  ;;  %v2931_v4 = vrot.slane %v2930_v14, 1 }
0x1040   :  { %v2993_v7 = vadd.f32 %v2992_v58, %v2991_v12  ;;  %v2932_v44 = vadd.f32 %v2931_v4, %v2930_v14 }
0x1042   :  { %v2994_v63 = vrot.slane %v2993_v7, 1 }
0x1044   :  { %v2995_v10 = vadd.f32 %v2994_v63, %v2993_v7 }
0x104c   :  { %v2880_v61 = vpop.xlane.xlu0 %2879 }
0x104d   :  { %v2881_v49 = vsub.f32 0.0, %v2880_v61 }
0x104f   :  { %v2882_v45 = vsel %vm1002_vm12, %v2881_v49, 0.0 }
0x1050   :  { %2883 = vadd.xlane.f32.xlu0 %v2882_v45 }
0x1054   :  { %2960 = vadd.xlane.f32.xlu0 %v2959_v15 }
0x10dd   :  { %v2884_v5 = vpop.xlane.xlu0 %2883 }
0x10de   :  { %v2885_v37 = vrot.slane %v2884_v5, 4 }
0x10e0   :  { %v2886_v25 = vadd.f32 %v2885_v37, %v2884_v5 }
0x10e1   :  { %v2961_v28 = vpop.xlane.xlu0 %2960 }
0x10e2   :  { %v2887_v20 = vrot.slane %v2886_v25, 2  ;;  %v2962_v62 = vrot.slane %v2961_v28, 4 }
0x10e4   :  { %v2963_v53 = vadd.f32 %v2962_v62, %v2961_v28  ;;  %v2888_v6 = vadd.f32 %v2887_v20, %v2886_v25 }
0x10e6   :  { %v2964_v17 = vrot.slane %v2963_v53, 2  ;;  %v2889_v21 = vrot.slane %v2888_v6, 1 }
0x10e8   :  { %v2965_v2 = vadd.f32 %v2964_v17, %v2963_v53  ;;  %v2890_v43 = vadd.f32 %v2889_v21, %v2888_v6 }
0x10ea   :  { %4381 = vpush %v2890_v43  ;;  %v2966_v56 = vrot.slane %v2965_v2, 1 }
0x10eb   :  { %4383 = vpush %v2932_v44 }
0x10ec   :  { %v2967_v26 = vadd.f32 %v2966_v56, %v2965_v2 }
0x10ee   :  { %4385 = vpush %v2967_v26 }
0x10ef   :  { %4387 = vpush %v2995_v10 }
0x111b   :  { %s4382_s22 = spop %4381 }
0x111c   :  { %s2894_s24 = smul.f32 0.125, %s4382_s22  ;;  %s4384_s15 = spop %4383 }
0x111d   :  { %s2936_s14 = smul.f32 0.125, %s4384_s15 }
0x111f   :  { %s2937_s11 = sadd.f32 %s2936_s14, %s2894_s24  ;;  %s4386_s17 = spop %4385 }
0x1120   :  { %s2971_s29 = smul.f32 0.125, %s4386_s17  ;;  %s4388_s25 = spop %4387 }
0x1121   :  { %s2938_s30 = smul.f32 0.5, %s2937_s11 }
0x1122   :  { %3032 = sst [smem:[#allocation21 + $0x6]] %s2971_s29  ;;  %s2999_s18 = smul.f32 0.125, %s4388_s25 }
0x1123   :  { %s3018_s19 = sadd.f32 %s6509_s6, %s2938_s30 }
0x1124   :  { %3030 = sst [smem:[#allocation21 + $0x5]] %s2938_s30 }
0x1125   :  { %3036 = sst [smem:[#allocation21 + $0x8]] %s3018_s19 }
0x1126   :  { %3034 = sst [smem:[#allocation21 + $0x7]] %s2999_s18 }
0x1127   :  { %4834 = shalt.err (!%p4831_p5)
}
0x1128   :  { %s4870_s8 = smov [#allocation21]  }
0x1129   :  { %3048 = dma.smem_to_vmem %s4870_s8, 16, %s3046_s28, [#allocation5]  }
0x112a   :  { %4849 = dma.done.wait [#allocation5], 16  }
0x112b   :  { %4850 = vsyncadd [#allocation5], 4294967280 }
0x112c   :  { %3054 = sfence }
0x112d   :  { %3055 = vsyncpa [#allocation3], 1 }
0x112e   :  { %3056 = vsyncpa [#allocation8], 1 }
0x112f   :  { %3057 = vsyncpa [#allocation11], 1 }
0x1130   :  { %3058 = vsyncpa [#allocation14], 1 }
0x1131   :  { %3059 = vsyncpa [#allocation17], 1 }
0x1132   :  { %3060 = vsyncpa [#allocation20], 1 }
0x1133   :  { %3061 = vsyncpa [#allocation4], 1 }
0x1134   :  { %3062 = vsyncpa [#allocation5], 1 }

</bundles_post_ra>
